<compile_context>
chip_gen: v5e
topology: v5e:2x2
jax: 0.10.0
libtpu: 0.0.40
codegen_flags: <defaults>
</compile_context>

<pallas_src>
import functools

import jax
import jax.numpy as jnp
from jax.experimental import pallas as pl
from jax.experimental.pallas import tpu as pltpu


def _basic_block_kernel(x_ref, w1_ref, s1_ref, b1_ref, w2_ref, s2_ref, b2_ref,
                        out_ref, pad_ref, *, H, W, C):
    # x_ref   : (1, H, W, C) f32   unpadded input tile for one image
    # w1_ref  : (9*C, C)     bf16  conv1 weights, rows ordered (dy, dx, cin)
    # s1_ref  : (1, C)       f32   folded BN1 scale
    # b1_ref  : (1, C)       f32   folded BN1 bias
    # w2_ref  : (9*C, C)     bf16  conv2 weights
    # s2_ref  : (1, C)       f32   folded BN2 scale
    # b2_ref  : (1, C)       f32   folded BN2 bias
    # out_ref : (1, H, W, C) f32
    # pad_ref : (H+2, W+2, C) f32 VMEM scratch, reused for padded x then padded y1
    f32 = jnp.float32
    bf16 = jnp.bfloat16

    # ---- zero only the 1-element halo of the padded scratch ----
    # (interior is fully overwritten below; halo must be zero for both convs)
    zrow = jnp.zeros((1, W + 2, C), f32)
    zcol = jnp.zeros((H, 1, C), f32)
    pad_ref[0:1, :, :] = zrow
    pad_ref[H + 1:H + 2, :, :] = zrow
    pad_ref[1:H + 1, 0:1, :] = zcol
    pad_ref[1:H + 1, W + 1:W + 2, :] = zcol

    x3d = x_ref[0]                                       # (H, W, C) f32, unpadded
    pad_ref[1:H + 1, 1:W + 1, :] = x3d

    def conv3x3(w_ref):
        # im2col: concatenate the 9 shifted taps along the channel (lane) axis and run
        # ONE matmul with K = 9*C on the MXU (bf16 operands, f32 accumulation).
        slabs = [pad_ref[dy:dy + H, dx:dx + W, :]
                 for dy in range(3) for dx in range(3)]
        patches = jnp.concatenate(slabs, axis=-1)        # (H, W, 9C)
        patches = patches.reshape(H * W, 9 * C).astype(bf16)
        return jnp.dot(patches, w_ref[...],              # (9C, C) bf16
                       preferred_element_type=f32)       # -> (H*W, C) f32

    # ---- conv1 -> bn1 -> relu ----
    y1 = jnp.maximum(conv3x3(w1_ref) * s1_ref[0] + b1_ref[0], 0.0)   # (H*W, C) f32

    # ---- re-pad the intermediate into the SAME scratch (halo already zero) ----
    pad_ref[1:H + 1, 1:W + 1, :] = y1.reshape(H, W, C)

    # ---- conv2 -> bn2, residual add, relu ----
    y2 = conv3x3(w2_ref) * s2_ref[0] + b2_ref[0]                     # (H*W, C) f32
    out = jnp.maximum(x3d.reshape(H * W, C) + y2, 0.0)
    # TODO(synk): lane-pack the output (e.g. (C, H*W) or (H, W*C)) for lane-dense stores
    # when C < 128; kept at (H, W, C) here for reshape/lowering robustness.
    out_ref[...] = out.reshape(1, H, W, C).astype(out_ref.dtype)


def basic_block_with_death_rate(x_nchw, w1, gamma1, beta1, mean1, var1,
                                w2, gamma2, beta2, mean2, var2, eps=1e-5):
    """Forward of BasicBlockWithDeathRate (eval mode, stride=1, no downsample).

    x_nchw : (N, C, H, W) f32, w1/w2 : (Cout, Cin, 3, 3) f32 (PyTorch layouts, bias=False),
    gamma/beta/mean/var : (C,). Returns (N, C, H, W) f32.
    """
    N, C, H, W = x_nchw.shape

    # Kernel works in NHWC (channels on lanes); transpose at the boundary (glue only).
    x = jnp.transpose(x_nchw, (0, 2, 3, 1))              # (N, H, W, C), NOT pre-padded

    def fold_w(w):
        # (Cout, Cin, 3, 3) -> (3, 3, Cin, Cout) -> (9*Cin, Cout), bf16 for the MXU.
        return jnp.transpose(w, (2, 3, 1, 0)).reshape(9 * C, C).astype(jnp.bfloat16)

    def fold_bn(g, b, m, v):
        s = (g / jnp.sqrt(v + eps)).astype(jnp.float32)
        return s.reshape(1, C), (b - m * s).reshape(1, C).astype(jnp.float32)

    w1_k, w2_k = fold_w(w1), fold_w(w2)
    s1, b1 = fold_bn(gamma1, beta1, mean1, var1)
    s2, b2 = fold_bn(gamma2, beta2, mean2, var2)

    kernel = functools.partial(_basic_block_kernel, H=H, W=W, C=C)

    # TODO(synk): for large feature maps, add a row-strip grid axis (2-row halo for the
    # two stacked 3x3 convs) to bound vreg/VMEM pressure and deepen the pipeline.
    out_nhwc = pl.pallas_call(
        kernel,
        out_shape=jax.ShapeDtypeStruct((N, H, W, C), jnp.float32),
        grid_spec=pltpu.PrefetchScalarGridSpec(
            num_scalar_prefetch=0,
            grid=(N,),
            in_specs=[
                pl.BlockSpec((1, H, W, C), lambda n: (n, 0, 0, 0)),
                pl.BlockSpec((9 * C, C), lambda n: (0, 0)),
                pl.BlockSpec((1, C), lambda n: (0, 0)),
                pl.BlockSpec((1, C), lambda n: (0, 0)),
                pl.BlockSpec((9 * C, C), lambda n: (0, 0)),
                pl.BlockSpec((1, C), lambda n: (0, 0)),
                pl.BlockSpec((1, C), lambda n: (0, 0)),
            ],
            out_specs=pl.BlockSpec((1, H, W, C), lambda n: (n, 0, 0, 0)),
            scratch_shapes=[pltpu.VMEM((H + 2, W + 2, C), jnp.float32)],
        ),
        compiler_params=pltpu.CompilerParams(dimension_semantics=("parallel",)),
    )(x, w1_k, s1, b1, w2_k, s2, b2)

    return jnp.transpose(out_nhwc, (0, 3, 1, 2))         # back to NCHW


def _reference(x_nchw, w1, gamma1, beta1, mean1, var1,
               w2, gamma2, beta2, mean2, var2, eps=1e-5):
    """Pure-JAX f32 reference (same math) for a correctness check."""
    dn = jax.lax.conv_dimension_numbers(x_nchw.shape, w1.shape, ("NCHW", "OIHW", "NCHW"))

    def bn(y, g, b, m, v):
        sc = (g / jnp.sqrt(v + eps)).reshape(1, -1, 1, 1)
        return y * sc + (b - m * g / jnp.sqrt(v + eps)).reshape(1, -1, 1, 1)

    r = jax.lax.conv_general_dilated(x_nchw, w1, (1, 1), ((1, 1), (1, 1)),
                                     dimension_numbers=dn)
    r = jnp.maximum(bn(r, gamma1, beta1, mean1, var1), 0.0)
    r = jax.lax.conv_general_dilated(r, w2, (1, 1), ((1, 1), (1, 1)),
                                     dimension_numbers=dn)
    r = bn(r, gamma2, beta2, mean2, var2)
    return jnp.maximum(x_nchw + r, 0.0)


if __name__ == "__main__":
    key = jax.random.PRNGKey(0)
    ks = jax.random.split(key, 12)

    N, C, H, W = 2, 4, 16, 16   # inplanes == planes, stride=1, downsample=None

    x = jax.random.normal(ks[0], (N, C, H, W), jnp.float32)

    w1 = jax.random.normal(ks[1], (C, C, 3, 3), jnp.float32) * 0.2
    w2 = jax.random.normal(ks[2], (C, C, 3, 3), jnp.float32) * 0.2

    gamma1 = 1.0 + 0.1 * jax.random.normal(ks[3], (C,), jnp.float32)
    beta1 = 0.1 * jax.random.normal(ks[4], (C,), jnp.float32)
    mean1 = 0.1 * jax.random.normal(ks[5], (C,), jnp.float32)
    var1 = 1.0 + 0.1 * jax.random.uniform(ks[6], (C,), jnp.float32)

    gamma2 = 1.0 + 0.1 * jax.random.normal(ks[7], (C,), jnp.float32)
    beta2 = 0.1 * jax.random.normal(ks[8], (C,), jnp.float32)
    mean2 = 0.1 * jax.random.normal(ks[9], (C,), jnp.float32)
    var2 = 1.0 + 0.1 * jax.random.uniform(ks[10], (C,), jnp.float32)

    out = basic_block_with_death_rate(x, w1, gamma1, beta1, mean1, var1,
                                      w2, gamma2, beta2, mean2, var2)
    out = jax.block_until_ready(out)

    ref = _reference(x, w1, gamma1, beta1, mean1, var1,
                     w2, gamma2, beta2, mean2, var2)
    assert out.shape == (N, C, H, W)
    # bf16 MXU operands (two stacked convs) -> loosened tolerance vs. the f32 reference.
    assert jnp.allclose(out, ref, atol=1e-1, rtol=1e-1), "mismatch vs reference"

    print("KERNEL_OK")
</pallas_src>

<mosaic_0001>
module attributes {stable_mosaic.version = 11 : i64} {
  func.func @_basic_block_kernel(%arg0: i32, %arg1: memref<1x16x16x4xf32, #tpu.memory_space<vmem>>, %arg2: memref<36x4xbf16, #tpu.memory_space<vmem>>, %arg3: memref<1x4xf32, #tpu.memory_space<vmem>>, %arg4: memref<1x4xf32, #tpu.memory_space<vmem>>, %arg5: memref<36x4xbf16, #tpu.memory_space<vmem>>, %arg6: memref<1x4xf32, #tpu.memory_space<vmem>>, %arg7: memref<1x4xf32, #tpu.memory_space<vmem>>, %arg8: memref<1x16x16x4xf32, #tpu.memory_space<vmem>>, %arg9: memref<18x18x4xf32, #tpu.memory_space<vmem>>) attributes {dimension_semantics = [#tpu.dimension_semantics<parallel>], iteration_bounds = array<i64: 2>, scalar_prefetch = 0 : i64, scratch_operands = 1 : i64, tpu.core_type = #tpu.core_type<tc>, window_params = [{transform_indices = @transform_0, window_bounds = array<i64: 1, 16, 16, 4>}, {pipeline_mode = #tpu.pipeline_mode<synchronous>, transform_indices = @transform_1, window_bounds = array<i64: 36, 4>}, {pipeline_mode = #tpu.pipeline_mode<synchronous>, transform_indices = @transform_2, window_bounds = array<i64: 1, 4>}, {pipeline_mode = #tpu.pipeline_mode<synchronous>, transform_indices = @transform_3, window_bounds = array<i64: 1, 4>}, {pipeline_mode = #tpu.pipeline_mode<synchronous>, transform_indices = @transform_4, window_bounds = array<i64: 36, 4>}, {pipeline_mode = #tpu.pipeline_mode<synchronous>, transform_indices = @transform_5, window_bounds = array<i64: 1, 4>}, {pipeline_mode = #tpu.pipeline_mode<synchronous>, transform_indices = @transform_6, window_bounds = array<i64: 1, 4>}, {transform_indices = @transform_7, window_bounds = array<i64: 1, 16, 16, 4>}]} {
    %cst = arith.constant 0.000000e+00 : f32
    %0 = vector.broadcast %cst : f32 to vector<1x18x4xf32>
    %cst_0 = arith.constant 0.000000e+00 : f32
    %1 = vector.broadcast %cst_0 : f32 to vector<16x1x4xf32>
    %c0 = arith.constant 0 : index
    %c0_1 = arith.constant 0 : index
    %c0_2 = arith.constant 0 : index
    %2 = vector.load %arg9[%c0, %c0_1, %c0_2] : memref<18x18x4xf32, #tpu.memory_space<vmem>>, vector<1x18x4xf32>
    tpu.vector_store %arg9[%c0, %c0_1, %c0_2], %0 {strides = array<i32>} : memref<18x18x4xf32, #tpu.memory_space<vmem>>, vector<1x18x4xf32>,
    %c17 = arith.constant 17 : index
    %c0_3 = arith.constant 0 : index
    %c0_4 = arith.constant 0 : index
    %3 = vector.load %arg9[%c17, %c0_3, %c0_4] : memref<18x18x4xf32, #tpu.memory_space<vmem>>, vector<1x18x4xf32>
    tpu.vector_store %arg9[%c17, %c0_3, %c0_4], %0 {strides = array<i32>} : memref<18x18x4xf32, #tpu.memory_space<vmem>>, vector<1x18x4xf32>,
    %c1 = arith.constant 1 : index
    %c0_5 = arith.constant 0 : index
    %c0_6 = arith.constant 0 : index
    %4 = vector.load %arg9[%c1, %c0_5, %c0_6] : memref<18x18x4xf32, #tpu.memory_space<vmem>>, vector<16x1x4xf32>
    tpu.vector_store %arg9[%c1, %c0_5, %c0_6], %1 {strides = array<i32>} : memref<18x18x4xf32, #tpu.memory_space<vmem>>, vector<16x1x4xf32>,
    %c1_7 = arith.constant 1 : index
    %c17_8 = arith.constant 17 : index
    %c0_9 = arith.constant 0 : index
    %5 = vector.load %arg9[%c1_7, %c17_8, %c0_9] : memref<18x18x4xf32, #tpu.memory_space<vmem>>, vector<16x1x4xf32>
    tpu.vector_store %arg9[%c1_7, %c17_8, %c0_9], %1 {strides = array<i32>} : memref<18x18x4xf32, #tpu.memory_space<vmem>>, vector<16x1x4xf32>,
    %c0_10 = arith.constant 0 : index
    %c0_11 = arith.constant 0 : index
    %c0_12 = arith.constant 0 : index
    %c0_13 = arith.constant 0 : index
    %6 = vector.load %arg1[%c0_10, %c0_11, %c0_12, %c0_13] : memref<1x16x16x4xf32, #tpu.memory_space<vmem>>, vector<1x16x16x4xf32>
    %7 = vector.shape_cast %6 : vector<1x16x16x4xf32> to vector<16x16x4xf32>
    %c1_14 = arith.constant 1 : index
    %c1_15 = arith.constant 1 : index
    %c0_16 = arith.constant 0 : index
    %8 = vector.load %arg9[%c1_14, %c1_15, %c0_16] : memref<18x18x4xf32, #tpu.memory_space<vmem>>, vector<16x16x4xf32>
    tpu.vector_store %arg9[%c1_14, %c1_15, %c0_16], %7 {strides = array<i32>} : memref<18x18x4xf32, #tpu.memory_space<vmem>>, vector<16x16x4xf32>,
    %c0_17 = arith.constant 0 : index
    %c0_18 = arith.constant 0 : index
    %c0_19 = arith.constant 0 : index
    %9 = vector.load %arg9[%c0_17, %c0_18, %c0_19] : memref<18x18x4xf32, #tpu.memory_space<vmem>>, vector<16x16x4xf32>
    %c0_20 = arith.constant 0 : index
    %c1_21 = arith.constant 1 : index
    %c0_22 = arith.constant 0 : index
    %10 = vector.load %arg9[%c0_20, %c1_21, %c0_22] : memref<18x18x4xf32, #tpu.memory_space<vmem>>, vector<16x16x4xf32>
    %c0_23 = arith.constant 0 : index
    %c2 = arith.constant 2 : index
    %c0_24 = arith.constant 0 : index
    %11 = vector.load %arg9[%c0_23, %c2, %c0_24] : memref<18x18x4xf32, #tpu.memory_space<vmem>>, vector<16x16x4xf32>
    %c1_25 = arith.constant 1 : index
    %c0_26 = arith.constant 0 : index
    %c0_27 = arith.constant 0 : index
    %12 = vector.load %arg9[%c1_25, %c0_26, %c0_27] : memref<18x18x4xf32, #tpu.memory_space<vmem>>, vector<16x16x4xf32>
    %c1_28 = arith.constant 1 : index
    %c1_29 = arith.constant 1 : index
    %c0_30 = arith.constant 0 : index
    %13 = vector.load %arg9[%c1_28, %c1_29, %c0_30] : memref<18x18x4xf32, #tpu.memory_space<vmem>>, vector<16x16x4xf32>
    %c1_31 = arith.constant 1 : index
    %c2_32 = arith.constant 2 : index
    %c0_33 = arith.constant 0 : index
    %14 = vector.load %arg9[%c1_31, %c2_32, %c0_33] : memref<18x18x4xf32, #tpu.memory_space<vmem>>, vector<16x16x4xf32>
    %c2_34 = arith.constant 2 : index
    %c0_35 = arith.constant 0 : index
    %c0_36 = arith.constant 0 : index
    %15 = vector.load %arg9[%c2_34, %c0_35, %c0_36] : memref<18x18x4xf32, #tpu.memory_space<vmem>>, vector<16x16x4xf32>
    %c2_37 = arith.constant 2 : index
    %c1_38 = arith.constant 1 : index
    %c0_39 = arith.constant 0 : index
    %16 = vector.load %arg9[%c2_37, %c1_38, %c0_39] : memref<18x18x4xf32, #tpu.memory_space<vmem>>, vector<16x16x4xf32>
    %c2_40 = arith.constant 2 : index
    %c2_41 = arith.constant 2 : index
    %c0_42 = arith.constant 0 : index
    %17 = vector.load %arg9[%c2_40, %c2_41, %c0_42] : memref<18x18x4xf32, #tpu.memory_space<vmem>>, vector<16x16x4xf32>
    %18 = tpu.concatenate %9, %10, %11, %12, %13, %14, %15, %16, %17 in 2 : vector<16x16x4xf32>, vector<16x16x4xf32>, vector<16x16x4xf32>, vector<16x16x4xf32>, vector<16x16x4xf32>, vector<16x16x4xf32>, vector<16x16x4xf32>, vector<16x16x4xf32>, vector<16x16x4xf32> -> vector<16x16x36xf32>
    %19 = vector.shape_cast %18 : vector<16x16x36xf32> to vector<256x36xf32>
    %20 = arith.truncf %19 : vector<256x36xf32> to vector<256x36xbf16>
    %c0_43 = arith.constant 0 : index
    %c0_44 = arith.constant 0 : index
    %21 = vector.load %arg2[%c0_43, %c0_44] : memref<36x4xbf16, #tpu.memory_space<vmem>>, vector<36x4xbf16>
    %cst_45 = arith.constant dense<0.000000e+00> : vector<256x4xf32>
    %22 = tpu.matmul %20, %21, %cst_45 {dimension_numbers = #tpu.dot_dimension_numbers<[1], [0], [0], [1], [0, 0, 1, 1], [], []>} : vector<256x36xbf16>, vector<36x4xbf16>, vector<256x4xf32> -> vector<256x4xf32>
    %c0_46 = arith.constant 0 : index
    %c0_47 = arith.constant 0 : index
    %23 = vector.load %arg3[%c0_46, %c0_47] : memref<1x4xf32, #tpu.memory_space<vmem>>, vector<1x4xf32>
    %24 = vector.shape_cast %23 : vector<1x4xf32> to vector<4xf32>
    %25 = vector.shape_cast %24 : vector<4xf32> to vector<1x4xf32>
    %26 = vector.broadcast %25 : vector<1x4xf32> to vector<256x4xf32>
    %27 = arith.mulf %22, %26 : vector<256x4xf32>
    %c0_48 = arith.constant 0 : index
    %c0_49 = arith.constant 0 : index
    %28 = vector.load %arg4[%c0_48, %c0_49] : memref<1x4xf32, #tpu.memory_space<vmem>>, vector<1x4xf32>
    %29 = vector.shape_cast %28 : vector<1x4xf32> to vector<4xf32>
    %30 = vector.shape_cast %29 : vector<4xf32> to vector<1x4xf32>
    %31 = vector.broadcast %30 : vector<1x4xf32> to vector<256x4xf32>
    %32 = arith.addf %27, %31 : vector<256x4xf32>
    %cst_50 = arith.constant 0.000000e+00 : f32
    %33 = vector.broadcast %cst_50 : f32 to vector<256x4xf32>
    %34 = arith.maximumf %32, %33 : vector<256x4xf32>
    %35 = vector.shape_cast %34 : vector<256x4xf32> to vector<16x16x4xf32>
    %c1_51 = arith.constant 1 : index
    %c1_52 = arith.constant 1 : index
    %c0_53 = arith.constant 0 : index
    %36 = vector.load %arg9[%c1_51, %c1_52, %c0_53] : memref<18x18x4xf32, #tpu.memory_space<vmem>>, vector<16x16x4xf32>
    tpu.vector_store %arg9[%c1_51, %c1_52, %c0_53], %35 {strides = array<i32>} : memref<18x18x4xf32, #tpu.memory_space<vmem>>, vector<16x16x4xf32>,
    %c0_54 = arith.constant 0 : index
    %c0_55 = arith.constant 0 : index
    %c0_56 = arith.constant 0 : index
    %37 = vector.load %arg9[%c0_54, %c0_55, %c0_56] : memref<18x18x4xf32, #tpu.memory_space<vmem>>, vector<16x16x4xf32>
    %c0_57 = arith.constant 0 : index
    %c1_58 = arith.constant 1 : index
    %c0_59 = arith.constant 0 : index
    %38 = vector.load %arg9[%c0_57, %c1_58, %c0_59] : memref<18x18x4xf32, #tpu.memory_space<vmem>>, vector<16x16x4xf32>
    %c0_60 = arith.constant 0 : index
    %c2_61 = arith.constant 2 : index
    %c0_62 = arith.constant 0 : index
    %39 = vector.load %arg9[%c0_60, %c2_61, %c0_62] : memref<18x18x4xf32, #tpu.memory_space<vmem>>, vector<16x16x4xf32>
    %c1_63 = arith.constant 1 : index
    %c0_64 = arith.constant 0 : index
    %c0_65 = arith.constant 0 : index
    %40 = vector.load %arg9[%c1_63, %c0_64, %c0_65] : memref<18x18x4xf32, #tpu.memory_space<vmem>>, vector<16x16x4xf32>
    %c1_66 = arith.constant 1 : index
    %c1_67 = arith.constant 1 : index
    %c0_68 = arith.constant 0 : index
    %41 = vector.load %arg9[%c1_66, %c1_67, %c0_68] : memref<18x18x4xf32, #tpu.memory_space<vmem>>, vector<16x16x4xf32>
    %c1_69 = arith.constant 1 : index
    %c2_70 = arith.constant 2 : index
    %c0_71 = arith.constant 0 : index
    %42 = vector.load %arg9[%c1_69, %c2_70, %c0_71] : memref<18x18x4xf32, #tpu.memory_space<vmem>>, vector<16x16x4xf32>
    %c2_72 = arith.constant 2 : index
    %c0_73 = arith.constant 0 : index
    %c0_74 = arith.constant 0 : index
    %43 = vector.load %arg9[%c2_72, %c0_73, %c0_74] : memref<18x18x4xf32, #tpu.memory_space<vmem>>, vector<16x16x4xf32>
    %c2_75 = arith.constant 2 : index
    %c1_76 = arith.constant 1 : index
    %c0_77 = arith.constant 0 : index
    %44 = vector.load %arg9[%c2_75, %c1_76, %c0_77] : memref<18x18x4xf32, #tpu.memory_space<vmem>>, vector<16x16x4xf32>
    %c2_78 = arith.constant 2 : index
    %c2_79 = arith.constant 2 : index
    %c0_80 = arith.constant 0 : index
    %45 = vector.load %arg9[%c2_78, %c2_79, %c0_80] : memref<18x18x4xf32, #tpu.memory_space<vmem>>, vector<16x16x4xf32>
    %46 = tpu.concatenate %37, %38, %39, %40, %41, %42, %43, %44, %45 in 2 : vector<16x16x4xf32>, vector<16x16x4xf32>, vector<16x16x4xf32>, vector<16x16x4xf32>, vector<16x16x4xf32>, vector<16x16x4xf32>, vector<16x16x4xf32>, vector<16x16x4xf32>, vector<16x16x4xf32> -> vector<16x16x36xf32>
    %47 = vector.shape_cast %46 : vector<16x16x36xf32> to vector<256x36xf32>
    %48 = arith.truncf %47 : vector<256x36xf32> to vector<256x36xbf16>
    %c0_81 = arith.constant 0 : index
    %c0_82 = arith.constant 0 : index
    %49 = vector.load %arg5[%c0_81, %c0_82] : memref<36x4xbf16, #tpu.memory_space<vmem>>, vector<36x4xbf16>
    %cst_83 = arith.constant dense<0.000000e+00> : vector<256x4xf32>
    %50 = tpu.matmul %48, %49, %cst_83 {dimension_numbers = #tpu.dot_dimension_numbers<[1], [0], [0], [1], [0, 0, 1, 1], [], []>} : vector<256x36xbf16>, vector<36x4xbf16>, vector<256x4xf32> -> vector<256x4xf32>
    %c0_84 = arith.constant 0 : index
    %c0_85 = arith.constant 0 : index
    %51 = vector.load %arg6[%c0_84, %c0_85] : memref<1x4xf32, #tpu.memory_space<vmem>>, vector<1x4xf32>
    %52 = vector.shape_cast %51 : vector<1x4xf32> to vector<4xf32>
    %53 = vector.shape_cast %52 : vector<4xf32> to vector<1x4xf32>
    %54 = vector.broadcast %53 : vector<1x4xf32> to vector<256x4xf32>
    %55 = arith.mulf %50, %54 : vector<256x4xf32>
    %c0_86 = arith.constant 0 : index
    %c0_87 = arith.constant 0 : index
    %56 = vector.load %arg7[%c0_86, %c0_87] : memref<1x4xf32, #tpu.memory_space<vmem>>, vector<1x4xf32>
    %57 = vector.shape_cast %56 : vector<1x4xf32> to vector<4xf32>
    %58 = vector.shape_cast %57 : vector<4xf32> to vector<1x4xf32>
    %59 = vector.broadcast %58 : vector<1x4xf32> to vector<256x4xf32>
    %60 = arith.addf %55, %59 : vector<256x4xf32>
    %61 = vector.shape_cast %7 : vector<16x16x4xf32> to vector<256x4xf32>
    %62 = arith.addf %61, %60 : vector<256x4xf32>
    %cst_88 = arith.constant 0.000000e+00 : f32
    %63 = vector.broadcast %cst_88 : f32 to vector<256x4xf32>
    %64 = arith.maximumf %62, %63 : vector<256x4xf32>
    %65 = vector.shape_cast %64 : vector<256x4xf32> to vector<1x16x16x4xf32>
    %c0_89 = arith.constant 0 : index
    %c0_90 = arith.constant 0 : index
    %c0_91 = arith.constant 0 : index
    %c0_92 = arith.constant 0 : index
    %66 = vector.load %arg8[%c0_89, %c0_90, %c0_91, %c0_92] : memref<1x16x16x4xf32, #tpu.memory_space<vmem>>, vector<1x16x16x4xf32>
    tpu.vector_store %arg8[%c0_89, %c0_90, %c0_91, %c0_92], %65 {strides = array<i32>} : memref<1x16x16x4xf32, #tpu.memory_space<vmem>>, vector<1x16x16x4xf32>,
    return
  }
  func.func @transform_0(%arg0: i32) -> (i32, i32, i32, i32) {
    %c0_i32 = arith.constant 0 : i32
    %c0_i32_0 = arith.constant 0 : i32
    %c0_i32_1 = arith.constant 0 : i32
    %c0_i32_2 = arith.constant 0 : i32
    return %arg0, %c0_i32, %c0_i32_0, %c0_i32_1 : i32, i32, i32, i32
  }
  func.func @transform_1(%arg0: i32) -> (i32, i32) {
    %c0_i32 = arith.constant 0 : i32
    %c0_i32_0 = arith.constant 0 : i32
    %c0_i32_1 = arith.constant 0 : i32
    return %c0_i32, %c0_i32_0 : i32, i32
  }
  func.func @transform_2(%arg0: i32) -> (i32, i32) {
    %c0_i32 = arith.constant 0 : i32
    %c0_i32_0 = arith.constant 0 : i32
    %c0_i32_1 = arith.constant 0 : i32
    return %c0_i32, %c0_i32_0 : i32, i32
  }
  func.func @transform_3(%arg0: i32) -> (i32, i32) {
    %c0_i32 = arith.constant 0 : i32
    %c0_i32_0 = arith.constant 0 : i32
    %c0_i32_1 = arith.constant 0 : i32
    return %c0_i32, %c0_i32_0 : i32, i32
  }
  func.func @transform_4(%arg0: i32) -> (i32, i32) {
    %c0_i32 = arith.constant 0 : i32
    %c0_i32_0 = arith.constant 0 : i32
    %c0_i32_1 = arith.constant 0 : i32
    return %c0_i32, %c0_i32_0 : i32, i32
  }
  func.func @transform_5(%arg0: i32) -> (i32, i32) {
    %c0_i32 = arith.constant 0 : i32
    %c0_i32_0 = arith.constant 0 : i32
    %c0_i32_1 = arith.constant 0 : i32
    return %c0_i32, %c0_i32_0 : i32, i32
  }
  func.func @transform_6(%arg0: i32) -> (i32, i32) {
    %c0_i32 = arith.constant 0 : i32
    %c0_i32_0 = arith.constant 0 : i32
    %c0_i32_1 = arith.constant 0 : i32
    return %c0_i32, %c0_i32_0 : i32, i32
  }
  func.func @transform_7(%arg0: i32) -> (i32, i32, i32, i32) {
    %c0_i32 = arith.constant 0 : i32
    %c0_i32_0 = arith.constant 0 : i32
    %c0_i32_1 = arith.constant 0 : i32
    %c0_i32_2 = arith.constant 0 : i32
    return %arg0, %c0_i32, %c0_i32_0, %c0_i32_1 : i32, i32, i32, i32
  }
}

</mosaic_0001>

<bundles_post_ra>
// kernel: tpu_custom_call.1
= control target key start
LH: loop header
LB: loop body
LE: loop exit
PB: predicated region body
PF: predicated region fallthrough
CT: control target
= control target key end

     0   :  { %s5692_s24 = smov 0   ;;  %s8437_s0 = inlined_call_operand.vmem [shape: f32[2,16,16,4], index: 0, kind: input, shape index: {}]   ;;  %s8438_s1 = inlined_call_operand.vmem [shape: bf16[36,4], index: 1, kind: input, shape index: {}]   ;;  %s8439_s2 = inlined_call_operand.vmem [shape: f32[1,4], index: 2, kind: input, shape index: {}]   ;;  %s8440_s3 = inlined_call_operand.vmem [shape: f32[1,4], index: 3, kind: input, shape index: {}]   ;;  %s8441_s4 = inlined_call_operand.vmem [shape: bf16[36,4], index: 4, kind: input, shape index: {}]   ;;  %s8442_s5 = inlined_call_operand.vmem [shape: f32[1,4], index: 5, kind: input, shape index: {}]   ;;  %s8443_s6 = inlined_call_operand.vmem [shape: f32[1,4], index: 6, kind: input, shape index: {}]   ;;  %s8444_s7 = inlined_call_operand.vmem [shape: f32[2,16,16,4], index: 7, kind: output, shape index: {}]  }
   0x1 LB: > { %s4244_s25 = sadd.s32 4294967295, %s5641_s24   ;;  %p4248_p0 = scmp.ge.s32.totalorder %s5641_s24, 1  ;;  %s5641_s24 = sphi %s5692_s24, %s17_s24  }
   0x2   : > { %p237_p1 = scmp.lt.s32.totalorder %s5641_s24, 3 }
   0x4   : > { %p238_p2 = pnand %p4248_p0, %p237_p1 }
   0x6   : > { %241 = sbr.rel (%p238_p2) target bundleno = 1302 (0x516), region = 48 }
   0xb   : > { %vm280_vm0 = vcmask 31744   ;;  %vm283_vm1 = vcmask 25600   ;;  %p269_p3 = scmp.lt.s32.totalorder %s4244_s25, 1  ;;  %v5643_v0 = vmov 0.0   ;;  %s5644_s30 = smov 4   ;;  %vm290_vm2 = vcmask 24576  }
   0xc   : > { %281 = vst.msk [vmem:[#allocation2] sm:$0xff] %vm280_vm0, %v5643_v0  ;;  %s5645_s8 = smov 8   ;;  %s5646_s9 = smov 12   ;;  %vm2048_vm3 = vcmask 1041408   ;;  %vm1765_vm4 = vcmask 97280   ;;  %vm1732_vm5 = vcmask 64512  }
   0xd   : > { %282 = vst.msk [vmem:[#allocation2 + $0x8] sm:$0xff] %vm280_vm0, %v5643_v0  ;;  %s8829_s25 = smov (!%p269_p3, %s4244_s25), 1  ;;  %s5647_s10 = smov 16   ;;  %vm1798_vm6 = vcmask 130048   ;;  %vm1864_vm7 = vcmask 195584   ;;  %vm1831_vm8 = vcmask 162816  }
   0xe   : > { %284 = vst.msk [vmem:[#allocation2 + $0x10] sm:$0x3] %vm283_vm1, %v5643_v0  ;;  %s4303_s26 = sshll.u32 %s8829_s25, 8  ;;  %s5648_s11 = smov 20   ;;  %vm1897_vm9 = vcmask 228352   ;;  %vm1930_vm10 = vcmask 261120  }
   0xf   : > { %288 = vst.msk [vmem:[#allocation2 + $0x1a8] sm:$0x3] %vm283_vm1, %v5643_v0  ;;  %s5716_s29 = scalar_lea.vmem %s8437_s0, %s4303_s26  ;;  %s5649_s12 = smov 24   ;;  %vm1999_vm11 = vcmask 293888  }
  0x10   : > { %286 = vst.msk [vmem:[#allocation2 + $0x198] sm:$0xff] %vm280_vm0, %v5643_v0  ;;  %v5721_v1 = vld [vmem:[%s5716_s29 + $0x30] sm:$0xff]  ;;  %v5724_v2 = vld [vmem:[%s5716_s29 + $0x38] sm:$0xff]  ;;  %v5737_v5 = vld [vmem:[%s5716_s29] sm:$0xff]  ;;  %s5650_s13 = smov 28   ;;  %s5651_s14 = smov 32  }
  0x11   : > { %287 = vst.msk [vmem:[#allocation2 + $0x1a0] sm:$0xff] %vm280_vm0, %v5643_v0  ;;  %v5727_v3 = vld [vmem:[%s5716_s29 + $0x10] sm:$0xff]  ;;  %v5732_v4 = vld [vmem:[%s5716_s29 + $0x18] sm:$0xff]  ;;  %v5742_v7 = vld [vmem:[%s5716_s29 + $0x8] sm:$0xff]  ;;  %s8277_s17 = scalar_lea.vmem %s8444_s7, %s4303_s26 }
  0x12   : > { %8571 = vst [vmem:[#allocation3_spill] sm:$0xff] %v5721_v1  ;;  %v5747_v9 = vld [vmem:[%s5716_s29 + $0x40] sm:$0xff]  ;;  %v5752_v11 = vld [vmem:[%s5716_s29 + $0x48] sm:$0xff]  ;;  %v5768_v15 = vld [vmem:[%s5716_s29 + $0x50] sm:$0xff] }
  0x13   : > { %8572 = vst [vmem:[#allocation4_spill] sm:$0xff] %v5724_v2  ;;  %v5757_v12 = vld [vmem:[%s5716_s29 + $0x20] sm:$0xff]  ;;  %v5763_v13 = vld [vmem:[%s5716_s29 + $0x28] sm:$0xff]  ;;  %v5773_v17 = vld [vmem:[%s5716_s29 + $0x58] sm:$0xff] }
  0x14   : > { %8573 = vst [vmem:[#allocation5_spill] sm:$0xff] %v5727_v3  ;;  %v419_v6 = vld [vmem:[#allocation2 + $0x1] sm:$0xff]  ;;  %v5780_v20 = vld [vmem:[%s5716_s29 + $0x70] sm:$0xff]  ;;  %v5785_v22 = vld [vmem:[%s5716_s29 + $0x78] sm:$0xff] }
  0x15   : > { %361 = vst.msk [vmem:[#allocation2 + $0x61] sm:$0xff] %vm280_vm0, %v5721_v1  ;;  %v420_v8 = vld [vmem:[#allocation2 + $0x9] sm:$0xff]  ;;  %v5794_v25 = vld [vmem:[%s5716_s29 + $0x60] sm:$0xff]  ;;  %v5839_v42 = vld [vmem:[%s5716_s29 + $0x98] sm:$0xff] }
  0x16   : > { %8574 = vst [vmem:[#allocation6_spill] sm:$0xff] %v5732_v4  ;;  %v4332_v10 = vpack.i.bf16 %v420_v8, %v419_v6  ;;  %v5799_v27 = vld [vmem:[%s5716_s29 + $0x68] sm:$0xff]  ;;  %v5808_v30 = vld [vmem:[%s5716_s29 + $0x80] sm:$0xff]  ;;  %v5834_v40 = vld [vmem:[%s5716_s29 + $0x90] sm:$0xff] }
  0x17   : > { %362 = vst.msk [vmem:[#allocation2 + $0x69] sm:$0xff] %vm280_vm0, %v5724_v2  ;;  %v5813_v32 = vld [vmem:[%s5716_s29 + $0x88] sm:$0xff]  ;;  %v5822_v35 = vld [vmem:[%s5716_s29 + $0xa0] sm:$0xff]  ;;  %v5848_v44 = vld [vmem:[%s5716_s29 + $0xb0] sm:$0xff] }
  0x18   : > { %8575 = vst [vmem:[#allocation7_spill] sm:$0xff] %v5737_v5  ;;  %4333 = vrot.lane.b32.xlu0 %v4332_v10, %s5644_s30  ;;  %v5827_v37 = vld [vmem:[%s5716_s29 + $0xa8] sm:$0xff]  ;;  %v5853_v47 = vld [vmem:[%s5716_s29 + $0xb8] sm:$0xff]  ;;  %v5860_v48 = vld [vmem:[%s5716_s29 + $0xd0] sm:$0xff] }
  0x19   : > { %357 = vst.msk [vmem:[#allocation2 + $0x31] sm:$0xff] %vm280_vm0, %v5727_v3  ;;  %v5865_v51 = vld [vmem:[%s5716_s29 + $0xd8] sm:$0xff]  ;;  %v5874_v53 = vld [vmem:[%s5716_s29 + $0xc0] sm:$0xff]  ;;  %v5879_v56 = vld [vmem:[%s5716_s29 + $0xc8] sm:$0xff] }
  0x1a   : > { %8576 = vst [vmem:[#allocation8_spill] sm:$0xff] %v5742_v7  ;;  %v5886_v58 = vld [vmem:[%s5716_s29 + $0xe0] sm:$0xff]  ;;  %v5891_v59 = vld [vmem:[%s5716_s29 + $0xe8] sm:$0xff] }
  0x1b   : > { %358 = vst.msk [vmem:[#allocation2 + $0x39] sm:$0xff] %vm280_vm0, %v5732_v4 }
  0x1c   : > { %8577 = vst [vmem:[#allocation9_spill] sm:$0xff] %v5747_v9  ;;  %v427_v14 = vld [vmem:[#allocation2 + $0x61] sm:$0xff] }
  0x1d   : > { %355 = vst.msk [vmem:[#allocation2 + $0x19] sm:$0xff] %vm280_vm0, %v5737_v5 }
  0x1e   : > { %8578 = vst [vmem:[#allocation10_spill] sm:$0xff] %v5752_v11  ;;  %v428_v16 = vld [vmem:[#allocation2 + $0x69] sm:$0xff] }
  0x1f   : > { %356 = vst.msk [vmem:[#allocation2 + $0x21] sm:$0xff] %vm280_vm0, %v5742_v7  ;;  %v5775_v18 = vpack.i.bf16 %v428_v16, %v427_v14 }
  0x20   : > { %8579 = vst [vmem:[#allocation11_spill] sm:$0xff] %v5757_v12  ;;  %v423_v19 = vld [vmem:[#allocation2 + $0x31] sm:$0xff] }
  0x21   : > { %363 = vst.msk [vmem:[#allocation2 + $0x79] sm:$0xff] %vm280_vm0, %v5747_v9  ;;  %4353 = vrot.lane.b32.xlu2 %v5775_v18, %s5644_s30 }
  0x22   : > { %8580 = vst [vmem:[#allocation12_spill] sm:$0xff] %v5763_v13  ;;  %v424_v21 = vld [vmem:[#allocation2 + $0x39] sm:$0xff] }
  0x23   : > { %364 = vst.msk [vmem:[#allocation2 + $0x81] sm:$0xff] %vm280_vm0, %v5752_v11  ;;  %v5789_v23 = vpack.i.bf16 %v424_v21, %v423_v19 }
  0x24   : > { %8581 = vst [vmem:[#allocation13_spill] sm:$0xff] %v5768_v15  ;;  %v421_v24 = vld [vmem:[#allocation2 + $0x19] sm:$0xff] }
  0x25   : > { %359 = vst.msk [vmem:[#allocation2 + $0x49] sm:$0xff] %vm280_vm0, %v5757_v12  ;;  %4343 = vrot.lane.b32.xlu1 %v5789_v23, %s5644_s30 }
  0x26   : > { %8582 = vst [vmem:[#allocation14_spill] sm:$0xff] %v5773_v17  ;;  %v422_v26 = vld [vmem:[#allocation2 + $0x21] sm:$0xff] }
  0x27   : > { %360 = vst.msk [vmem:[#allocation2 + $0x51] sm:$0xff] %vm280_vm0, %v5763_v13  ;;  %v5803_v28 = vpack.i.bf16 %v422_v26, %v421_v24 }
  0x28   : > { %8583 = vst [vmem:[#allocation15_spill] sm:$0xff] %v5780_v20  ;;  %v429_v29 = vld [vmem:[#allocation2 + $0x79] sm:$0xff] }
  0x29   : > { %365 = vst.msk [vmem:[#allocation2 + $0x91] sm:$0xff] %vm280_vm0, %v5768_v15  ;;  %4338 = vrot.lane.b32.xlu0 %v5803_v28, %s5644_s30 }
  0x2a   : > { %8584 = vst [vmem:[#allocation16_spill] sm:$0xff] %v5785_v22  ;;  %v430_v31 = vld [vmem:[#allocation2 + $0x81] sm:$0xff] }
  0x2b   : > { %366 = vst.msk [vmem:[#allocation2 + $0x99] sm:$0xff] %vm280_vm0, %v5773_v17  ;;  %v5817_v33 = vpack.i.bf16 %v430_v31, %v429_v29  ;;  %v6093_v11 = vld [vmem:[#allocation2 + $0x80] sm:$0xff] }
  0x2c   : > { %8585 = vst [vmem:[#allocation17_spill] sm:$0xff] %v5794_v25  ;;  %v425_v34 = vld [vmem:[#allocation2 + $0x49] sm:$0xff] }
  0x2d   : > { %369 = vst.msk [vmem:[#allocation2 + $0xc1] sm:$0xff] %vm280_vm0, %v5780_v20  ;;  %4358 = vrot.lane.b32.xlu2 %v5817_v33, %s5644_s30 }
  0x2e   : > { %8586 = vst [vmem:[#allocation18_spill] sm:$0xff] %v5799_v27  ;;  %v426_v36 = vld [vmem:[#allocation2 + $0x51] sm:$0xff] }
  0x2f   : > { %370 = vst.msk [vmem:[#allocation2 + $0xc9] sm:$0xff] %vm280_vm0, %v5785_v22  ;;  %v5829_v38 = vpack.i.bf16 %v426_v36, %v425_v34 }
  0x30   : > { %8587 = vst [vmem:[#allocation19_spill] sm:$0xff] %v5808_v30  ;;  %v431_v39 = vld [vmem:[#allocation2 + $0x91] sm:$0xff] }
  0x31   : > { %367 = vst.msk [vmem:[#allocation2 + $0xa9] sm:$0xff] %vm280_vm0, %v5794_v25  ;;  %4348 = vrot.lane.b32.xlu1 %v5829_v38, %s5644_s30  ;;  %v6062_v25 = vld [vmem:[#allocation2 + $0x38] sm:$0xff] }
  0x32   : > { %8588 = vst [vmem:[#allocation20_spill] sm:$0xff] %v5813_v32  ;;  %v432_v41 = vld [vmem:[#allocation2 + $0x99] sm:$0xff] }
  0x33   : > { %368 = vst.msk [vmem:[#allocation2 + $0xb1] sm:$0xff] %vm280_vm0, %v5799_v27  ;;  %v5843_v43 = vpack.i.bf16 %v432_v41, %v431_v39  ;;  %v494_v2 = vld [vmem:[#allocation2 + $0x98] sm:$0xff] }
  0x34   : > { %8589 = vst [vmem:[#allocation21_spill] sm:$0xff] %v5822_v35  ;;  %v435_v45 = vld [vmem:[#allocation2 + $0xc1] sm:$0xff] }
  0x35   : > { %371 = vst.msk [vmem:[#allocation2 + $0xd9] sm:$0xff] %vm280_vm0, %v5808_v30  ;;  %4363 = vrot.lane.b32.xlu0 %v5843_v43, %s5644_s30 }
  0x36   : > { %8590 = vst [vmem:[#allocation22_spill] sm:$0xff] %v5827_v37  ;;  %v436_v46 = vld [vmem:[#allocation2 + $0xc9] sm:$0xff] }
  0x37   : > { %372 = vst.msk [vmem:[#allocation2 + $0xe1] sm:$0xff] %vm280_vm0, %v5813_v32  ;;  %v5869_v52 = vpack.i.bf16 %v436_v46, %v435_v45  ;;  %v453_v45 = vld [vmem:[#allocation2 + $0x1a] sm:$0xff]  ;;  %v6112_v1 = vld [vmem:[#allocation2 + $0xc8] sm:$0xff] }
  0x38   : > { %8591 = vst [vmem:[#allocation23_spill] sm:$0xff] %v5834_v40  ;;  %v433_v49 = vld [vmem:[#allocation2 + $0xa9] sm:$0xff] }
  0x39   : > { %375 = vst.msk [vmem:[#allocation2 + $0x109] sm:$0xff] %vm280_vm0, %v5822_v35  ;;  %4373 = vrot.lane.b32.xlu2 %v5869_v52, %s5644_s30 }
  0x3a   : > { %8592 = vst [vmem:[#allocation24_spill] sm:$0xff] %v5839_v42  ;;  %v434_v50 = vld [vmem:[#allocation2 + $0xb1] sm:$0xff] }
  0x3b   : > { %376 = vst.msk [vmem:[#allocation2 + $0x111] sm:$0xff] %vm280_vm0, %v5827_v37  ;;  %v5881_v57 = vpack.i.bf16 %v434_v50, %v433_v49  ;;  %v451_v49 = vld [vmem:[#allocation2 + $0x2] sm:$0xff]  ;;  %v452_v50 = vld [vmem:[#allocation2 + $0xa] sm:$0xff] }
  0x3c   : > { %8593 = vst [vmem:[#allocation25_spill] sm:$0xff] %v5848_v44  ;;  %v437_v54 = vld [vmem:[#allocation2 + $0xd9] sm:$0xff] }
  0x3d   : > { %373 = vst.msk [vmem:[#allocation2 + $0xf1] sm:$0xff] %vm280_vm0, %v5834_v40  ;;  %4368 = vrot.lane.b32.xlu1 %v5881_v57, %s5644_s30 }
  0x3e   : > { %8594 = vst [vmem:[#allocation26_spill] sm:$0xff] %v5853_v47  ;;  %v438_v55 = vld [vmem:[#allocation2 + $0xe1] sm:$0xff] }
  0x3f   : > { %374 = vst.msk [vmem:[#allocation2 + $0xf9] sm:$0xff] %vm280_vm0, %v5839_v42  ;;  %v5895_v60 = vpack.i.bf16 %v438_v55, %v437_v54  ;;  %v4412_v55 = vpack.i.bf16 %v452_v50, %v451_v49  ;;  %v463_v49 = vld [vmem:[#allocation2 + $0x92] sm:$0xff] }
  0x40   : > { %8595 = vst [vmem:[#allocation27_spill] sm:$0xff] %v5860_v48  ;;  %v441_v61 = vld [vmem:[#allocation2 + $0x109] sm:$0xff] }
  0x41   : > { %377 = vst.msk [vmem:[#allocation2 + $0x121] sm:$0xff] %vm280_vm0, %v5848_v44  ;;  %4378 = vrot.lane.b32.xlu0 %v5895_v60, %s5644_s30 }
  0x42   : > { %8596 = vst [vmem:[#allocation28_spill] sm:$0xff] %v5865_v51  ;;  %v442_v62 = vld [vmem:[#allocation2 + $0x111] sm:$0xff] }
  0x43   : > { %378 = vst.msk [vmem:[#allocation2 + $0x129] sm:$0xff] %vm280_vm0, %v5853_v47  ;;  %v5909_v8 = vpack.i.bf16 %v442_v62, %v441_v61  ;;  %v455_v61 = vld [vmem:[#allocation2 + $0x32] sm:$0xff] }
  0x44   : > { %8597 = vst [vmem:[#allocation29_spill] sm:$0xff] %v5874_v53  ;;  %v439_v63 = vld [vmem:[#allocation2 + $0xf1] sm:$0xff] }
  0x45   : > { %381 = vst.msk [vmem:[#allocation2 + $0x151] sm:$0xff] %vm280_vm0, %v5860_v48  ;;  %4388 = vrot.lane.b32.xlu2 %v5909_v8, %s5644_s30  ;;  %v504_v35 = vld [vmem:[#allocation2 + $0x110] sm:$0xff] }
  0x46   : > { %8598 = vst [vmem:[#allocation30_spill] sm:$0xff] %v5879_v56  ;;  %v440_v6 = vld [vmem:[#allocation2 + $0xf9] sm:$0xff] }
  0x47   : > { %382 = vst.msk [vmem:[#allocation2 + $0x159] sm:$0xff] %vm280_vm0, %v5865_v51  ;;  %v5915_v16 = vpack.i.bf16 %v440_v6, %v439_v63  ;;  %v457_v63 = vld [vmem:[#allocation2 + $0x4a] sm:$0xff]  ;;  %v459_v6 = vld [vmem:[#allocation2 + $0x62] sm:$0xff]  ;;  %v502_v13 = vld [vmem:[#allocation2 + $0xf8] sm:$0xff] }
  0x48   : > { %8599 = vst [vmem:[#allocation31_spill] sm:$0xff] %v5886_v58  ;;  %v443_v10 = vld [vmem:[#allocation2 + $0x121] sm:$0xff] }
  0x49   : > { %379 = vst.msk [vmem:[#allocation2 + $0x139] sm:$0xff] %vm280_vm0, %v5874_v53  ;;  %4383 = vrot.lane.b32.xlu1 %v5915_v16, %s5644_s30 }
  0x4a   : > { %8600 = vst [vmem:[#allocation32_spill] sm:$0xff] %v5891_v59  ;;  %v444_v14 = vld [vmem:[#allocation2 + $0x129] sm:$0xff] }
  0x4b   : > { %380 = vst.msk [vmem:[#allocation2 + $0x141] sm:$0xff] %vm280_vm0, %v5879_v56  ;;  %v5923_v19 = vpack.i.bf16 %v444_v14, %v443_v10  ;;  %v496_v56 = vld [vmem:[#allocation2 + $0xb0] sm:$0xff]  ;;  %v506_v40 = vld [vmem:[#allocation2 + $0x128] sm:$0xff] }
  0x4c   : > { %383 = vst.msk [vmem:[#allocation2 + $0x169] sm:$0xff] %vm280_vm0, %v5886_v58  ;;  %v447_v21 = vld [vmem:[#allocation2 + $0x151] sm:$0xff] }
  0x4d   : > { %384 = vst.msk [vmem:[#allocation2 + $0x171] sm:$0xff] %vm280_vm0, %v5891_v59  ;;  %4393 = vrot.lane.b32.xlu0 %v5923_v19, %s5644_s30  ;;  %v6048_v59 = vld [vmem:[#allocation2 + $0x20] sm:$0xff] }
  0x4e   : > { %307 = vst.msk [vmem:[#allocation2 + $0x29] sm:$0x1] %vm290_vm2, %v5643_v0  ;;  %v448_v24 = vld [vmem:[#allocation2 + $0x159] sm:$0xff] }
  0x4f   : > { %291 = vst.msk [vmem:[#allocation2 + $0x18] sm:$0x1] %vm290_vm2, %v5643_v0  ;;  %v5937_v31 = vpack.i.bf16 %v448_v24, %v447_v21 }
  0x50   : > { %292 = vst.msk [vmem:[#allocation2 + $0x30] sm:$0x1] %vm290_vm2, %v5643_v0  ;;  %v445_v26 = vld [vmem:[#allocation2 + $0x139] sm:$0xff] }
  0x51   : > { %293 = vst.msk [vmem:[#allocation2 + $0x48] sm:$0x1] %vm290_vm2, %v5643_v0  ;;  %4403 = vrot.lane.b32.xlu2 %v5937_v31, %s5644_s30 }
  0x52   : > { %294 = vst.msk [vmem:[#allocation2 + $0x60] sm:$0x1] %vm290_vm2, %v5643_v0  ;;  %v446_v29 = vld [vmem:[#allocation2 + $0x141] sm:$0xff] }
  0x53   : > { %295 = vst.msk [vmem:[#allocation2 + $0x78] sm:$0x1] %vm290_vm2, %v5643_v0  ;;  %v449_v34 = vld [vmem:[#allocation2 + $0x169] sm:$0xff]  ;;  %v5943_v39 = vpack.i.bf16 %v446_v29, %v445_v26  ;;  %v461_v29 = vld [vmem:[#allocation2 + $0x7a] sm:$0xff] }
  0x54   : > { %296 = vst.msk [vmem:[#allocation2 + $0x90] sm:$0x1] %vm290_vm2, %v5643_v0  ;;  %v450_v36 = vld [vmem:[#allocation2 + $0x171] sm:$0xff]  ;;  %v508_v42 = vld [vmem:[#allocation2 + $0x140] sm:$0xff] }
  0x55   : > { %297 = vst.msk [vmem:[#allocation2 + $0xa8] sm:$0x1] %vm290_vm2, %v5643_v0  ;;  %v5951_v41 = vpack.i.bf16 %v450_v36, %v449_v34  ;;  %v454_v46 = vld [vmem:[#allocation2 + $0x22] sm:$0xff]  ;;  %4398 = vrot.lane.b32.xlu1 %v5943_v39, %s5644_s30  ;;  %v465_v36 = vld [vmem:[#allocation2 + $0xaa] sm:$0xff] }
  0x56   : > { %298 = vst.msk [vmem:[#allocation2 + $0xc0] sm:$0x1] %vm290_vm2, %v5643_v0  ;;  %v5965_v54 = vpack.i.bf16 %v454_v46, %v453_v45  ;;  %v6046_v27 = vld [vmem:[#allocation2 + $0x18] sm:$0xff] }
  0x57   : > { %299 = vst.msk [vmem:[#allocation2 + $0xd8] sm:$0x1] %vm290_vm2, %v5643_v0  ;;  %4408 = vrot.lane.b32.xlu0 %v5951_v41, %s5644_s30 }
  0x58   : > { %300 = vst.msk [vmem:[#allocation2 + $0xf0] sm:$0x1] %vm290_vm2, %v5643_v0  ;;  %v487_v17 = vld [vmem:[#allocation2 + $0x48] sm:$0xff] }
  0x59   : > { %301 = vst.msk [vmem:[#allocation2 + $0x108] sm:$0x1] %vm290_vm2, %v5643_v0  ;;  %4418 = vrot.lane.b32.xlu2 %v5965_v54, %s5645_s8  ;;  %v6065_v58 = vld [vmem:[#allocation2 + $0x60] sm:$0xff] }
  0x5a   : > { %302 = vst.msk [vmem:[#allocation2 + $0x120] sm:$0x1] %vm290_vm2, %v5643_v0  ;;  %v491_v48 = vld [vmem:[#allocation2 + $0x78] sm:$0xff] }
  0x5b   : > { %303 = vst.msk [vmem:[#allocation2 + $0x138] sm:$0x1] %vm290_vm2, %v5643_v0  ;;  %v6102_v9 = vpack.i.bf16 %v6093_v11, %v491_v48  ;;  %v493_v53 = vld [vmem:[#allocation2 + $0x90] sm:$0xff] }
  0x5c   : > { %304 = vst.msk [vmem:[#allocation2 + $0x150] sm:$0x1] %vm290_vm2, %v5643_v0 }
  0x5d   : > { %305 = vst.msk [vmem:[#allocation2 + $0x168] sm:$0x1] %vm290_vm2, %v5643_v0  ;;  %4413 = vrot.lane.b32.xlu1 %v4412_v55, %s5645_s8  ;;  %v6110_v47 = vld [vmem:[#allocation2 + $0xc0] sm:$0xff] }
  0x5e   : > { %306 = vst.msk [vmem:[#allocation2 + $0x180] sm:$0x1] %vm290_vm2, %v5643_v0 }
  0x5f   : > { %308 = vst.msk [vmem:[#allocation2 + $0x41] sm:$0x1] %vm290_vm2, %v5643_v0  ;;  %v501_v44 = vld [vmem:[#allocation2 + $0xf0] sm:$0xff] }
  0x60   : > { %309 = vst.msk [vmem:[#allocation2 + $0x59] sm:$0x1] %vm290_vm2, %v5643_v0  ;;  %v503_v12 = vld [vmem:[#allocation2 + $0x108] sm:$0xff] }
  0x61   : > { %310 = vst.msk [vmem:[#allocation2 + $0x71] sm:$0x1] %vm290_vm2, %v5643_v0 }
  0x62   : > { %311 = vst.msk [vmem:[#allocation2 + $0x89] sm:$0x1] %vm290_vm2, %v5643_v0  ;;  %v507_v4 = vld [vmem:[#allocation2 + $0x138] sm:$0xff] }
  0x63   : > { %312 = vst.msk [vmem:[#allocation2 + $0xa1] sm:$0x1] %vm290_vm2, %v5643_v0  ;;  %v6144_v7 = vpack.i.bf16 %v508_v42, %v507_v4  ;;  %v509_v30 = vld [vmem:[#allocation2 + $0x150] sm:$0xff] }
  0x64   : > { %313 = vst.msk [vmem:[#allocation2 + $0xb9] sm:$0x1] %vm290_vm2, %v5643_v0  ;;  %v512_v42 = vld [vmem:[#allocation2 + $0x170] sm:$0xff] }
  0x65   : > { %314 = vst.msk [vmem:[#allocation2 + $0xd1] sm:$0x1] %vm290_vm2, %v5643_v0 }
  0x66   : > { %315 = vst.msk [vmem:[#allocation2 + $0xe9] sm:$0x1] %vm290_vm2, %v5643_v0  ;;  %v456_v62 = vld [vmem:[#allocation2 + $0x3a] sm:$0xff] }
  0x67   : > { %316 = vst.msk [vmem:[#allocation2 + $0x101] sm:$0x1] %vm290_vm2, %v5643_v0  ;;  %v5988_v10 = vpack.i.bf16 %v456_v62, %v455_v61  ;;  %v458_v14 = vld [vmem:[#allocation2 + $0x52] sm:$0xff]  ;;  %v467_v62 = vld [vmem:[#allocation2 + $0xc2] sm:$0xff] }
  0x68   : > { %317 = vst.msk [vmem:[#allocation2 + $0x119] sm:$0x1] %vm290_vm2, %v5643_v0  ;;  %v460_v21 = vld [vmem:[#allocation2 + $0x6a] sm:$0xff]  ;;  %v5996_v24 = vpack.i.bf16 %v458_v14, %v457_v63 }
  0x69   : > { %318 = vst.msk [vmem:[#allocation2 + $0x131] sm:$0x1] %vm290_vm2, %v5643_v0  ;;  %4423 = vrot.lane.b32.xlu0 %v5988_v10, %s5645_s8  ;;  %v5998_v26 = vpack.i.bf16 %v460_v21, %v459_v6  ;;  %v462_v34 = vld [vmem:[#allocation2 + $0x82] sm:$0xff]  ;;  %v469_v21 = vld [vmem:[#allocation2 + $0xda] sm:$0xff] }
  0x6a   : > { %319 = vst.msk [vmem:[#allocation2 + $0x149] sm:$0x1] %vm290_vm2, %v5643_v0  ;;  %4428 = vrot.lane.b32.xlu1 %v5996_v24, %s5645_s8  ;;  %v6012_v46 = vpack.i.bf16 %v462_v34, %v461_v29  ;;  %v464_v50 = vld [vmem:[#allocation2 + $0x9a] sm:$0xff] }
  0x6b   : > { %320 = vst.msk [vmem:[#allocation2 + $0x161] sm:$0x1] %vm290_vm2, %v5643_v0  ;;  %4433 = vrot.lane.b32.xlu2 %v5998_v26, %s5645_s8  ;;  %v466_v45 = vld [vmem:[#allocation2 + $0xb2] sm:$0xff]  ;;  %v6018_v61 = vpack.i.bf16 %v464_v50, %v463_v49  ;;  %v477_v50 = vld [vmem:[#allocation2 + $0x13a] sm:$0xff] }
  0x6c   : > { %321 = vst.msk [vmem:[#allocation2 + $0x179] sm:$0x1] %vm290_vm2, %v5643_v0  ;;  %v6014_v55 = vpack.i.bf16 %v466_v45, %v465_v36  ;;  %v468_v63 = vld [vmem:[#allocation2 + $0xca] sm:$0xff] }
  0x6d   : > { %322 = vst.msk [vmem:[#allocation2 + $0x191] sm:$0x1] %vm290_vm2, %v5643_v0  ;;  %v471_v0 = vld [vmem:[#allocation2 + $0xf2] sm:$0xff]  ;;  %v6024_v14 = vpack.i.bf16 %v468_v63, %v467_v62  ;;  %v470_v29 = vld [vmem:[#allocation2 + $0xe2] sm:$0xff]  ;;  %v473_v45 = vld [vmem:[#allocation2 + $0x10a] sm:$0xff] }
  0x6e   : > { %v472_v6 = vld [vmem:[#allocation2 + $0xfa] sm:$0xff]  ;;  %v6030_v36 = vpack.i.bf16 %v470_v29, %v469_v21  ;;  %v475_v63 = vld [vmem:[#allocation2 + $0x122] sm:$0xff]  ;;  %v479_v29 = vld [vmem:[#allocation2 + $0x152] sm:$0xff]  ;;  %8601 = vst [vmem:[#allocation33_spill] sm:$0xff] %v6046_v27 }
  0x6f   : > { %v6026_v34 = vpack.i.bf16 %v472_v6, %v471_v0  ;;  %v474_v49 = vld [vmem:[#allocation2 + $0x112] sm:$0xff]  ;;  %8602 = vst [vmem:[#allocation34_spill] sm:$0xff] %v6048_v59 }
  0x70   : > { %v6036_v62 = vpack.i.bf16 %v474_v49, %v473_v45  ;;  %v476_v0 = vld [vmem:[#allocation2 + $0x12a] sm:$0xff]  ;;  %8603 = vst [vmem:[#allocation35_spill] sm:$0xff] %v6062_v25 }
  0x71   : > { %4438 = vrot.lane.b32.xlu0 %v6012_v46, %s5645_s8  ;;  %v478_v22 = vld [vmem:[#allocation2 + $0x142] sm:$0xff]  ;;  %v6042_v21 = vpack.i.bf16 %v476_v0, %v475_v63  ;;  %v481_v45 = vld [vmem:[#allocation2 + $0x16a] sm:$0xff] }
  0x72   : > { %4443 = vrot.lane.b32.xlu1 %v6018_v61, %s5645_s8  ;;  %v6038_v6 = vpack.i.bf16 %v478_v22, %v477_v50  ;;  %v480_v20 = vld [vmem:[#allocation2 + $0x15a] sm:$0xff]  ;;  %v4492_v50 = vpack.i.bf16 %v6048_v59, %v6046_v27  ;;  %v6060_v0 = vld [vmem:[#allocation2 + $0x30] sm:$0xff] }
  0x73   : > { %4448 = vrot.lane.b32.xlu2 %v6014_v55, %s5645_s8  ;;  %v6052_v22 = vpack.i.bf16 %v480_v20, %v479_v29  ;;  %v482_v49 = vld [vmem:[#allocation2 + $0x172] sm:$0xff]  ;;  %v6067_v20 = vld [vmem:[#allocation2 + $0x68] sm:$0xff] }
  0x74   : > { %v6058_v63 = vpack.i.bf16 %v482_v49, %v481_v45  ;;  %v6070_v29 = vld [vmem:[%s5716_s29 + $0xf0] sm:$0xff]  ;;  %v6076_v45 = vpack.i.bf16 %v6062_v25, %v6060_v0  ;;  %v6079_v49 = vld [vmem:[%s5716_s29 + $0xf8] sm:$0xff]  ;;  %v6087_v51 = vpack.i.bf16 %v6067_v20, %v6065_v58 }
  0x75   : > { %8604 = vst [vmem:[#allocation36_spill] sm:$0xff] %v6070_v29 }
  0x76   : > { %8605 = vst [vmem:[#allocation37_spill] sm:$0xff] %v6079_v49 }
  0x77   : > { %385 = vst.msk [vmem:[#allocation2 + $0x181] sm:$0xff] %vm280_vm0, %v6070_v29  ;;  %v495_v29 = vld [vmem:[#allocation2 + $0xa8] sm:$0xff] }
  0x78   : > { %386 = vst.msk [vmem:[#allocation2 + $0x189] sm:$0xff] %vm280_vm0, %v6079_v49 }
  0x79   : > { %4453 = vrot.lane.b32.xlu0 %v6024_v14, %s5645_s8 }
  0x7a   : > { %4458 = vrot.lane.b32.xlu1 %v6030_v36, %s5645_s8 }
  0x7b   : > { %4463 = vrot.lane.b32.xlu2 %v6026_v34, %s5645_s8  ;;  %v6099_v49 = vpop.permute.xlu2 %4353 }
  0x7f   : > { %v514_v59 = vld [vmem:[#allocation2 + $0x188] sm:$0xff] }
  0x81   : > { %4468 = vrot.lane.b32.xlu0 %v6036_v62, %s5645_s8 }
  0x82   : > { %4473 = vrot.lane.b32.xlu1 %v6042_v21, %s5645_s8 }
  0x83   : > { %4478 = vrot.lane.b32.xlu2 %v6038_v6, %s5645_s8 }
  0x87   : > { %v6118_v48 = vpop.permute.xlu2 %4358 }
  0x88   : > { %8606 = vst [vmem:[#allocation38_spill] sm:$0xff] %v6118_v48 }
  0x89   : > { %4483 = vrot.lane.b32.xlu0 %v6052_v22, %s5645_s8 }
  0x8a   : > { %4488 = vrot.lane.b32.xlu1 %v6058_v63, %s5645_s8  ;;  %v6146_v32 = vpop.permute.xlu0 %4333 }
  0x8b   : > { %4493 = vrot.lane.b32.xlu2 %v4492_v50, %s5646_s9  ;;  %v488_v50 = vld [vmem:[#allocation2 + $0x50] sm:$0xff] }
  0x8c   : > { %v6091_v15 = vpack.i.bf16 %v488_v50, %v487_v17  ;;  %v6104_v17 = vpack.i.bf16 %v496_v56, %v495_v29  ;;  %v6108_v50 = vpack.i.bf16 %v494_v2, %v493_v53  ;;  %v6122_v56 = vpack.i.bf16 %v6112_v1, %v6110_v47  ;;  %v6124_v2 = vld [vmem:[#allocation2 + $0xd8] sm:$0xff]  ;;  %v6126_v53 = vld [vmem:[#allocation2 + $0xe0] sm:$0xff] }
  0x8d   : > { %8607 = vst [vmem:[#allocation39_spill] sm:$0xff] %v6124_v2  ;;  %v6128_v29 = vpack.i.bf16 %v502_v13, %v501_v44  ;;  %v6134_v37 = vpack.i.bf16 %v6126_v53, %v6124_v2  ;;  %v6142_v13 = vpack.i.bf16 %v504_v35, %v503_v12  ;;  %v505_v44 = vld [vmem:[#allocation2 + $0x120] sm:$0xff]  ;;  %v510_v2 = vld [vmem:[#allocation2 + $0x158] sm:$0xff]  ;;  %v511_v35 = vld [vmem:[#allocation2 + $0x168] sm:$0xff] }
  0x8e   : > { %8608 = vst [vmem:[#allocation40_spill] sm:$0xff] %v6126_v53  ;;  %v6150_v5 = vpack.i.bf16 %v506_v40, %v505_v44  ;;  %v513_v53 = vld [vmem:[#allocation2 + $0x180] sm:$0xff]  ;;  %v6158_v4 = vpack.i.bf16 %v510_v2, %v509_v30  ;;  %v6168_v25 = vpack.i.bf16 %v512_v42, %v511_v35 }
  0x8f   : > { %v6162_v40 = vpack.i.bf16 %v514_v59, %v513_v53 }
  0x91   : > { %4498 = vrot.lane.b32.xlu0 %v6076_v45, %s5646_s9 }
  0x92   : > { %4503 = vrot.lane.b32.xlu1 %v6091_v15, %s5646_s9 }
  0x93   : > { %4508 = vrot.lane.b32.xlu2 %v6087_v51, %s5646_s9  ;;  %v6140_v3 = vpop.permute.xlu2 %4373 }
  0x97   : > { %v6160_v27 = vpop.permute.xlu1 %4343 }
  0x99   : > { %4513 = vrot.lane.b32.xlu0 %v6102_v9, %s5646_s9 }
  0x9a   : > { %4518 = vrot.lane.b32.xlu1 %v6108_v50, %s5646_s9 }
  0x9b   : > { %4523 = vrot.lane.b32.xlu2 %v6104_v17, %s5646_s9  ;;  %v6166_v44 = vpop.permute.xlu0 %4338 }
  0x9f   : > { %v6156_v12 = vpop.permute.xlu2 %4388 }
  0xa1   : > { %4528 = vrot.lane.b32.xlu0 %v6122_v56, %s5646_s9 }
  0xa2   : > { %4533 = vrot.lane.b32.xlu1 %v6134_v37, %s5646_s9 }
  0xa3   : > { %4538 = vrot.lane.b32.xlu2 %v6128_v29, %s5646_s9  ;;  %v6176_v2 = vpop.permute.xlu1 %4348 }
  0xa7   : > { %v6180_v59 = vpop.permute.xlu0 %4363 }
  0xa8   : > { %8610 = vst [vmem:[#allocation42_spill] sm:$0xff] %v6180_v59 }
  0xa9   : > { %4543 = vrot.lane.b32.xlu0 %v6142_v13, %s5646_s9 }
  0xaa   : > { %4548 = vrot.lane.b32.xlu1 %v6150_v5, %s5646_s9 }
  0xab   : > { %4553 = vrot.lane.b32.xlu2 %v6144_v7, %s5646_s9  ;;  %v6174_v30 = vpop.permute.xlu2 %4403 }
  0xac   : > { %8609 = vst [vmem:[#allocation41_spill] sm:$0xff] %v6174_v30 }
  0xaf   : > { %v6188_v35 = vpop.permute.xlu1 %4368 }
  0xb0   : > { %8611 = vst [vmem:[#allocation43_spill] sm:$0xff] %v6188_v35 }
  0xb1   : > { %4558 = vrot.lane.b32.xlu0 %v6158_v4, %s5646_s9 }
  0xb2   : > { %4563 = vrot.lane.b32.xlu1 %v6168_v25, %s5646_s9 }
  0xb3   : > { %4568 = vrot.lane.b32.xlu2 %v6162_v40, %s5646_s9  ;;  %v6186_v53 = vpop.permute.xlu2 %4418  ;;  %v6192_v42 = vpop.permute.xlu0 %4378 }
  0xb9   : > { %4573 = vrot.lane.b32.xlu0 %v5803_v28, %s5647_s10 }
  0xba   : > { %4578 = vrot.lane.b32.xlu1 %v5789_v23, %s5647_s10 }
  0xbb   : > { %4583 = vrot.lane.b32.xlu2 %v5829_v38, %s5647_s10  ;;  %v6200_v38 = vpop.permute.xlu1 %4383 }
  0xbf   : > { %v6204_v23 = vpop.permute.xlu0 %4393 }
  0xc0   : > { %8613 = vst [vmem:[#allocation45_spill] sm:$0xff] %v6204_v23  ;;  %v635_v23 = vld [vmem:[#allocation2 + $0x141] sm:$0xff] }
  0xc1   : > { %4588 = vrot.lane.b32.xlu0 %v5775_v18, %s5647_s10 }
  0xc2   : > { %4593 = vrot.lane.b32.xlu1 %v5817_v33, %s5647_s10 }
  0xc3   : > { %4598 = vrot.lane.b32.xlu2 %v5843_v43, %s5647_s10 }
  0xc5   : > { %v6198_v28 = vpop.permute.xlu2 %4433 }
  0xc6   : > { %8612 = vst [vmem:[#allocation44_spill] sm:$0xff] %v6198_v28 }
  0xc7   : > { %v6212_v43 = vpop.permute.xlu1 %4398 }
  0xc8   : > { %8615 = vst [vmem:[#allocation47_spill] sm:$0xff] %v6212_v43  ;;  %v618_v43 = vld [vmem:[#allocation2 + $0x79] sm:$0xff] }
  0xc9   : > { %4603 = vrot.lane.b32.xlu0 %v5881_v57, %s5647_s10  ;;  %v6216_v33 = vpop.permute.xlu0 %4408 }
  0xca   : > { %4608 = vrot.lane.b32.xlu1 %v5869_v52, %s5647_s10  ;;  %8616 = vst [vmem:[#allocation48_spill] sm:$0xff] %v6216_v33  ;;  %v545_v52 = vld [vmem:[#allocation2 + $0x181] sm:$0xff]  ;;  %v578_v33 = vld [vmem:[#allocation2 + $0x18a] sm:$0xff] }
  0xcb   : > { %4613 = vrot.lane.b32.xlu2 %v5895_v60, %s5647_s10 }
  0xcd   : > { %v6210_v18 = vpop.permute.xlu2 %4448 }
  0xce   : > { %8614 = vst [vmem:[#allocation46_spill] sm:$0xff] %v6210_v18  ;;  %v546_v18 = vld [vmem:[#allocation2 + $0x189] sm:$0xff] }
  0xcf   : > { %v6224_v60 = vpop.permute.xlu1 %4413 }
  0xd1   : > { %4618 = vrot.lane.b32.xlu0 %v5915_v16, %s5647_s10 }
  0xd2   : > { %4623 = vrot.lane.b32.xlu1 %v5909_v8, %s5647_s10  ;;  %v6236_v8 = vpack.i.bf16 %v546_v18, %v545_v52 }
  0xd3   : > { %4628 = vrot.lane.b32.xlu2 %v5923_v19, %s5647_s10 }
  0xd5   : > { %v6222_v57 = vpop.permute.xlu2 %4463 }
  0xd9   : > { %4633 = vrot.lane.b32.xlu0 %v5943_v39, %s5647_s10 }
  0xda   : > { %4638 = vrot.lane.b32.xlu1 %v5937_v31, %s5647_s10 }
  0xdb   : > { %v6228_v35 = vpop.permute.xlu0 %4423  ;;  %4643 = vrot.lane.b32.xlu2 %v5951_v41, %s5647_s10 }
  0xdc   : > { %v6238_v19 = vpop.permute.xlu1 %4428 }
  0xdd   : > { %v6234_v16 = vpop.permute.xlu2 %4478 }
  0xde   : > { %8617 = vst [vmem:[#allocation49_spill] sm:$0xff] %v6234_v16 }
  0xe1   : > { %4648 = vrot.lane.b32.xlu0 %v6236_v8, %s5647_s10 }
  0xe2   : > { %4653 = vrot.lane.b32.xlu1 %v5965_v54, %s5648_s11 }
  0xe3   : > { %v6242_v39 = vpop.permute.xlu0 %4438  ;;  %4658 = vrot.lane.b32.xlu2 %v5988_v10, %s5648_s11 }
  0xe4   : > { %8618 = vst [vmem:[#allocation50_spill] sm:$0xff] %v6242_v39  ;;  %v6250_v31 = vpop.permute.xlu1 %4443 }
  0xe5   : > { %v6248_v41 = vpop.permute.xlu2 %4493  ;;  %8619 = vst [vmem:[#allocation51_spill] sm:$0xff] %v6250_v31  ;;  %v615_v31 = vld [vmem:[#allocation2 + $0x51] sm:$0xff] }
  0xe9   : > { %4663 = vrot.lane.b32.xlu0 %v5996_v24, %s5648_s11 }
  0xea   : > { %4668 = vrot.lane.b32.xlu1 %v5998_v26, %s5648_s11 }
  0xeb   : > { %v6254_v18 = vpop.permute.xlu0 %4453  ;;  %4673 = vrot.lane.b32.xlu2 %v6012_v46, %s5648_s11 }
  0xec   : > { %v6262_v10 = vpop.permute.xlu1 %4458 }
  0xed   : > { %v6260_v52 = vpop.permute.xlu2 %4508 }
  0xf1   : > { %4678 = vrot.lane.b32.xlu0 %v6018_v61, %s5648_s11 }
  0xf2   : > { %4683 = vrot.lane.b32.xlu1 %v6014_v55, %s5648_s11 }
  0xf3   : > { %v6266_v54 = vpop.permute.xlu0 %4468  ;;  %4688 = vrot.lane.b32.xlu2 %v6024_v14, %s5648_s11 }
  0xf4   : > { %8620 = vst [vmem:[#allocation52_spill] sm:$0xff] %v6266_v54  ;;  %v6274_v46 = vpop.permute.xlu1 %4473 }
  0xf5   : > { %v6272_v24 = vpop.permute.xlu2 %4523  ;;  %8622 = vst [vmem:[#allocation54_spill] sm:$0xff] %v6274_v46 }
  0xf6   : > { %8621 = vst [vmem:[#allocation53_spill] sm:$0xff] %v6272_v24  ;;  %v614_v24 = vld [vmem:[#allocation2 + $0x49] sm:$0xff] }
  0xf9   : > { %4693 = vrot.lane.b32.xlu0 %v6030_v36, %s5648_s11 }
  0xfa   : > { %4698 = vrot.lane.b32.xlu1 %v6026_v34, %s5648_s11 }
  0xfb   : > { %v6278_v26 = vpop.permute.xlu0 %4483  ;;  %4703 = vrot.lane.b32.xlu2 %v6036_v62, %s5648_s11  ;;  %v577_v62 = vld [vmem:[#allocation2 + $0x182] sm:$0xff] }
  0xfc   : > { %8623 = vst [vmem:[#allocation55_spill] sm:$0xff] %v6278_v26  ;;  %v6286_v14 = vpop.permute.xlu1 %4488 }
  0xfd   : > { %v6284_v61 = vpop.permute.xlu2 %4538  ;;  %8624 = vst [vmem:[#allocation56_spill] sm:$0xff] %v6286_v14  ;;  %v6302_v14 = vpack.i.bf16 %v578_v33, %v577_v62  ;;  %v611_v62 = vld [vmem:[#allocation2 + $0x1a0] sm:$0xff] }
 0x101   : > { %4708 = vrot.lane.b32.xlu0 %v6042_v21, %s5648_s11 }
 0x102   : > { %4713 = vrot.lane.b32.xlu1 %v6038_v6, %s5648_s11 }
 0x103   : > { %v6290_v55 = vpop.permute.xlu0 %4498  ;;  %4718 = vrot.lane.b32.xlu2 %v6052_v22, %s5648_s11 }
 0x104   : > { %v6298_v34 = vpop.permute.xlu1 %4503 }
 0x105   : > { %v6296_v36 = vpop.permute.xlu2 %4553 }
 0x106   : > { %8625 = vst [vmem:[#allocation57_spill] sm:$0xff] %v6296_v36  ;;  %v621_v36 = vld [vmem:[#allocation2 + $0x99] sm:$0xff] }
 0x109   : > { %4723 = vrot.lane.b32.xlu0 %v6058_v63, %s5648_s11 }
 0x10a   : > { %4728 = vrot.lane.b32.xlu1 %v6302_v14, %s5648_s11 }
 0x10b   : > { %v6304_v21 = vpop.permute.xlu0 %4513  ;;  %4733 = vrot.lane.b32.xlu2 %v6076_v45, %s5649_s12 }
 0x10c   : > { %8626 = vst [vmem:[#allocation58_spill] sm:$0xff] %v6304_v21  ;;  %v6312_v22 = vpop.permute.xlu1 %4518  ;;  %v665_v21 = vld [vmem:[#allocation2 + $0x12a] sm:$0xff] }
 0x10d   : > { %v6310_v6 = vpop.permute.xlu2 %4568  ;;  %8628 = vst [vmem:[#allocation60_spill] sm:$0xff] %v6312_v22  ;;  %v622_v22 = vld [vmem:[#allocation2 + $0xa9] sm:$0xff] }
 0x10e   : > { %8627 = vst [vmem:[#allocation59_spill] sm:$0xff] %v6310_v6 }
 0x111   : > { %4738 = vrot.lane.b32.xlu0 %v6091_v15, %s5649_s12 }
 0x112   : > { %4743 = vrot.lane.b32.xlu1 %v6087_v51, %s5649_s12 }
 0x113   : > { %v6316_v26 = vpop.permute.xlu0 %4528  ;;  %4748 = vrot.lane.b32.xlu2 %v6102_v9, %s5649_s12 }
 0x114   : > { %8629 = vst [vmem:[#allocation61_spill] sm:$0xff] %v6316_v26  ;;  %v6324_v45 = vpop.permute.xlu1 %4533 }
 0x115   : > { %v6322_v63 = vpop.permute.xlu2 %4583 }
 0x119   : > { %4753 = vrot.lane.b32.xlu0 %v6108_v50, %s5649_s12 }
 0x11a   : > { %4758 = vrot.lane.b32.xlu1 %v6104_v17, %s5649_s12 }
 0x11b   : > { %v6328_v33 = vpop.permute.xlu0 %4543  ;;  %4763 = vrot.lane.b32.xlu2 %v6122_v56, %s5649_s12 }
 0x11c   : > { %v6336_v9 = vpop.permute.xlu1 %4548 }
 0x11d   : > { %v6334_v15 = vpop.permute.xlu2 %4598  ;;  %8631 = vst [vmem:[#allocation63_spill] sm:$0xff] %v6336_v9  ;;  %v659_v9 = vld [vmem:[#allocation2 + $0xe2] sm:$0xff] }
 0x11e   : > { %8630 = vst [vmem:[#allocation62_spill] sm:$0xff] %v6334_v15  ;;  %v619_v15 = vld [vmem:[#allocation2 + $0x81] sm:$0xff] }
 0x121   : > { %4768 = vrot.lane.b32.xlu0 %v6134_v37, %s5649_s12  ;;  %v610_v37 = vld [vmem:[#allocation2 + $0x198] sm:$0xff] }
 0x122   : > { %4773 = vrot.lane.b32.xlu1 %v6128_v29, %s5649_s12  ;;  %v4807_v6 = vpack.i.bf16 %v611_v62, %v610_v37 }
 0x123   : > { %v6340_v51 = vpop.permute.xlu0 %4558  ;;  %4778 = vrot.lane.b32.xlu2 %v6142_v13, %s5649_s12 }
 0x124   : > { %8632 = vst [vmem:[#allocation64_spill] sm:$0xff] %v6340_v51  ;;  %v6348_v56 = vpop.permute.xlu1 %4563  ;;  %v617_v51 = vld [vmem:[#allocation2 + $0x69] sm:$0xff] }
 0x125   : > { %v6346_v50 = vpop.permute.xlu2 %4613  ;;  %8633 = vst [vmem:[#allocation65_spill] sm:$0xff] %v6348_v56  ;;  %v612_v56 = vld [vmem:[#allocation2 + $0x31] sm:$0xff] }
 0x129   : > { %4783 = vrot.lane.b32.xlu0 %v6150_v5, %s5649_s12  ;;  %v613_v5 = vld [vmem:[#allocation2 + $0x39] sm:$0xff] }
 0x12a   : > { %4788 = vrot.lane.b32.xlu1 %v6144_v7, %s5649_s12  ;;  %v4812_v7 = vpack.i.bf16 %v613_v5, %v612_v56  ;;  %v4827_v56 = vpack.i.bf16 %v619_v15, %v618_v43  ;;  %v620_v5 = vld [vmem:[#allocation2 + $0x91] sm:$0xff]  ;;  %v626_v15 = vld [vmem:[#allocation2 + $0xd9] sm:$0xff] }
 0x12b   : > { %v6352_v17 = vpop.permute.xlu0 %4573  ;;  %4793 = vrot.lane.b32.xlu2 %v6158_v4, %s5649_s12  ;;  %v616_v4 = vld [vmem:[#allocation2 + $0x61] sm:$0xff] }
 0x12c   : > { %v6360_v29 = vpop.permute.xlu1 %4578  ;;  %v4822_v62 = vpack.i.bf16 %v617_v51, %v616_v4 }
 0x12d   : > { %v6358_v13 = vpop.permute.xlu2 %4628 }
 0x12e   : > { %8634 = vst [vmem:[#allocation66_spill] sm:$0xff] %v6358_v13 }
 0x131   : > { %4798 = vrot.lane.b32.xlu0 %v6168_v25, %s5649_s12  ;;  %v4817_v25 = vpack.i.bf16 %v615_v31, %v614_v24  ;;  %v4832_v31 = vpack.i.bf16 %v621_v36, %v620_v5  ;;  %v624_v24 = vld [vmem:[#allocation2 + $0xc1] sm:$0xff]  ;;  %v630_v36 = vld [vmem:[#allocation2 + $0x109] sm:$0xff] }
 0x132   : > { %4803 = vrot.lane.b32.xlu1 %v6162_v40, %s5649_s12  ;;  %v623_v40 = vld [vmem:[#allocation2 + $0xb1] sm:$0xff] }
 0x133   : > { %v6364_v26 = vpop.permute.xlu0 %4588  ;;  %4808 = vrot.lane.b32.xlu2 %v4807_v6, %s5649_s12  ;;  %v4837_v51 = vpack.i.bf16 %v623_v40, %v622_v22 }
 0x134   : > { %v6369_v16 = vpop.permute.xlu1 %4593 }
 0x135   : > { %8635 = vst [vmem:[#allocation67_spill] sm:$0xff] %v6369_v16  ;;  %v6371_v37 = vpop.permute.xlu2 %4643  ;;  %v651_v16 = vld [vmem:[#allocation2 + $0x82] sm:$0xff] }
 0x136   : > { %8636 = vst [vmem:[#allocation68_spill] sm:$0xff] %v6371_v37 }
 0x139   : > { %4813 = vrot.lane.b32.xlu0 %v4812_v7, %s5650_s13  ;;  %v625_v7 = vld [vmem:[#allocation2 + $0xc9] sm:$0xff] }
 0x13a   : > { %4818 = vrot.lane.b32.xlu1 %v4817_v25, %s5650_s13  ;;  %v4842_v43 = vpack.i.bf16 %v625_v7, %v624_v24  ;;  %v627_v25 = vld [vmem:[#allocation2 + $0xe1] sm:$0xff]  ;;  %v633_v7 = vld [vmem:[#allocation2 + $0x129] sm:$0xff] }
 0x13b   : > { %v6374_v6 = vpop.permute.xlu0 %4603  ;;  %4823 = vrot.lane.b32.xlu2 %v4822_v62, %s5650_s13  ;;  %v628_v62 = vld [vmem:[#allocation2 + $0xf1] sm:$0xff]  ;;  %v4847_v40 = vpack.i.bf16 %v627_v25, %v626_v15  ;;  %v632_v24 = vld [vmem:[#allocation2 + $0x121] sm:$0xff]  ;;  %v637_v15 = vld [vmem:[#allocation2 + $0x159] sm:$0xff] }
 0x13c   : > { %8637 = vst [vmem:[#allocation69_spill] sm:$0xff] %v6374_v6  ;;  %v6378_v46 = vpop.permute.xlu1 %4608  ;;  %v629_v6 = vld [vmem:[#allocation2 + $0xf9] sm:$0xff] }
 0x13d   : > { %8638 = vst [vmem:[#allocation70_spill] sm:$0xff] %v6378_v46  ;;  %v6380_v4 = vpop.permute.xlu2 %4658  ;;  %v4852_v22 = vpack.i.bf16 %v629_v6, %v628_v62  ;;  %v4862_v62 = vpack.i.bf16 %v633_v7, %v632_v24  ;;  %v646_v7 = vld [vmem:[#allocation2 + $0x4a] sm:$0xff] }
 0x141   : > { %4828 = vrot.lane.b32.xlu0 %v4827_v56, %s5650_s13  ;;  %v631_v56 = vld [vmem:[#allocation2 + $0x111] sm:$0xff] }
 0x142   : > { %4833 = vrot.lane.b32.xlu1 %v4832_v31, %s5650_s13  ;;  %v4857_v31 = vpack.i.bf16 %v631_v56, %v630_v36  ;;  %v638_v36 = vld [vmem:[#allocation2 + $0x169] sm:$0xff]  ;;  %v639_v56 = vld [vmem:[#allocation2 + $0x171] sm:$0xff] }
 0x143   : > { %v6383_v37 = vpop.permute.xlu0 %4618  ;;  %4838 = vrot.lane.b32.xlu2 %v4837_v51, %s5650_s13  ;;  %v634_v51 = vld [vmem:[#allocation2 + $0x139] sm:$0xff] }
 0x144   : > { %v6387_v46 = vpop.permute.xlu1 %4623  ;;  %v4867_v6 = vpack.i.bf16 %v635_v23, %v634_v51  ;;  %v4877_v23 = vpack.i.bf16 %v639_v56, %v638_v36  ;;  %v642_v51 = vld [vmem:[#allocation2 + $0x199] sm:$0xff]  ;;  %v648_v56 = vld [vmem:[#allocation2 + $0x62] sm:$0xff] }
 0x145   : > { %8639 = vst [vmem:[#allocation71_spill] sm:$0xff] %v6387_v46  ;;  %v6390_v5 = vpop.permute.xlu2 %4673  ;;  %v4495_v46 = vunpack.i.l.bf16 %v6248_v41 }
 0x146   : > { %8640 = vst [vmem:[#allocation72_spill] sm:$0xff] %v6390_v5 }
 0x149   : > { %4843 = vrot.lane.b32.xlu0 %v4842_v43, %s5650_s13  ;;  %v636_v43 = vld [vmem:[#allocation2 + $0x151] sm:$0xff] }
 0x14a   : > { %4848 = vrot.lane.b32.xlu1 %v4847_v40, %s5650_s13  ;;  %v4872_v40 = vpack.i.bf16 %v637_v15, %v636_v43  ;;  %v644_v43 = vld [vmem:[#allocation2 + $0x32] sm:$0xff]  ;;  %v645_v15 = vld [vmem:[#allocation2 + $0x3a] sm:$0xff] }
 0x14b   : > { %v6392_v39 = vpop.permute.xlu0 %4633  ;;  %4853 = vrot.lane.b32.xlu2 %v4852_v22, %s5650_s13  ;;  %v4892_v36 = vpack.i.bf16 %v645_v15, %v644_v43  ;;  %v654_v43 = vld [vmem:[#allocation2 + $0xaa] sm:$0xff]  ;;  %v655_v15 = vld [vmem:[#allocation2 + $0xb2] sm:$0xff] }
 0x14c   : > { %8641 = vst [vmem:[#allocation73_spill] sm:$0xff] %v6392_v39  ;;  %v6396_v59 = vpop.permute.xlu1 %4638 }
 0x14d   : > { %8642 = vst [vmem:[#allocation74_spill] sm:$0xff] %v6396_v59  ;;  %v6402_v22 = vpop.permute.xlu2 %4688  ;;  %v649_v59 = vld [vmem:[#allocation2 + $0x6a] sm:$0xff] }
 0x14e   : > { %8644 = vst [vmem:[#allocation76_spill] sm:$0xff] %v6402_v22 }
 0x151   : > { %4858 = vrot.lane.b32.xlu0 %v4857_v31, %s5650_s13  ;;  %v643_v31 = vld [vmem:[#allocation2 + $0x1a1] sm:$0xff] }
 0x152   : > { %4863 = vrot.lane.b32.xlu1 %v4862_v62, %s5650_s13  ;;  %v4887_v62 = vpack.i.bf16 %v643_v31, %v642_v51  ;;  %v4902_v51 = vpack.i.bf16 %v649_v59, %v648_v56  ;;  %v650_v31 = vld [vmem:[#allocation2 + $0x7a] sm:$0xff]  ;;  %v4917_v59 = vpack.i.bf16 %v655_v15, %v654_v43  ;;  %v657_v56 = vld [vmem:[#allocation2 + $0xca] sm:$0xff]  ;;  %v663_v15 = vld [vmem:[#allocation2 + $0x112] sm:$0xff] }
 0x153   : > { %v6399_v25 = vpop.permute.xlu0 %4648  ;;  %4868 = vrot.lane.b32.xlu2 %v4867_v6, %s5650_s13  ;;  %v647_v6 = vld [vmem:[#allocation2 + $0x52] sm:$0xff]  ;;  %v662_v43 = vld [vmem:[#allocation2 + $0x10a] sm:$0xff] }
 0x154   : > { %8643 = vst [vmem:[#allocation75_spill] sm:$0xff] %v6399_v25  ;;  %v6405_v39 = vpop.permute.xlu1 %4653 }
 0x155   : > { %v6413_v25 = vpop.permute.xlu2 %4703 }
 0x156   : > { %8645 = vst [vmem:[#allocation77_spill] sm:$0xff] %v6413_v25 }
 0x159   : > { %4873 = vrot.lane.b32.xlu0 %v4872_v40, %s5650_s13  ;;  %v4897_v40 = vpack.i.bf16 %v647_v6, %v646_v7 }
 0x15a   : > { %4878 = vrot.lane.b32.xlu1 %v4877_v23, %s5650_s13  ;;  %v653_v23 = vld [vmem:[#allocation2 + $0x9a] sm:$0xff] }
 0x15b   : > { %v6408_v24 = vpop.permute.xlu0 %4663  ;;  %4883 = vrot.lane.b32.xlu2 %v6236_v8, %s5650_s13  ;;  %v652_v8 = vld [vmem:[#allocation2 + $0x92] sm:$0xff] }
 0x15c   : > { %v6415_v22 = vpop.permute.xlu1 %4668  ;;  %v4912_v7 = vpack.i.bf16 %v653_v23, %v652_v8 }
 0x15d   : > { %8646 = vst [vmem:[#allocation78_spill] sm:$0xff] %v6415_v22  ;;  %v6424_v6 = vpop.permute.xlu2 %4718 }
 0x15e   : > { %8649 = vst [vmem:[#allocation81_spill] sm:$0xff] %v6424_v6 }
 0x161   : > { %4888 = vrot.lane.b32.xlu0 %v4887_v62, %s5650_s13  ;;  %v4907_v62 = vpack.i.bf16 %v651_v16, %v650_v31  ;;  %v660_v16 = vld [vmem:[#allocation2 + $0xf2] sm:$0xff] }
 0x162   : > { %4893 = vrot.lane.b32.xlu1 %v4892_v36, %s5651_s14  ;;  %v656_v36 = vld [vmem:[#allocation2 + $0xc2] sm:$0xff] }
 0x163   : > { %v6418_v5 = vpop.permute.xlu0 %4678  ;;  %4898 = vrot.lane.b32.xlu2 %v4897_v40, %s5651_s14  ;;  %v658_v40 = vld [vmem:[#allocation2 + $0xda] sm:$0xff]  ;;  %v4922_v23 = vpack.i.bf16 %v657_v56, %v656_v36  ;;  %v667_v36 = vld [vmem:[#allocation2 + $0x142] sm:$0xff] }
 0x164   : > { %8647 = vst [vmem:[#allocation79_spill] sm:$0xff] %v6418_v5  ;;  %v6422_v13 = vpop.permute.xlu1 %4683  ;;  %v4927_v8 = vpack.i.bf16 %v659_v9, %v658_v40  ;;  %v4937_v40 = vpack.i.bf16 %v663_v15, %v662_v43  ;;  %v674_v43 = vld [vmem:[#allocation2 + $0x19a] sm:$0xff]  ;;  %v675_v15 = vld [vmem:[#allocation2 + $0x1a2] sm:$0xff] }
 0x165   : > { %8648 = vst [vmem:[#allocation80_spill] sm:$0xff] %v6422_v13  ;;  %v6434_v31 = vpop.permute.xlu2 %4733 }
 0x169   : > { %4903 = vrot.lane.b32.xlu0 %v4902_v51, %s5651_s14  ;;  %v661_v51 = vld [vmem:[#allocation2 + $0xfa] sm:$0xff] }
 0x16a   : > { %4908 = vrot.lane.b32.xlu1 %v4907_v62, %s5651_s14  ;;  %v4932_v62 = vpack.i.bf16 %v661_v51, %v660_v16  ;;  %v668_v16 = vld [vmem:[#allocation2 + $0x152] sm:$0xff]  ;;  %v669_v51 = vld [vmem:[#allocation2 + $0x15a] sm:$0xff] }
 0x16b   : > { %v6427_v5 = vpop.permute.xlu0 %4693  ;;  %4913 = vrot.lane.b32.xlu2 %v4912_v7, %s5651_s14  ;;  %v664_v7 = vld [vmem:[#allocation2 + $0x122] sm:$0xff] }
 0x16c   : > { %v6431_v13 = vpop.permute.xlu1 %4698  ;;  %v4942_v9 = vpack.i.bf16 %v665_v21, %v664_v7  ;;  %v4952_v7 = vpack.i.bf16 %v669_v51, %v668_v16 }
 0x16d   : > { %v6446_v54 = vpop.permute.xlu2 %4748 }
 0x16e   : > { %8653 = vst [vmem:[#allocation85_spill] sm:$0xff] %v6446_v54  ;;  %v4496_v54 = vunpack.i.h.bf16 %v6248_v41  ;;  %v4656_v41 = vunpack.i.h.bf16 %v6405_v39 }
 0x171   : > { %4918 = vrot.lane.b32.xlu0 %v4917_v59, %s5651_s14  ;;  %v666_v59 = vld [vmem:[#allocation2 + $0x13a] sm:$0xff] }
 0x172   : > { %4923 = vrot.lane.b32.xlu1 %v4922_v23, %s5651_s14  ;;  %v4947_v23 = vpack.i.bf16 %v667_v36, %v666_v59  ;;  %v4967_v59 = vpack.i.bf16 %v675_v15, %v674_v43 }
 0x173   : > { %v6436_v6 = vpop.permute.xlu0 %4708  ;;  %4928 = vrot.lane.b32.xlu2 %v4927_v8, %s5651_s14  ;;  %v670_v8 = vld [vmem:[#allocation2 + $0x16a] sm:$0xff] }
 0x174   : > { %8650 = vst [vmem:[#allocation82_spill] sm:$0xff] %v6436_v6  ;;  %v6440_v30 = vpop.permute.xlu1 %4713  ;;  %v671_v6 = vld [vmem:[#allocation2 + $0x172] sm:$0xff] }
 0x175   : > { %8651 = vst [vmem:[#allocation83_spill] sm:$0xff] %v6440_v30  ;;  %v4957_v21 = vpack.i.bf16 %v671_v6, %v670_v8 }
 0x179   : > { %4933 = vrot.lane.b32.xlu0 %v4932_v62, %s5651_s14 }
 0x17a   : > { %4938 = vrot.lane.b32.xlu1 %v4937_v40, %s5651_s14 }
 0x17b   : > { %v6443_v56 = vpop.permute.xlu0 %4723  ;;  %4943 = vrot.lane.b32.xlu2 %v4942_v9, %s5651_s14  ;;  %v6456_v9 = vpop.permute.xlu2 %4763 }
 0x17c   : > { %8652 = vst [vmem:[#allocation84_spill] sm:$0xff] %v6443_v56  ;;  %v6449_v30 = vpop.permute.xlu1 %4728 }
 0x17d   : > { %8654 = vst [vmem:[#allocation86_spill] sm:$0xff] %v6449_v30  ;;  %v1983_v30 = vld [vmem:[%s8438_s1 + $0x10] sm:$0x3] }
 0x17e   : > { %8655 = vst [vmem:[#allocation87_spill] sm:$0xff] %v6456_v9  ;;  %v1993_v9 = vunpack.c.l.b16 %v1983_v30  ;;  %v4305_v30 = vld [vmem:[%s8438_s1] sm:$0xff] }
 0x181   : > { %4948 = vrot.lane.b32.xlu0 %v4947_v23, %s5651_s14 }
 0x182   : > { %4953 = vrot.lane.b32.xlu1 %v4952_v7, %s5651_s14 }
 0x183   : > { %v6452_v62 = vpop.permute.xlu0 %4738  ;;  %4958 = vrot.lane.b32.xlu2 %v4957_v21, %s5651_s14  ;;  %v6467_v8 = vpop.permute.xlu2 %4778 }
 0x184   : > { %v6458_v40 = vpop.permute.xlu1 %4743 }
 0x189   : > { %4963 = vrot.lane.b32.xlu0 %v6302_v14, %s5651_s14 }
 0x18a   : > { %4968 = vrot.lane.b32.xlu1 %v4967_v59, %s5651_s14 }
 0x18b   : > { %v6462_v6 = vpop.permute.xlu0 %4753  ;;  %v6473_v51 = vpop.permute.xlu2 %4793 }
 0x18c   : > { %8656 = vst [vmem:[#allocation88_spill] sm:$0xff] %v6462_v6  ;;  %v6465_v36 = vpop.permute.xlu1 %4758 }
 0x18d   : > { %8657 = vst [vmem:[#allocation89_spill] sm:$0xff] %v6465_v36 }
 0x18e   : > { %8659 = vst [vmem:[#allocation91_spill] sm:$0xff] %v6473_v51  ;;  %v1996_v51 = vpack.c.b16 %v1993_v9, %v1993_v9 }
 0x193   : > { %v6469_v23 = vpop.permute.xlu0 %4768  ;;  %v6481_v43 = vpop.permute.xlu2 %4808 }
 0x194   : > { %8658 = vst [vmem:[#allocation90_spill] sm:$0xff] %v6469_v23  ;;  %v6471_v16 = vpop.permute.xlu1 %4773 }
 0x195   : > { %8663 = vst [vmem:[#allocation95_spill] sm:$0xff] %v6481_v43  ;;  %v4306_v43 = vld [vmem:[%s8438_s1 + $0x8] sm:$0xff] }
 0x19b   : > { %v6475_v21 = vpop.permute.xlu0 %4783  ;;  %v6490_v56 = vpop.permute.xlu2 %4823 }
 0x19c   : > { %8660 = vst [vmem:[#allocation92_spill] sm:$0xff] %v6475_v21  ;;  %v6477_v7 = vpop.permute.xlu1 %4788  ;;  %v4336_v21 = vunpack.i.h.bf16 %v6146_v32 }
 0x19d   : > { %8661 = vst [vmem:[#allocation93_spill] sm:$0xff] %v6477_v7 }
 0x1a3   : > { %v6479_v14 = vpop.permute.xlu0 %4798  ;;  %v6502_v7 = vpop.permute.xlu2 %4838 }
 0x1a4   : > { %8662 = vst [vmem:[#allocation94_spill] sm:$0xff] %v6479_v14  ;;  %v6483_v15 = vpop.permute.xlu1 %4803  ;;  %v2050_v14 = vsel %vm2048_vm3, %v1996_v51, 0 }
 0x1a5   : > { %8664 = vst [vmem:[#allocation96_spill] sm:$0xff] %v6483_v15  ;;  %2057 = vmatpush.bf16.msra.mxu0 %v2050_v14  ;;  %4309 = vmatpush.bf16.msra.mxu2 %v2050_v14 }
 0x1a6   : > { %8667 = vst [vmem:[#allocation99_spill] sm:$0xff] %v6502_v7  ;;  %v4355_v7 = vunpack.i.l.bf16 %v6099_v49 }
 0x1a9   : > { %2058 = vmatpush.bf16.msra.mxu0 %v4306_v43  ;;  %4310 = vmatpush.bf16.msra.mxu2 %v4306_v43  ;;  %v4356_v43 = vunpack.i.h.bf16 %v6099_v49  ;;  %v387_v49 = vld [vmem:[#allocation2] sm:$0xff] }
 0x1ab   : > { %v6485_v59 = vpop.permute.xlu0 %4813  ;;  %v6511_v14 = vpop.permute.xlu2 %4853 }
 0x1ac   : > { %v6492_v23 = vpop.permute.xlu1 %4818 }
 0x1ad   : > { %2059 = vmatpush.bf16.msra.mxu0 %v4305_v30  ;;  %4311 = vmatpush.bf16.msra.mxu2 %v4305_v30  ;;  %v4335_v30 = vunpack.i.l.bf16 %v6146_v32 }
 0x1b3   : > { %v6494_v36 = vpop.permute.xlu0 %4828  ;;  %v6522_v25 = vpop.permute.xlu2 %4868 }
 0x1b4   : > { %8665 = vst [vmem:[#allocation97_spill] sm:$0xff] %v6494_v36  ;;  %v6500_v15 = vpop.permute.xlu1 %4833  ;;  %v6528_v36 = vsel %vm280_vm0, %v6065_v58, %v4355_v7  ;;  %v4376_v58 = vunpack.i.h.bf16 %v6140_v3 }
 0x1b5   : > { %8666 = vst [vmem:[#allocation98_spill] sm:$0xff] %v6500_v15 }
 0x1b6   : > { %8672 = vst [vmem:[#allocation104_spill] sm:$0xff] %v6522_v25  ;;  %v4361_v25 = vunpack.i.h.bf16 %v6118_v48  ;;  %v4735_v48 = vunpack.i.l.bf16 %v6434_v31 }
 0x1b7   : > { %8673 = vst [vmem:[#allocation105_spill] sm:$0xff] %v6528_v36  ;;  %v4655_v36 = vunpack.i.l.bf16 %v6405_v39  ;;  %v4346_v39 = vunpack.i.h.bf16 %v6160_v27 }
 0x1bb   : > { %v6507_v9 = vpop.permute.xlu0 %4843 }
 0x1bc   : > { %8668 = vst [vmem:[#allocation100_spill] sm:$0xff] %v6507_v9  ;;  %v6509_v51 = vpop.permute.xlu1 %4848  ;;  %v388_v9 = vld [vmem:[#allocation2 + $0x8] sm:$0xff] }
 0x1bd   : > { %8669 = vst [vmem:[#allocation101_spill] sm:$0xff] %v6509_v51  ;;  %v4416_v51 = vunpack.i.h.bf16 %v6224_v60  ;;  %v1701_v7 = vsel %vm280_vm0, %v388_v9, %v4336_v21 }
 0x1c3   : > { %v6513_v6 = vpop.permute.xlu0 %4858 }
 0x1c4   : > { %v6515_v28 = vpop.permute.xlu1 %4863 }
 0x1c5   : > { %8670 = vst [vmem:[#allocation102_spill] sm:$0xff] %v6515_v28  ;;  %v6532_v28 = vsel %vm280_vm0, %v6067_v20, %v4356_v43  ;;  %v4575_v20 = vunpack.i.l.bf16 %v6352_v17  ;;  %v1734_v43 = vsel %vm1732_vm5, %v1701_v7, %v4416_v51  ;;  %v4736_v51 = vunpack.i.h.bf16 %v6434_v31 }
 0x1c6   : > { %8674 = vst [vmem:[#allocation106_spill] sm:$0xff] %v6532_v28  ;;  %v1767_v28 = vsel %vm1765_vm4, %v1734_v43, %v4496_v54  ;;  %v4375_v54 = vunpack.i.l.bf16 %v6140_v3 }
 0x1cb   : > { %v6519_v15 = vpop.permute.xlu0 %4873 }
 0x1cc   : > { %8671 = vst [vmem:[#allocation103_spill] sm:$0xff] %v6519_v15  ;;  %v4415_v15 = vunpack.i.l.bf16 %v6224_v60  ;;  %v6536_v22 = vpop.permute.xlu1 %4878  ;;  %v1700_v60 = vsel %vm280_vm0, %v387_v49, %v4335_v30  ;;  %v4816_v30 = vunpack.i.h.bf16 %v6485_v59 }
 0x1cd   : > { %8675 = vst [vmem:[#allocation107_spill] sm:$0xff] %v6536_v22  ;;  %v4576_v22 = vunpack.i.h.bf16 %v6352_v17 }
 0x1ce   : > { %v1733_v32 = vsel %vm1732_vm5, %v1700_v60, %v4415_v15  ;;  %v4815_v15 = vunpack.i.l.bf16 %v6485_v59  ;;  %v6567_v60 = vpop.permute.xlu2 %4883 }
 0x1cf   : > { %v1766_v9 = vsel %vm1765_vm4, %v1733_v32, %v4495_v46  ;;  %v1800_v49 = vsel %vm1798_vm6, %v1767_v28, %v4576_v22  ;;  %v4345_v46 = vunpack.i.l.bf16 %v6160_v27  ;;  %v4341_v32 = vunpack.i.h.bf16 %v6166_v44 }
 0x1d0   : > { %v1799_v17 = vsel %vm1798_vm6, %v1766_v9, %v4575_v20  ;;  %v1833_v31 = vsel %vm1831_vm8, %v1800_v49, %v4656_v41  ;;  %v4340_v28 = vunpack.i.l.bf16 %v6166_v44  ;;  %v4420_v44 = vunpack.i.l.bf16 %v6186_v53 }
 0x1d1   : > { %v1832_v7 = vsel %vm1831_vm8, %v1799_v17, %v4655_v36  ;;  %v1866_v59 = vsel %vm1864_vm7, %v1833_v31, %v4736_v51  ;;  %v6575_v36 = vsel %vm280_vm0, %v6093_v11, %v4361_v25  ;;  %v1717_v51 = vsel %vm280_vm0, %v6112_v1, %v4376_v58  ;;  %v8676_v1 = vld [vmem:[#allocation35_spill] sm:$0xff] }
 0x1d2   : > { %v1865_v20 = vsel %vm1864_vm7, %v1832_v7, %v4735_v48  ;;  %v1899_v27 = vsel %vm1897_vm9, %v1866_v59, %v4816_v30  ;;  %v4421_v17 = vunpack.i.h.bf16 %v6186_v53  ;;  %v1716_v49 = vsel %vm280_vm0, %v6110_v47, %v4375_v54  ;;  %v8677_v53 = vld [vmem:[#allocation33_spill] sm:$0xff] }
 0x1d3   : > { %v6552_v21 = vpop.permute.xlu0 %4888  ;;  %v1898_v22 = vsel %vm1897_vm9, %v1865_v20, %v4815_v15  ;;  %v4391_v11 = vunpack.i.h.bf16 %v6156_v12  ;;  %v4381_v25 = vunpack.i.h.bf16 %v6192_v42  ;;  %v4380_v7 = vunpack.i.l.bf16 %v6192_v42 }
 0x1d4   : > { %v4894_v43 = vpop.permute.xlu1 %4893  ;;  %v6592_v31 = vsel %vm280_vm0, %v6060_v0, %v4345_v46  ;;  %v1705_v58 = vsel %vm280_vm0, %v8676_v1, %v4346_v39  ;;  %v1702_v20 = vsel %vm280_vm0, %v8677_v53, %v4340_v28  ;;  %v4351_v47 = vunpack.i.h.bf16 %v6176_v2  ;;  %v8679_v28 = vld [vmem:[#allocation40_spill] sm:$0xff] }
 0x1d5   : > { %v4896_v3 = vunpack.i.h.bf16 %v4894_v43  ;;  %v4895_v9 = vunpack.i.l.bf16 %v4894_v43  ;;  %v8678_v43 = vld [vmem:[#allocation34_spill] sm:$0xff]  ;;  %v4350_v54 = vunpack.i.l.bf16 %v6176_v2  ;;  %v4456_v42 = vunpack.i.h.bf16 %v6254_v18 }
 0x1d6   : > { %v1703_v59 = vsel %vm280_vm0, %v8678_v43, %v4341_v32  ;;  %v4455_v0 = vunpack.i.l.bf16 %v6254_v18  ;;  %v1735_v46 = vsel %vm1732_vm5, %v1702_v20, %v4420_v44  ;;  %v6611_v32 = vsel %vm280_vm0, %v8679_v28, %v4381_v25 }
 0x1d7   : > { %v1931_v48 = vsel %vm1930_vm10, %v1898_v22, %v4895_v9  ;;  %v1932_v41 = vsel %vm1930_vm10, %v1899_v27, %v4896_v3  ;;  %v1736_v39 = vsel %vm1732_vm5, %v1703_v59, %v4421_v17  ;;  %v4501_v3 = vunpack.i.h.bf16 %v6290_v55  ;;  %v8680_v22 = vld [vmem:[#allocation39_spill] sm:$0xff] }
 0x1d8   : > { %v1963_v30 = vpack.c.bf16 %v1932_v41, %v1931_v48  ;;  %v4500_v9 = vunpack.i.l.bf16 %v6290_v55  ;;  %v6615_v27 = vsel %vm280_vm0, %v8680_v22, %v4380_v7  ;;  %v4581_v48 = vunpack.i.h.bf16 %v6360_v29 }
 0x1d9   : > { %v4580_v18 = vunpack.i.l.bf16 %v6360_v29  ;;  %v4426_v41 = vunpack.i.h.bf16 %v6228_v35  ;;  %v4425_v17 = vunpack.i.l.bf16 %v6228_v35  ;;  %v4661_v44 = vunpack.i.h.bf16 %v6380_v4 }
 0x1da   : > { %4261 = vmatmul.msk.bf16.vlgmr.msra.gmra.mxu0 %vm1999_vm11, %v1963_v30  ;;  %v4660_v55 = vunpack.i.l.bf16 %v6380_v4  ;;  %v4899_v30 = vpop.permute.xlu2 %4898  ;;  %v1750_v25 = vsel %vm1732_vm5, %v1717_v51, %v4456_v42  ;;  %v1749_v7 = vsel %vm1732_vm5, %v1716_v49, %v4455_v0  ;;  %v4741_v53 = vunpack.i.h.bf16 %v6452_v62 }
 0x1db   : > { %v6583_v15 = vpop.permute.xlu0 %4903  ;;  %v4740_v20 = vunpack.i.l.bf16 %v6452_v62  ;;  %v1768_v29 = vsel %vm1765_vm4, %v1735_v46, %v4500_v9  ;;  %v1769_v43 = vsel %vm1765_vm4, %v1736_v39, %v4501_v3  ;;  %v4821_v35 = vunpack.i.h.bf16 %v6492_v23 }
 0x1dc   : > { %v6623_v1 = vpop.permute.xlu1 %4908  ;;  %v4820_v59 = vunpack.i.l.bf16 %v6492_v23  ;;  %v1801_v28 = vsel %vm1798_vm6, %v1768_v29, %v4580_v18  ;;  %v1802_v51 = vsel %vm1798_vm6, %v1769_v43, %v4581_v48  ;;  %v4901_v42 = vunpack.i.h.bf16 %v4899_v30 }
 0x1dd   : > { %v4900_v49 = vunpack.i.l.bf16 %v4899_v30  ;;  %v4536_v0 = vunpack.i.h.bf16 %v6324_v45  ;;  %v4535_v62 = vunpack.i.l.bf16 %v6324_v45  ;;  %v1834_v46 = vsel %vm1831_vm8, %v1801_v28, %v4660_v55 }
 0x1de   : > { %v1835_v39 = vsel %vm1831_vm8, %v1802_v51, %v4661_v44  ;;  %v4616_v3 = vunpack.i.h.bf16 %v6346_v50  ;;  %v4615_v23 = vunpack.i.l.bf16 %v6346_v50  ;;  %v1867_v9 = vsel %vm1864_vm7, %v1834_v46, %v4740_v20 }
 0x1df   : > { %v1868_v22 = vsel %vm1864_vm7, %v1835_v39, %v4741_v53  ;;  %v4696_v48 = vunpack.i.h.bf16 %v6427_v5  ;;  %v4695_v18 = vunpack.i.l.bf16 %v6427_v5  ;;  %v1900_v30 = vsel %vm1897_vm9, %v1867_v9, %v4820_v59 }
 0x1e0   : > { %v1901_v45 = vsel %vm1897_vm9, %v1868_v22, %v4821_v35  ;;  %v4776_v55 = vunpack.i.h.bf16 %v6471_v16  ;;  %v4775_v44 = vunpack.i.l.bf16 %v6471_v16  ;;  %v1933_v29 = vsel %vm1930_vm10, %v1900_v30, %v4900_v49 }
 0x1e1   : > { %v1934_v50 = vsel %vm1930_vm10, %v1901_v45, %v4901_v42  ;;  %v1782_v20 = vsel %vm1765_vm4, %v1749_v7, %v4535_v62  ;;  %v1783_v53 = vsel %vm1765_vm4, %v1750_v25, %v4536_v0  ;;  %v4856_v43 = vunpack.i.h.bf16 %v6511_v14 }
 0x1e2   : > { %v4855_v5 = vunpack.i.l.bf16 %v6511_v14  ;;  %v1738_v59 = vsel %vm1732_vm5, %v1705_v58, %v4426_v41  ;;  %v4461_v35 = vunpack.i.h.bf16 %v6262_v10  ;;  %v1815_v28 = vsel %vm1798_vm6, %v1782_v20, %v4615_v23 }
 0x1e3   : > { %v6633_v4 = vpop.permute.xlu0 %4918  ;;  %v1816_v16 = vsel %vm1798_vm6, %v1783_v53, %v4616_v3  ;;  %v4460_v51 = vunpack.i.l.bf16 %v6262_v10  ;;  %v1848_v42 = vsel %vm1831_vm8, %v1815_v28, %v4695_v18  ;;  %v1964_v0 = vpack.c.bf16 %v1934_v50, %v1933_v29 }
 0x1e4   : > { %v1849_v7 = vsel %vm1831_vm8, %v1816_v16, %v4696_v48  ;;  %v6664_v49 = vpop.permute.xlu1 %4923  ;;  %v1881_v14 = vsel %vm1864_vm7, %v1848_v42, %v4775_v44  ;;  %v4541_v46 = vunpack.i.h.bf16 %v6284_v61  ;;  %v4540_v39 = vunpack.i.l.bf16 %v6284_v61 }
 0x1e5   : > { %v1882_v58 = vsel %vm1864_vm7, %v1849_v7, %v4776_v55  ;;  %v1914_v10 = vsel %vm1897_vm9, %v1881_v14, %v4855_v5  ;;  %v4506_v23 = vunpack.i.h.bf16 %v6298_v34  ;;  %v4505_v9 = vunpack.i.l.bf16 %v6298_v34 }
 0x1e6   : > { %v1915_v3 = vsel %vm1897_vm9, %v1882_v58, %v4856_v43  ;;  %v1737_v18 = vsel %vm1732_vm5, %v6592_v31, %v4425_v17  ;;  %v4586_v30 = vunpack.i.h.bf16 %v6322_v63  ;;  %v4585_v61 = vunpack.i.l.bf16 %v6322_v63  ;;  %v6691_v63 = vpop.permute.xlu2 %4913 }
 0x1e7   : > { %v1751_v55 = vsel %vm1732_vm5, %v6615_v27, %v4460_v51  ;;  %v1752_v44 = vsel %vm1732_vm5, %v6611_v32, %v4461_v35  ;;  %v4621_v34 = vunpack.i.h.bf16 %v6383_v37  ;;  %v4620_v29 = vunpack.i.l.bf16 %v6383_v37 }
 0x1e8   : > { %v1784_v50 = vsel %vm1765_vm4, %v1751_v55, %v4540_v39  ;;  %v1785_v20 = vsel %vm1765_vm4, %v1752_v44, %v4541_v46  ;;  %v4666_v31 = vunpack.i.h.bf16 %v6408_v24  ;;  %v4665_v17 = vunpack.i.l.bf16 %v6408_v24 }
 0x1e9   : > { %v1770_v27 = vsel %vm1765_vm4, %v1737_v18, %v4505_v9  ;;  %v1771_v32 = vsel %vm1765_vm4, %v1738_v59, %v4506_v23  ;;  %v4746_v53 = vunpack.i.h.bf16 %v6458_v40  ;;  %v4745_v37 = vunpack.i.l.bf16 %v6458_v40  ;;  %v5616_v9 = vld [vmem:[#allocation2 + $0x50] sm:$0xff] }
 0x1ea   : > { %4262 = vmatmul.msk.bf16.gmra.mxu0 %vm1999_vm11, %v1964_v0  ;;  %v1803_v43 = vsel %vm1798_vm6, %v1770_v27, %v4585_v61  ;;  %v1804_v5 = vsel %vm1798_vm6, %v1771_v32, %v4586_v30  ;;  %v4826_v35 = vunpack.i.h.bf16 %v6490_v56  ;;  %v4825_v24 = vunpack.i.l.bf16 %v6490_v56  ;;  %v5618_v27 = vld [vmem:[#allocation2 + $0xf8] sm:$0xff] }
 0x1eb   : > { %v4934_v25 = vpop.permute.xlu0 %4933  ;;  %v1817_v28 = vsel %vm1798_vm6, %v1784_v50, %v4620_v29  ;;  %v1818_v16 = vsel %vm1798_vm6, %v1785_v20, %v4621_v34  ;;  %v4906_v51 = vunpack.i.h.bf16 %v6583_v15  ;;  %v4905_v59 = vunpack.i.l.bf16 %v6583_v15 }
 0x1ec   : > { %v4936_v41 = vunpack.i.h.bf16 %v4934_v25  ;;  %v4935_v62 = vunpack.i.l.bf16 %v4934_v25  ;;  %v1836_v42 = vsel %vm1831_vm8, %v1803_v43, %v4665_v17  ;;  %v1837_v40 = vsel %vm1831_vm8, %v1804_v5, %v4666_v31  ;;  %v4939_v0 = vpop.permute.xlu1 %4938  ;;  %v5617_v17 = vld [vmem:[#allocation2 + $0x48] sm:$0xff]  ;;  %v5619_v43 = vld [vmem:[#allocation2 + $0xf0] sm:$0xff] }
 0x1ed   : > { %v4701_v7 = vunpack.i.h.bf16 %v6431_v13  ;;  %v4700_v25 = vunpack.i.l.bf16 %v6431_v13  ;;  %v4781_v14 = vunpack.i.h.bf16 %v6467_v8  ;;  %v4780_v56 = vunpack.i.l.bf16 %v6467_v8 }
 0x1ee   : > { %v1947_v22 = vsel %vm1930_vm10, %v1914_v10, %v4935_v62  ;;  %v1948_v48 = vsel %vm1930_vm10, %v1915_v3, %v4936_v41  ;;  %v1869_v58 = vsel %vm1864_vm7, %v1836_v42, %v4745_v37  ;;  %v1870_v41 = vsel %vm1864_vm7, %v1837_v40, %v4746_v53  ;;  %v6731_v44 = vpop.permute.xlu2 %4928 }
 0x1ef   : > { %v1971_v45 = vpack.c.bf16 %v1948_v48, %v1947_v22  ;;  %v4861_v62 = vunpack.i.h.bf16 %v6513_v6  ;;  %v4860_v15 = vunpack.i.l.bf16 %v6513_v6  ;;  %v1902_v46 = vsel %vm1897_vm9, %v1869_v58, %v4825_v24  ;;  %v8683_v58 = vld [vmem:[#allocation85_spill] sm:$0xff] }
 0x1f0   : > { %v1903_v39 = vsel %vm1897_vm9, %v1870_v41, %v4826_v35  ;;  %v4941_v10 = vunpack.i.h.bf16 %v4939_v0  ;;  %v4940_v3 = vunpack.i.l.bf16 %v4939_v0  ;;  %v1935_v13 = vsel %vm1930_vm10, %v1902_v46, %v4905_v59  ;;  %v8681_v59 = vld [vmem:[#allocation71_spill] sm:$0xff] }
 0x1f1   : > { %4269 = vmatmul.msk.bf16.vlgmr.msra.gmra.mxu2 %vm1999_vm11, %v1971_v45  ;;  %v1936_v23 = vsel %vm1930_vm10, %v1903_v39, %v4906_v51  ;;  %v1707_v8 = vsel %vm280_vm0, %v5616_v9, %v4351_v47  ;;  %v4386_v22 = vunpack.i.h.bf16 %v6200_v38  ;;  %v1850_v48 = vsel %vm1831_vm8, %v1817_v28, %v4700_v25  ;;  %v8684_v39 = vld [vmem:[#allocation97_spill] sm:$0xff] }
 0x1f2   : > { %v1851_v6 = vsel %vm1831_vm8, %v1818_v16, %v4701_v7  ;;  %v4385_v18 = vunpack.i.l.bf16 %v6200_v38  ;;  %v4466_v30 = vunpack.i.h.bf16 %v6222_v57  ;;  %v1883_v61 = vsel %vm1864_vm7, %v1850_v48, %v4780_v56 }
 0x1f3   : > { %v1884_v45 = vsel %vm1864_vm7, %v1851_v6, %v4781_v14  ;;  %v4465_v55 = vunpack.i.l.bf16 %v6222_v57  ;;  %v1965_v34 = vpack.c.bf16 %v1936_v23, %v1935_v13  ;;  %v1916_v47 = vsel %vm1897_vm9, %v1883_v61, %v4860_v15 }
 0x1f4   : > { %v1917_v29 = vsel %vm1897_vm9, %v1884_v45, %v4861_v62  ;;  %v4431_v50 = vunpack.i.h.bf16 %v6238_v19  ;;  %v4430_v20 = vunpack.i.l.bf16 %v6238_v19  ;;  %v1949_v38 = vsel %vm1930_vm10, %v1916_v47, %v4940_v3 }
 0x1f5   : > { %v1950_v31 = vsel %vm1930_vm10, %v1917_v29, %v4941_v10  ;;  %v1706_v57 = vsel %vm280_vm0, %v5617_v17, %v4350_v54  ;;  %v1721_v32 = vsel %vm280_vm0, %v5618_v27, %v4386_v22  ;;  %v4511_v53 = vunpack.i.h.bf16 %v6260_v52  ;;  %v8685_v22 = vld [vmem:[#allocation77_spill] sm:$0xff] }
 0x1f6   : > { %v4510_v37 = vunpack.i.l.bf16 %v6260_v52  ;;  %v1720_v19 = vsel %vm280_vm0, %v5619_v43, %v4385_v18  ;;  %v1754_v5 = vsel %vm1732_vm5, %v1721_v32, %v4466_v30  ;;  %v4546_v35 = vunpack.i.h.bf16 %v6328_v33  ;;  %v4944_v61 = vpop.permute.xlu2 %4943 }
 0x1f7   : > { %v4545_v2 = vunpack.i.l.bf16 %v6328_v33  ;;  %v1753_v54 = vsel %vm1732_vm5, %v1720_v19, %v4465_v55  ;;  %v4591_v24 = vunpack.i.h.bf16 %v6364_v26  ;;  %v4590_v28 = vunpack.i.l.bf16 %v6364_v26  ;;  %v8682_v33 = vld [vmem:[#allocation78_spill] sm:$0xff] }
 0x1f8   : > { %v1972_v16 = vpack.c.bf16 %v1950_v31, %v1949_v38  ;;  %v1739_v52 = vsel %vm1732_vm5, %v1706_v57, %v4430_v20  ;;  %v1740_v51 = vsel %vm1732_vm5, %v1707_v8, %v4431_v50  ;;  %v4626_v42 = vunpack.i.h.bf16 %v8681_v59  ;;  %v8687_v50 = vld [vmem:[#allocation102_spill] sm:$0xff] }
 0x1f9   : > { %v4625_v40 = vunpack.i.l.bf16 %v8681_v59  ;;  %v1773_v7 = vsel %vm1765_vm4, %v1740_v51, %v4511_v53  ;;  %v1772_v25 = vsel %vm1765_vm4, %v1739_v52, %v4510_v37  ;;  %v4671_v0 = vunpack.i.h.bf16 %v8682_v33  ;;  %v5620_v53 = vld [vmem:[#allocation2 + $0x78] sm:$0xff]  ;;  %v8688_v37 = vld [vmem:[#allocation38_spill] sm:$0xff] }
 0x1fa   : > { %4263 = vmatmul.msk.bf16.gmra.mxu0 %vm1999_vm11, %v1965_v34  ;;  %v4670_v14 = vunpack.i.l.bf16 %v8682_v33  ;;  %v1787_v26 = vsel %vm1765_vm4, %v1754_v5, %v4546_v35  ;;  %v1786_v56 = vsel %vm1765_vm4, %v1753_v54, %v4545_v2  ;;  %v4751_v41 = vunpack.i.h.bf16 %v8683_v58  ;;  %v8686_v34 = vld [vmem:[#allocation92_spill] sm:$0xff]  ;;  %v5621_v54 = vld [vmem:[#allocation2 + $0x110] sm:$0xff] }
 0x1fb   : > { %v4750_v62 = vunpack.i.l.bf16 %v8683_v58  ;;  %v1806_v15 = vsel %vm1798_vm6, %v1773_v7, %v4591_v24  ;;  %v1805_v46 = vsel %vm1798_vm6, %v1772_v25, %v4590_v28  ;;  %v4831_v10 = vunpack.i.h.bf16 %v8684_v39  ;;  %v8690_v28 = vld [vmem:[#allocation44_spill] sm:$0xff] }
 0x1fc   : > { %v4830_v3 = vunpack.i.l.bf16 %v8684_v39  ;;  %v1819_v13 = vsel %vm1798_vm6, %v1786_v56, %v4625_v40  ;;  %v1820_v23 = vsel %vm1798_vm6, %v1787_v26, %v4626_v42  ;;  %v4911_v9 = vunpack.i.h.bf16 %v6623_v1  ;;  %v8691_v25 = vld [vmem:[#allocation52_spill] sm:$0xff]  ;;  %v8692_v56 = vld [vmem:[#allocation41_spill] sm:$0xff]  ;;  %v8694_v39 = vld [vmem:[#allocation106_spill] sm:$0xff] }
 0x1fd   : > { %v4910_v8 = vunpack.i.l.bf16 %v6623_v1  ;;  %v4706_v48 = vunpack.i.h.bf16 %v8685_v22  ;;  %v4705_v6 = vunpack.i.l.bf16 %v8685_v22  ;;  %v1838_v18 = vsel %vm1831_vm8, %v1805_v46, %v4670_v14  ;;  %v5622_v14 = vld [vmem:[#allocation2 + $0x108] sm:$0xff] }
 0x1fe   : > { %v1839_v30 = vsel %vm1831_vm8, %v1806_v15, %v4671_v0  ;;  %v1871_v45 = vsel %vm1864_vm7, %v1838_v18, %v4750_v62  ;;  %v4786_v47 = vunpack.i.h.bf16 %v8686_v34  ;;  %v4785_v29 = vunpack.i.l.bf16 %v8686_v34  ;;  %v8697_v22 = vld [vmem:[#allocation66_spill] sm:$0xff] }
 0x1ff   : > { %v1872_v55 = vsel %vm1864_vm7, %v1839_v30, %v4751_v41  ;;  %v4866_v20 = vunpack.i.h.bf16 %v8687_v50  ;;  %v4865_v1 = vunpack.i.l.bf16 %v8687_v50  ;;  %v1904_v38 = vsel %vm1897_vm9, %v1871_v45, %v4830_v3  ;;  %v8693_v41 = vld [vmem:[#allocation58_spill] sm:$0xff]  ;;  %v8695_v3 = vld [vmem:[#allocation63_spill] sm:$0xff]  ;;  %v8699_v50 = vld [vmem:[#allocation72_spill] sm:$0xff] }
 0x200   : > { %v1905_v31 = vsel %vm1897_vm9, %v1872_v55, %v4831_v10  ;;  %v4946_v17 = vunpack.i.h.bf16 %v4944_v61  ;;  %v4945_v57 = vunpack.i.l.bf16 %v4944_v61  ;;  %v1937_v27 = vsel %vm1930_vm10, %v1904_v38, %v4910_v8  ;;  %v8698_v45 = vld [vmem:[#allocation67_spill] sm:$0xff] }
 0x201   : > { %4270 = vmatmul.msk.bf16.gmra.mxu2 %vm1999_vm11, %v1972_v16  ;;  %v1938_v32 = vsel %vm1930_vm10, %v1905_v31, %v4911_v9  ;;  %v8689_v43 = vunpack.i.l.bf16 %v8688_v37  ;;  %v4390_v5 = vunpack.i.l.bf16 %v6156_v12  ;;  %v1852_v35 = vsel %vm1831_vm8, %v1819_v13, %v4705_v6  ;;  %v8696_v9 = vld [vmem:[#allocation105_spill] sm:$0xff]  ;;  %v8701_v37 = vld [vmem:[#allocation98_spill] sm:$0xff] }
 0x202   : > { %v1853_v2 = vsel %vm1831_vm8, %v1820_v23, %v4706_v48  ;;  %v1723_v24 = vsel %vm280_vm0, %v5621_v54, %v4391_v11  ;;  %v4436_v16 = vunpack.i.h.bf16 %v8690_v28  ;;  %v1885_v52 = vsel %vm1864_vm7, %v1852_v35, %v4785_v29 }
 0x203   : > { %v6791_v19 = vsel %vm280_vm0, %v5620_v53, %v8689_v43  ;;  %v1886_v51 = vsel %vm1864_vm7, %v1853_v2, %v4786_v47  ;;  %v4435_v59 = vunpack.i.l.bf16 %v8690_v28  ;;  %v1966_v42 = vpack.c.bf16 %v1938_v32, %v1937_v27 }
 0x204   : > { %v1918_v40 = vsel %vm1897_vm9, %v1885_v52, %v4865_v1  ;;  %v1919_v7 = vsel %vm1897_vm9, %v1886_v51, %v4866_v20  ;;  %v4471_v33 = vunpack.i.h.bf16 %v8691_v25  ;;  %v4470_v0 = vunpack.i.l.bf16 %v8691_v25  ;;  %v8702_v52 = vld [vmem:[#allocation82_spill] sm:$0xff]  ;;  %v8703_v25 = vld [vmem:[#allocation93_spill] sm:$0xff] }
 0x205   : > { %v1951_v12 = vsel %vm1930_vm10, %v1918_v40, %v4945_v57  ;;  %v1952_v11 = vsel %vm1930_vm10, %v1919_v7, %v4946_v17  ;;  %v1722_v26 = vsel %vm280_vm0, %v5622_v14, %v4390_v5  ;;  %v4406_v58 = vunpack.i.h.bf16 %v8692_v56  ;;  %v8700_v17 = vld [vmem:[#allocation88_spill] sm:$0xff] }
 0x206   : > { %v4516_v62 = vunpack.i.h.bf16 %v8693_v41  ;;  %v4515_v15 = vunpack.i.l.bf16 %v8693_v41  ;;  %v4405_v46 = vunpack.i.l.bf16 %v8692_v56  ;;  %v1742_v10 = vsel %vm1732_vm5, %v8694_v39, %v4436_v16 }
 0x207   : > { %v4551_v13 = vunpack.i.h.bf16 %v8695_v3  ;;  %v4550_v23 = vunpack.i.l.bf16 %v8695_v3  ;;  %v1741_v8 = vsel %vm1732_vm5, %v8696_v9, %v4435_v59  ;;  %v4631_v48 = vunpack.i.h.bf16 %v8697_v22 }
 0x208   : > { %v4630_v6 = vunpack.i.l.bf16 %v8697_v22  ;;  %v1973_v18 = vpack.c.bf16 %v1952_v11, %v1951_v12  ;;  %v1756_v30 = vsel %vm1732_vm5, %v1723_v24, %v4471_v33  ;;  %v1755_v61 = vsel %vm1732_vm5, %v1722_v26, %v4470_v0  ;;  %v8704_v12 = vld [vmem:[#allocation104_spill] sm:$0xff] }
 0x209   : > { %v4596_v55 = vunpack.i.h.bf16 %v8698_v45  ;;  %v4595_v34 = vunpack.i.l.bf16 %v8698_v45  ;;  %v1775_v47 = vsel %vm1765_vm4, %v1742_v10, %v4516_v62  ;;  %v1774_v29 = vsel %vm1765_vm4, %v1741_v8, %v4515_v15  ;;  %v8705_v10 = vld [vmem:[#allocation42_spill] sm:$0xff] }
 0x20a   : > { %4264 = vmatmul.msk.bf16.gmra.mxu0 %vm1999_vm11, %v1966_v42  ;;  %v4676_v20 = vunpack.i.h.bf16 %v8699_v50  ;;  %v4675_v1 = vunpack.i.l.bf16 %v8699_v50  ;;  %v1788_v38 = vsel %vm1765_vm4, %v1755_v61, %v4550_v23  ;;  %v1789_v31 = vsel %vm1765_vm4, %v1756_v30, %v4551_v13  ;;  %v4949_v42 = vpop.permute.xlu0 %4948  ;;  %v8706_v13 = vld [vmem:[#allocation45_spill] sm:$0xff] }
 0x20b   : > { %v4756_v57 = vunpack.i.h.bf16 %v8700_v17  ;;  %v4755_v27 = vunpack.i.l.bf16 %v8700_v17  ;;  %v1821_v32 = vsel %vm1798_vm6, %v1788_v38, %v4630_v6  ;;  %v1822_v53 = vsel %vm1798_vm6, %v1789_v31, %v4631_v48  ;;  %v8707_v48 = vld [vmem:[#allocation50_spill] sm:$0xff] }
 0x20c   : > { %v4836_v43 = vunpack.i.h.bf16 %v8701_v37  ;;  %v4835_v5 = vunpack.i.l.bf16 %v8701_v37  ;;  %v1807_v35 = vsel %vm1798_vm6, %v1774_v29, %v4595_v34  ;;  %v1808_v2 = vsel %vm1798_vm6, %v1775_v47, %v4596_v55  ;;  %v8708_v47 = vld [vmem:[#allocation54_spill] sm:$0xff] }
 0x20d   : > { %v4916_v54 = vunpack.i.h.bf16 %v6691_v63  ;;  %v4915_v24 = vunpack.i.l.bf16 %v6691_v63  ;;  %v1840_v28 = vsel %vm1831_vm8, %v1807_v35, %v4675_v1  ;;  %v1841_v16 = vsel %vm1831_vm8, %v1808_v2, %v4676_v20  ;;  %v5623_v31 = vld [vmem:[#allocation2 + $0x128] sm:$0xff] }
 0x20e   : > { %v4711_v51 = vunpack.i.h.bf16 %v8702_v52  ;;  %v4710_v59 = vunpack.i.l.bf16 %v8702_v52  ;;  %v1873_v40 = vsel %vm1864_vm7, %v1840_v28, %v4755_v27  ;;  %v1874_v7 = vsel %vm1864_vm7, %v1841_v16, %v4756_v57  ;;  %v8709_v57 = vld [vmem:[#allocation57_spill] sm:$0xff] }
 0x20f   : > { %v4791_v33 = vunpack.i.h.bf16 %v8703_v25  ;;  %v4790_v0 = vunpack.i.l.bf16 %v8703_v25  ;;  %v4871_v11 = vunpack.i.h.bf16 %v8704_v12  ;;  %v4870_v63 = vunpack.i.l.bf16 %v8704_v12 }
 0x210   : > { %v1906_v14 = vsel %vm1897_vm9, %v1873_v40, %v4835_v5  ;;  %v1907_v26 = vsel %vm1897_vm9, %v1874_v7, %v4836_v43  ;;  %v4951_v41 = vunpack.i.h.bf16 %v4949_v42  ;;  %v4950_v62 = vunpack.i.l.bf16 %v4949_v42  ;;  %v8710_v5 = vld [vmem:[#allocation60_spill] sm:$0xff]  ;;  %v8712_v42 = vld [vmem:[#allocation73_spill] sm:$0xff] }
 0x211   : > { %4271 = vmatmul.msk.bf16.gmra.mxu2 %vm1999_vm11, %v1973_v18  ;;  %v1939_v15 = vsel %vm1930_vm10, %v1906_v14, %v4915_v24  ;;  %v1940_v39 = vsel %vm1930_vm10, %v1907_v26, %v4916_v54  ;;  %v4366_v3 = vunpack.i.h.bf16 %v8705_v10  ;;  %v4396_v23 = vunpack.i.h.bf16 %v8706_v13  ;;  %v8711_v24 = vld [vmem:[#allocation62_spill] sm:$0xff] }
 0x212   : > { %v1854_v9 = vsel %vm1831_vm8, %v1821_v32, %v4710_v59  ;;  %v1855_v8 = vsel %vm1831_vm8, %v1822_v53, %v4711_v51  ;;  %v4395_v22 = vunpack.i.l.bf16 %v8706_v13  ;;  %v4441_v6 = vunpack.i.h.bf16 %v8707_v48  ;;  %v5624_v53 = vld [vmem:[#allocation2 + $0x120] sm:$0xff] }
 0x213   : > { %v1887_v18 = vsel %vm1864_vm7, %v1854_v9, %v4790_v0  ;;  %v1888_v30 = vsel %vm1864_vm7, %v1855_v8, %v4791_v33  ;;  %v4440_v61 = vunpack.i.l.bf16 %v8707_v48  ;;  %v1967_v45 = vpack.c.bf16 %v1940_v39, %v1939_v15  ;;  %v8713_v33 = vld [vmem:[#allocation79_spill] sm:$0xff] }
 0x214   : > { %v1920_v55 = vsel %vm1897_vm9, %v1887_v18, %v4870_v63  ;;  %v1921_v34 = vsel %vm1897_vm9, %v1888_v30, %v4871_v11  ;;  %v4476_v29 = vunpack.i.h.bf16 %v8708_v47  ;;  %v4475_v50 = vunpack.i.l.bf16 %v8708_v47  ;;  %v8714_v63 = vld [vmem:[#allocation89_spill] sm:$0xff]  ;;  %v8715_v15 = vld [vmem:[#allocation99_spill] sm:$0xff] }
 0x215   : > { %v1953_v20 = vsel %vm1930_vm10, %v1920_v55, %v4950_v62  ;;  %v1954_v1 = vsel %vm1930_vm10, %v1921_v34, %v4951_v41  ;;  %v4365_v38 = vunpack.i.l.bf16 %v8705_v10  ;;  %v1725_v17 = vsel %vm280_vm0, %v5623_v31, %v4396_v23  ;;  %v8716_v18 = vld [vmem:[#allocation83_spill] sm:$0xff] }
 0x216   : > { %v4556_v27 = vunpack.i.h.bf16 %v8709_v57  ;;  %v4555_v32 = vunpack.i.l.bf16 %v8709_v57  ;;  %v1724_v37 = vsel %vm280_vm0, %v5624_v53, %v4395_v22  ;;  %v1744_v43 = vsel %vm1732_vm5, %v6575_v36, %v4441_v6  ;;  %v8717_v55 = vld [vmem:[#allocation91_spill] sm:$0xff] }
 0x217   : > { %v4521_v35 = vunpack.i.h.bf16 %v8710_v5  ;;  %v4520_v2 = vunpack.i.l.bf16 %v8710_v5  ;;  %v1743_v54 = vsel %vm1732_vm5, %v6791_v19, %v4440_v61  ;;  %v4601_v28 = vunpack.i.h.bf16 %v8711_v24  ;;  %v8719_v5 = vld [vmem:[#allocation47_spill] sm:$0xff] }
 0x218   : > { %v4600_v16 = vunpack.i.l.bf16 %v8711_v24  ;;  %v1974_v52 = vpack.c.bf16 %v1954_v1, %v1953_v20  ;;  %v1757_v51 = vsel %vm1732_vm5, %v1724_v37, %v4475_v50  ;;  %v1758_v59 = vsel %vm1732_vm5, %v1725_v17, %v4476_v29  ;;  %v8718_v20 = vld [vmem:[#allocation103_spill] sm:$0xff]  ;;  %v5625_v37 = vld [vmem:[#allocation2 + $0x98] sm:$0xff] }
 0x219   : > { %v4636_v40 = vunpack.i.h.bf16 %v8712_v42  ;;  %v4635_v36 = vunpack.i.l.bf16 %v8712_v42  ;;  %v1790_v7 = vsel %vm1765_vm4, %v1757_v51, %v4555_v32  ;;  %v1791_v25 = vsel %vm1765_vm4, %v1758_v59, %v4556_v27 }
 0x21a   : > { %4265 = vmatmul.msk.bf16.gmra.mxu0 %vm1999_vm11, %v1967_v45  ;;  %v4681_v0 = vunpack.i.h.bf16 %v8713_v33  ;;  %v4680_v19 = vunpack.i.l.bf16 %v8713_v33  ;;  %v1776_v12 = vsel %vm1765_vm4, %v1743_v54, %v4520_v2  ;;  %v1777_v11 = vsel %vm1765_vm4, %v1744_v43, %v4521_v35  ;;  %v4954_v45 = vpop.permute.xlu1 %4953 }
 0x21b   : > { %v4761_v14 = vunpack.i.h.bf16 %v8714_v63  ;;  %v4760_v26 = vunpack.i.l.bf16 %v8714_v63  ;;  %v1809_v41 = vsel %vm1798_vm6, %v1776_v12, %v4600_v16  ;;  %v1810_v62 = vsel %vm1798_vm6, %v1777_v11, %v4601_v28  ;;  %v8720_v28 = vld [vmem:[#allocation49_spill] sm:$0xff] }
 0x21c   : > { %v4841_v39 = vunpack.i.h.bf16 %v8715_v15  ;;  %v4840_v13 = vunpack.i.l.bf16 %v8715_v15  ;;  %v1823_v23 = vsel %vm1798_vm6, %v1790_v7, %v4635_v36  ;;  %v1824_v9 = vsel %vm1798_vm6, %v1791_v25, %v4636_v40  ;;  %v8721_v36 = vld [vmem:[#allocation51_spill] sm:$0xff]  ;;  %v5627_v11 = vld [vmem:[#allocation2 + $0x140] sm:$0xff] }
 0x21d   : > { %v4921_v8 = vunpack.i.h.bf16 %v6633_v4  ;;  %v4920_v22 = vunpack.i.l.bf16 %v6633_v4  ;;  %v1842_v48 = vsel %vm1831_vm8, %v1809_v41, %v4680_v19  ;;  %v1843_v6 = vsel %vm1831_vm8, %v1810_v62, %v4681_v0  ;;  %v5626_v19 = vld [vmem:[#allocation2 + $0x90] sm:$0xff]  ;;  %v5628_v62 = vld [vmem:[#allocation2 + $0x138] sm:$0xff] }
 0x21e   : > { %v4716_v30 = vunpack.i.h.bf16 %v8716_v18  ;;  %v4715_v61 = vunpack.i.l.bf16 %v8716_v18  ;;  %v4796_v34 = vunpack.i.h.bf16 %v8717_v55  ;;  %v4795_v47 = vunpack.i.l.bf16 %v8717_v55 }
 0x21f   : > { %v1875_v29 = vsel %vm1864_vm7, %v1842_v48, %v4760_v26  ;;  %v1876_v50 = vsel %vm1864_vm7, %v1843_v6, %v4761_v14  ;;  %v4876_v1 = vunpack.i.h.bf16 %v8718_v20  ;;  %v4875_v4 = vunpack.i.l.bf16 %v8718_v20  ;;  %v8722_v14 = vld [vmem:[#allocation53_spill] sm:$0xff] }
 0x220   : > { %v1908_v31 = vsel %vm1897_vm9, %v1875_v29, %v4840_v13  ;;  %v1909_v17 = vsel %vm1897_vm9, %v1876_v50, %v4841_v39  ;;  %v4956_v57 = vunpack.i.h.bf16 %v4954_v45  ;;  %v4955_v27 = vunpack.i.l.bf16 %v4954_v45  ;;  %v8723_v13 = vld [vmem:[#allocation64_spill] sm:$0xff] }
 0x221   : > { %4272 = vmatmul.msk.bf16.gmra.mxu2 %vm1999_vm11, %v1974_v52  ;;  %v1941_v32 = vsel %vm1930_vm10, %v1908_v31, %v4920_v22  ;;  %v1942_v53 = vsel %vm1930_vm10, %v1909_v17, %v4921_v8  ;;  %v1713_v43 = vsel %vm280_vm0, %v5625_v37, %v4366_v3  ;;  %v4401_v35 = vunpack.i.h.bf16 %v8719_v5 }
 0x222   : > { %v1856_v2 = vsel %vm1831_vm8, %v1823_v23, %v4715_v61  ;;  %v1857_v54 = vsel %vm1831_vm8, %v1824_v9, %v4716_v30  ;;  %v4400_v24 = vunpack.i.l.bf16 %v8719_v5  ;;  %v4481_v16 = vunpack.i.h.bf16 %v8720_v28  ;;  %v8724_v9 = vld [vmem:[#allocation69_spill] sm:$0xff]  ;;  %v8725_v30 = vld [vmem:[#allocation74_spill] sm:$0xff] }
 0x223   : > { %v1889_v52 = vsel %vm1864_vm7, %v1856_v2, %v4795_v47  ;;  %v1890_v51 = vsel %vm1864_vm7, %v1857_v54, %v4796_v34  ;;  %v4480_v59 = vunpack.i.l.bf16 %v8720_v28  ;;  %v1968_v42 = vpack.c.bf16 %v1942_v53, %v1941_v32  ;;  %v8726_v47 = vld [vmem:[#allocation80_spill] sm:$0xff]  ;;  %v8729_v54 = vld [vmem:[#allocation81_spill] sm:$0xff] }
 0x224   : > { %v1922_v40 = vsel %vm1897_vm9, %v1889_v52, %v4875_v4  ;;  %v1923_v3 = vsel %vm1897_vm9, %v1890_v51, %v4876_v1  ;;  %v4446_v7 = vunpack.i.h.bf16 %v8721_v36  ;;  %v4445_v25 = vunpack.i.l.bf16 %v8721_v36  ;;  %v8727_v4 = vld [vmem:[#allocation87_spill] sm:$0xff]  ;;  %v8728_v32 = vld [vmem:[#allocation100_spill] sm:$0xff]  ;;  %v4959_v51 = vpop.permute.xlu2 %4958 }
 0x225   : > { %v1955_v33 = vsel %vm1930_vm10, %v1922_v40, %v4955_v27  ;;  %v1956_v0 = vsel %vm1930_vm10, %v1923_v3, %v4956_v57  ;;  %v1712_v12 = vsel %vm280_vm0, %v5626_v19, %v4365_v38  ;;  %v1727_v63 = vsel %vm280_vm0, %v5627_v11, %v4401_v35  ;;  %v8730_v40 = vld [vmem:[#allocation94_spill] sm:$0xff] }
 0x226   : > { %v4526_v26 = vunpack.i.h.bf16 %v8722_v14  ;;  %v4525_v41 = vunpack.i.l.bf16 %v8722_v14  ;;  %v1726_v15 = vsel %vm280_vm0, %v5628_v62, %v4400_v24  ;;  %v1760_v39 = vsel %vm1732_vm5, %v1727_v63, %v4481_v16  ;;  %v5629_v14 = vld [vmem:[#allocation2 + $0x158] sm:$0xff] }
 0x227   : > { %v4561_v23 = vunpack.i.h.bf16 %v8723_v13  ;;  %v4560_v10 = vunpack.i.l.bf16 %v8723_v13  ;;  %v1759_v38 = vsel %vm1732_vm5, %v1726_v15, %v4480_v59  ;;  %v4606_v8 = vunpack.i.h.bf16 %v8724_v9 }
 0x228   : > { %v4605_v22 = vunpack.i.l.bf16 %v8724_v9  ;;  %v1975_v48 = vpack.c.bf16 %v1956_v0, %v1955_v33  ;;  %v1745_v6 = vsel %vm1732_vm5, %v1712_v12, %v4445_v25  ;;  %v1746_v18 = vsel %vm1732_vm5, %v1713_v43, %v4446_v7  ;;  %v8731_v7 = vld [vmem:[#allocation107_spill] sm:$0xff] }
 0x229   : > { %v4641_v61 = vunpack.i.h.bf16 %v8725_v30  ;;  %v4640_v45 = vunpack.i.l.bf16 %v8725_v30  ;;  %v1778_v55 = vsel %vm1765_vm4, %v1745_v6, %v4525_v41  ;;  %v1779_v34 = vsel %vm1765_vm4, %v1746_v18, %v4526_v26  ;;  %v8732_v41 = vld [vmem:[#allocation43_spill] sm:$0xff] }
 0x22a   : > { %4266 = vmatmul.msk.bf16.gmra.mxu0 %vm1999_vm11, %v1968_v42  ;;  %v4686_v29 = vunpack.i.h.bf16 %v8726_v47  ;;  %v4685_v50 = vunpack.i.l.bf16 %v8726_v47  ;;  %v1793_v20 = vsel %vm1765_vm4, %v1760_v39, %v4561_v23  ;;  %v1792_v1 = vsel %vm1765_vm4, %v1759_v38, %v4560_v10  ;;  %v8733_v23 = vld [vmem:[#allocation46_spill] sm:$0xff]  ;;  %v8734_v6 = vld [vmem:[#allocation55_spill] sm:$0xff] }
 0x22b   : > { %v4766_v31 = vunpack.i.h.bf16 %v8727_v4  ;;  %v4765_v17 = vunpack.i.l.bf16 %v8727_v4  ;;  %v1811_v57 = vsel %vm1798_vm6, %v1778_v55, %v4605_v22  ;;  %v1812_v27 = vsel %vm1798_vm6, %v1779_v34, %v4606_v8  ;;  %v5630_v55 = vld [vmem:[#allocation2 + $0x150] sm:$0xff]  ;;  %v5632_v4 = vld [vmem:[#allocation2 + $0xa8] sm:$0xff] }
 0x22c   : > { %v4846_v53 = vunpack.i.h.bf16 %v8728_v32  ;;  %v4845_v37 = vunpack.i.l.bf16 %v8728_v32  ;;  %v1825_v43 = vsel %vm1798_vm6, %v1792_v1, %v4640_v45  ;;  %v1826_v5 = vsel %vm1798_vm6, %v1793_v20, %v4641_v61  ;;  %v5631_v47 = vld [vmem:[#allocation2 + $0xb0] sm:$0xff]  ;;  %v8737_v32 = vld [vmem:[#allocation68_spill] sm:$0xff] }
 0x22d   : > { %v4926_v35 = vunpack.i.h.bf16 %v6664_v49  ;;  %v4925_v2 = vunpack.i.l.bf16 %v6664_v49  ;;  %v4721_v24 = vunpack.i.h.bf16 %v8729_v54  ;;  %v4720_v28 = vunpack.i.l.bf16 %v8729_v54 }
 0x22e   : > { %v1844_v16 = vsel %vm1831_vm8, %v1811_v57, %v4685_v50  ;;  %v1845_v52 = vsel %vm1831_vm8, %v1812_v27, %v4686_v29  ;;  %v4801_v3 = vunpack.i.h.bf16 %v8730_v40  ;;  %v4800_v36 = vunpack.i.l.bf16 %v8730_v40  ;;  %v8735_v50 = vld [vmem:[#allocation61_spill] sm:$0xff] }
 0x22f   : > { %v1877_v59 = vsel %vm1864_vm7, %v1844_v16, %v4765_v17  ;;  %v1878_v42 = vsel %vm1864_vm7, %v1845_v52, %v4766_v31  ;;  %v4881_v25 = vunpack.i.h.bf16 %v8731_v7  ;;  %v4880_v49 = vunpack.i.l.bf16 %v8731_v7  ;;  %v8736_v57 = vld [vmem:[#allocation65_spill] sm:$0xff]  ;;  %v8739_v52 = vld [vmem:[#allocation76_spill] sm:$0xff] }
 0x230   : > { %v1910_v33 = vsel %vm1897_vm9, %v1877_v59, %v4845_v37  ;;  %v1911_v0 = vsel %vm1897_vm9, %v1878_v42, %v4846_v53  ;;  %v4961_v19 = vunpack.i.h.bf16 %v4959_v51  ;;  %v4960_v12 = vunpack.i.l.bf16 %v4959_v51 }
 0x231   : > { %4273 = vmatmul.msk.bf16.gmra.mxu2 %vm1999_vm11, %v1975_v48  ;;  %v1943_v11 = vsel %vm1930_vm10, %v1910_v33, %v4925_v2  ;;  %v1944_v63 = vsel %vm1930_vm10, %v1911_v0, %v4926_v35  ;;  %v1729_v26 = vsel %vm280_vm0, %v5629_v14, %v4406_v58  ;;  %v4371_v62 = vunpack.i.h.bf16 %v8732_v41  ;;  %v8738_v2 = vld [vmem:[#allocation70_spill] sm:$0xff]  ;;  %v8741_v33 = vld [vmem:[#allocation101_spill] sm:$0xff] }
 0x232   : > { %v1858_v15 = vsel %vm1831_vm8, %v1825_v43, %v4720_v28  ;;  %v1859_v39 = vsel %vm1831_vm8, %v1826_v5, %v4721_v24  ;;  %v4370_v13 = vunpack.i.l.bf16 %v8732_v41  ;;  %v4451_v10 = vunpack.i.h.bf16 %v8733_v23 }
 0x233   : > { %v1891_v38 = vsel %vm1864_vm7, %v1858_v15, %v4800_v36  ;;  %v1892_v9 = vsel %vm1864_vm7, %v1859_v39, %v4801_v3  ;;  %v4450_v8 = vunpack.i.l.bf16 %v8733_v23  ;;  %v1969_v48 = vpack.c.bf16 %v1944_v63, %v1943_v11  ;;  %v8740_v3 = vld [vmem:[#allocation90_spill] sm:$0xff] }
 0x234   : > { %v1924_v22 = vsel %vm1897_vm9, %v1891_v38, %v4880_v49  ;;  %v1925_v58 = vsel %vm1897_vm9, %v1892_v9, %v4881_v25  ;;  %v4486_v18 = vunpack.i.h.bf16 %v8734_v6  ;;  %v4485_v30 = vunpack.i.l.bf16 %v8734_v6  ;;  %v8743_v38 = vld [vmem:[#allocation96_spill] sm:$0xff] }
 0x235   : > { %v1957_v61 = vsel %vm1930_vm10, %v1924_v22, %v4960_v12  ;;  %v1958_v45 = vsel %vm1930_vm10, %v1925_v58, %v4961_v19  ;;  %v1728_v34 = vsel %vm280_vm0, %v5630_v55, %v4405_v46  ;;  %v1715_v29 = vsel %vm280_vm0, %v5631_v47, %v4371_v62  ;;  %v8742_v62 = vld [vmem:[#allocation84_spill] sm:$0xff] }
 0x236   : > { %v4531_v20 = vunpack.i.h.bf16 %v8735_v50  ;;  %v4530_v1 = vunpack.i.l.bf16 %v8735_v50  ;;  %v1714_v31 = vsel %vm280_vm0, %v5632_v4, %v4370_v13  ;;  %v1748_v17 = vsel %vm1732_vm5, %v1715_v29, %v4451_v10  ;;  %v4964_v13 = vpop.permute.xlu0 %4963 }
 0x237   : > { %v4566_v27 = vunpack.i.h.bf16 %v8736_v57  ;;  %v4565_v56 = vunpack.i.l.bf16 %v8736_v57  ;;  %v1747_v46 = vsel %vm1732_vm5, %v1714_v31, %v4450_v8  ;;  %v4646_v53 = vunpack.i.h.bf16 %v8737_v32  ;;  %v8744_v31 = vld [vmem:[#allocation48_spill] sm:$0xff] }
 0x238   : > { %v4645_v37 = vunpack.i.l.bf16 %v8737_v32  ;;  %v1976_v43 = vpack.c.bf16 %v1958_v45, %v1957_v61  ;;  %v1762_v5 = vsel %vm1732_vm5, %v1729_v26, %v4486_v18  ;;  %v1761_v35 = vsel %vm1732_vm5, %v1728_v34, %v4485_v30  ;;  %v8746_v32 = vld [vmem:[#allocation59_spill] sm:$0xff] }
 0x239   : > { %v4611_v54 = vunpack.i.h.bf16 %v8738_v2  ;;  %v4610_v24 = vunpack.i.l.bf16 %v8738_v2  ;;  %v1781_v28 = vsel %vm1765_vm4, %v1748_v17, %v4531_v20  ;;  %v1780_v16 = vsel %vm1765_vm4, %v1747_v46, %v4530_v1  ;;  %v5633_v2 = vld [vmem:[#allocation2 + $0x170] sm:$0xff] }
 0x23a   : > { %4267 = vmatmul.msk.bf16.gmra.mxu0 %vm1999_vm11, %v1969_v48  ;;  %v4691_v51 = vunpack.i.h.bf16 %v8739_v52  ;;  %v4690_v59 = vunpack.i.l.bf16 %v8739_v52  ;;  %v1794_v42 = vsel %vm1765_vm4, %v1761_v35, %v4565_v56  ;;  %v1795_v40 = vsel %vm1765_vm4, %v1762_v5, %v4566_v27  ;;  %v8745_v27 = vld [vmem:[#allocation56_spill] sm:$0xff] }
 0x23b   : > { %v4771_v36 = vunpack.i.h.bf16 %v8740_v3  ;;  %v4770_v7 = vunpack.i.l.bf16 %v8740_v3  ;;  %v1827_v25 = vsel %vm1798_vm6, %v1794_v42, %v4645_v37  ;;  %v1828_v49 = vsel %vm1798_vm6, %v1795_v40, %v4646_v53  ;;  %v8749_v3 = vld [vmem:[#allocation95_spill] sm:$0xff] }
 0x23c   : > { %v4851_v0 = vunpack.i.h.bf16 %v8741_v33  ;;  %v4850_v19 = vunpack.i.l.bf16 %v8741_v33  ;;  %v1813_v12 = vsel %vm1798_vm6, %v1780_v16, %v4610_v24  ;;  %v1814_v11 = vsel %vm1798_vm6, %v1781_v28, %v4611_v54  ;;  %v5634_v24 = vld [vmem:[#allocation2 + $0x168] sm:$0xff] }
 0x23d   : > { %v4931_v63 = vunpack.i.h.bf16 %v6731_v44  ;;  %v4930_v14 = vunpack.i.l.bf16 %v6731_v44  ;;  %v1846_v26 = vsel %vm1831_vm8, %v1813_v12, %v4690_v59  ;;  %v1847_v41 = vsel %vm1831_vm8, %v1814_v11, %v4691_v51  ;;  %v8748_v16 = vld [vmem:[#allocation86_spill] sm:$0xff]  ;;  %v4969_v59 = vpop.permute.xlu1 %4968 }
 0x23e   : > { %v4726_v15 = vunpack.i.h.bf16 %v8742_v62  ;;  %v4725_v39 = vunpack.i.l.bf16 %v8742_v62  ;;  %v1879_v23 = vsel %vm1864_vm7, %v1846_v26, %v4770_v7  ;;  %v1880_v10 = vsel %vm1864_vm7, %v1847_v41, %v4771_v36  ;;  %v7096_v62 = vld [vmem:[%s8440_s3] ss:$0 sm:$0xff] }
 0x23f   : > { %v4806_v9 = vunpack.i.h.bf16 %v8743_v38  ;;  %v4805_v8 = vunpack.i.l.bf16 %v8743_v38  ;;  %v4886_v22 = vunpack.i.h.bf16 %v6567_v60  ;;  %v4885_v44 = vunpack.i.l.bf16 %v6567_v60 }
 0x240   : > { %v1912_v58 = vsel %vm1897_vm9, %v1879_v23, %v4850_v19  ;;  %v1913_v48 = vsel %vm1897_vm9, %v1880_v10, %v4851_v0  ;;  %v4966_v6 = vunpack.i.h.bf16 %v4964_v13  ;;  %v4965_v18 = vunpack.i.l.bf16 %v4964_v13  ;;  %v7087_v19 = vld [vmem:[%s8439_s2] ss:$0 sm:$0xff] }
 0x241   : > { %4274 = vmatmul.msk.bf16.gmra.mxu2 %vm1999_vm11, %v1976_v43  ;;  %v1945_v30 = vsel %vm1930_vm10, %v1912_v58, %v4930_v14  ;;  %v1946_v61 = vsel %vm1930_vm10, %v1913_v48, %v4931_v63  ;;  %v1860_v45 = vsel %vm1831_vm8, %v1827_v25, %v4725_v39  ;;  %v1861_v55 = vsel %vm1831_vm8, %v1828_v49, %v4726_v15  ;;  %v8747_v43 = vld [vmem:[#allocation75_spill] sm:$0xff] }
 0x242   : > { %v1893_v34 = vsel %vm1864_vm7, %v1860_v45, %v4805_v8  ;;  %v1894_v47 = vsel %vm1864_vm7, %v1861_v55, %v4806_v9  ;;  %v1970_v50 = vpack.c.bf16 %v1946_v61, %v1945_v30  ;;  %v4411_v17 = vunpack.i.h.bf16 %v8744_v31  ;;  %v2309_v61 = vld [vmem:[#allocation2 + $0x1] sm:$0xff]  ;;  %v2310_v45 = vld [vmem:[#allocation2 + $0x9] sm:$0xff] }
 0x243   : > { %v1926_v60 = vsel %vm1897_vm9, %v1893_v34, %v4885_v44  ;;  %v1927_v29 = vsel %vm1897_vm9, %v1894_v47, %v4886_v22  ;;  %v4410_v57 = vunpack.i.l.bf16 %v8744_v31  ;;  %v4491_v56 = vunpack.i.h.bf16 %v8745_v27 }
 0x244   : > { %v1959_v20 = vsel %vm1930_vm10, %v1926_v60, %v4965_v18  ;;  %v1960_v1 = vsel %vm1930_vm10, %v1927_v29, %v4966_v6  ;;  %v4490_v46 = vunpack.i.l.bf16 %v8745_v27  ;;  %v4571_v53 = vunpack.i.h.bf16 %v8746_v32 }
 0x245   : > { %v1977_v4 = vpack.c.bf16 %v1960_v1, %v1959_v20  ;;  %v4570_v37 = vunpack.i.l.bf16 %v8746_v32  ;;  %v4651_v5 = vunpack.i.h.bf16 %v8747_v43  ;;  %v4650_v35 = vunpack.i.l.bf16 %v8747_v43 }
 0x246   : > { %v1731_v54 = vsel %vm280_vm0, %v5633_v2, %v4411_v17  ;;  %v1730_v28 = vsel %vm280_vm0, %v5634_v24, %v4410_v57  ;;  %v4731_v52 = vunpack.i.h.bf16 %v8748_v16  ;;  %v4730_v51 = vunpack.i.l.bf16 %v8748_v16 }
 0x247   : > { %v1763_v42 = vsel %vm1732_vm5, %v1730_v28, %v4490_v46  ;;  %v1764_v40 = vsel %vm1732_vm5, %v1731_v54, %v4491_v56  ;;  %v4811_v36 = vunpack.i.h.bf16 %v8749_v3  ;;  %v4810_v7 = vunpack.i.l.bf16 %v8749_v3 }
 0x248   : > { %v1796_v25 = vsel %vm1765_vm4, %v1763_v42, %v4570_v37  ;;  %v1797_v49 = vsel %vm1765_vm4, %v1764_v40, %v4571_v53  ;;  %v4891_v33 = vunpack.i.h.bf16 %v6552_v21  ;;  %v4890_v0 = vunpack.i.l.bf16 %v6552_v21 }
 0x249   : > { %v1829_v12 = vsel %vm1798_vm6, %v1796_v25, %v4650_v35  ;;  %v1830_v11 = vsel %vm1798_vm6, %v1797_v49, %v4651_v5  ;;  %v4971_v63 = vunpack.i.h.bf16 %v4969_v59  ;;  %v4970_v14 = vunpack.i.l.bf16 %v4969_v59 }
 0x24a   : > { %4268 = vmatmul.msk.bf16.gmra.mxu0 %vm1999_vm11, %v1970_v50  ;;  %v1862_v26 = vsel %vm1831_vm8, %v1829_v12, %v4730_v51  ;;  %v1863_v41 = vsel %vm1831_vm8, %v1830_v11, %v4731_v52  ;;  %v4972_v34 = vpack.i.bf16 %v2310_v45, %v2309_v61 }
 0x24b   : > { %v1895_v21 = vsel %vm1864_vm7, %v1862_v26, %v4810_v7  ;;  %v1896_v15 = vsel %vm1864_vm7, %v1863_v41, %v4811_v36 }
 0x24c   : > { %v1928_v13 = vsel %vm1897_vm9, %v1895_v21, %v4890_v0  ;;  %v1929_v23 = vsel %vm1897_vm9, %v1896_v15, %v4891_v33  ;;  %4973 = vrot.lane.b32.xlu2 %v4972_v34, %s5644_s30 }
 0x24d   : > { %v1961_v38 = vsel %vm1930_vm10, %v1928_v13, %v4970_v14  ;;  %v1962_v9 = vsel %vm1930_vm10, %v1929_v23, %v4971_v63 }
 0x24e   : > { %v1978_v44 = vpack.c.bf16 %v1962_v9, %v1961_v38 }
 0x251   : > { %4275 = vmatmul.msk.bf16.gmra.mxu2 %vm1999_vm11, %v1977_v4 }
 0x257   : > { %v2061_v39 = vpop.f32.mrf.mxu0 }
 0x258   : > { %v2145_v10 = vmul.f32 %v7087_v19, %v2061_v39 }
 0x25a   : > { %v2181_v8 = vadd.f32 %v7096_v62, %v2145_v10 }
 0x25c   : > { %v2213_v22 = vmax.f32 %v2181_v8, 0.0 }
 0x25e   : > { %2245 = vst.msk [vmem:[#allocation2 + $0x19] sm:$0xff] %vm280_vm0, %v2213_v22 }
 0x25f   : > { %v2063_v58 = vpop.f32.mrf.mxu0 }
 0x260   : > { %v2146_v48 = vmul.f32 %v7087_v19, %v2063_v58 }
 0x261   : > { %4276 = vmatmul.msk.bf16.gmra.mxu2 %vm1999_vm11, %v1978_v44 }
 0x262   : > { %v2182_v6 = vadd.f32 %v7096_v62, %v2146_v48 }
 0x264   : > { %v2214_v18 = vmax.f32 %v2182_v6, 0.0 }
 0x265   : > { %v2311_v29 = vld [vmem:[#allocation2 + $0x19] sm:$0xff] }
 0x266   : > { %2246 = vst.msk [vmem:[#allocation2 + $0x21] sm:$0xff] %vm280_vm0, %v2214_v18 }
 0x267   : > { %v2066_v30 = vpop.f32.mrf.mxu0 }
 0x268   : > { %v2147_v55 = vmul.f32 %v7087_v19, %v2066_v30 }
 0x26a   : > { %v2183_v47 = vadd.f32 %v7096_v62, %v2147_v55 }
 0x26c   : > { %v2215_v60 = vmax.f32 %v2183_v47, 0.0 }
 0x26d   : > { %v2312_v50 = vld [vmem:[#allocation2 + $0x21] sm:$0xff] }
 0x26e   : > { %2247 = vst.msk [vmem:[#allocation2 + $0x31] sm:$0xff] %vm280_vm0, %v2215_v60  ;;  %v7115_v20 = vpack.i.bf16 %v2312_v50, %v2311_v29 }
 0x26f   : > { %v2068_v1 = vpop.f32.mrf.mxu0 }
 0x270   : > { %v2148_v4 = vmul.f32 %v7087_v19, %v2068_v1  ;;  %4978 = vrot.lane.b32.xlu0 %v7115_v20, %s5644_s30 }
 0x272   : > { %v2184_v17 = vadd.f32 %v7096_v62, %v2148_v4 }
 0x274   : > { %v2101_v31 = vpop.f32.mrf.mxu2  ;;  %v2216_v27 = vmax.f32 %v2184_v17, 0.0 }
 0x275   : > { %v2161_v57 = vmul.f32 %v7087_v19, %v2101_v31  ;;  %v2313_v54 = vld [vmem:[#allocation2 + $0x31] sm:$0xff] }
 0x276   : > { %2248 = vst.msk [vmem:[#allocation2 + $0x39] sm:$0xff] %vm280_vm0, %v2216_v27 }
 0x277   : > { %v2197_v56 = vadd.f32 %v7096_v62, %v2161_v57  ;;  %v2071_v32 = vpop.f32.mrf.mxu0 }
 0x278   : > { %v2149_v53 = vmul.f32 %v7087_v19, %v2071_v32 }
 0x279   : > { %v2229_v46 = vmax.f32 %v2197_v56, 0.0 }
 0x27a   : > { %v2185_v43 = vadd.f32 %v7096_v62, %v2149_v53 }
 0x27b   : > { %2261 = vst.msk [vmem:[#allocation2 + $0xd9] sm:$0xff] %vm280_vm0, %v2229_v46 }
 0x27c   : > { %v2103_v37 = vpop.f32.mrf.mxu2  ;;  %v2217_v35 = vmax.f32 %v2185_v43, 0.0 }
 0x27d   : > { %v2162_v5 = vmul.f32 %v7087_v19, %v2103_v37  ;;  %v2314_v24 = vld [vmem:[#allocation2 + $0x39] sm:$0xff] }
 0x27e   : > { %2249 = vst.msk [vmem:[#allocation2 + $0x49] sm:$0xff] %vm280_vm0, %v2217_v35  ;;  %v7130_v16 = vpack.i.bf16 %v2314_v24, %v2313_v54 }
 0x27f   : > { %v2198_v2 = vadd.f32 %v7096_v62, %v2162_v5  ;;  %v2073_v52 = vpop.f32.mrf.mxu0 }
 0x280   : > { %v2150_v51 = vmul.f32 %v7087_v19, %v2073_v52  ;;  %4983 = vrot.lane.b32.xlu1 %v7130_v16, %s5644_s30 }
 0x281   : > { %v2230_v28 = vmax.f32 %v2198_v2, 0.0 }
 0x282   : > { %v2186_v42 = vadd.f32 %v7096_v62, %v2150_v51  ;;  %v2327_v22 = vld [vmem:[#allocation2 + $0xd9] sm:$0xff] }
 0x283   : > { %2262 = vst.msk [vmem:[#allocation2 + $0xe1] sm:$0xff] %vm280_vm0, %v2230_v28 }
 0x284   : > { %v2106_v59 = vpop.f32.mrf.mxu2  ;;  %v2218_v3 = vmax.f32 %v2186_v42, 0.0 }
 0x285   : > { %v2163_v40 = vmul.f32 %v7087_v19, %v2106_v59  ;;  %v2315_v14 = vld [vmem:[#allocation2 + $0x49] sm:$0xff] }
 0x286   : > { %2250 = vst.msk [vmem:[#allocation2 + $0x51] sm:$0xff] %vm280_vm0, %v2218_v3 }
 0x287   : > { %v2199_v36 = vadd.f32 %v7096_v62, %v2163_v40  ;;  %v2076_v25 = vpop.f32.mrf.mxu0 }
 0x288   : > { %v2151_v49 = vmul.f32 %v7087_v19, %v2076_v25 }
 0x289   : > { %v2231_v7 = vmax.f32 %v2199_v36, 0.0 }
 0x28a   : > { %v2187_v0 = vadd.f32 %v7096_v62, %v2151_v49  ;;  %v2328_v38 = vld [vmem:[#allocation2 + $0xe1] sm:$0xff] }
 0x28b   : > { %2263 = vst.msk [vmem:[#allocation2 + $0xf1] sm:$0xff] %vm280_vm0, %v2231_v7  ;;  %v7156_v58 = vpack.i.bf16 %v2328_v38, %v2327_v22 }
 0x28c   : > { %v2108_v33 = vpop.f32.mrf.mxu2  ;;  %v2219_v11 = vmax.f32 %v2187_v0, 0.0 }
 0x28d   : > { %v2164_v12 = vmul.f32 %v7087_v19, %v2108_v33  ;;  %v2316_v26 = vld [vmem:[#allocation2 + $0x51] sm:$0xff] }
 0x28e   : > { %2251 = vst.msk [vmem:[#allocation2 + $0x61] sm:$0xff] %vm280_vm0, %v2219_v11  ;;  %v7146_v21 = vpack.i.bf16 %v2316_v26, %v2315_v14 }
 0x28f   : > { %v2200_v63 = vadd.f32 %v7096_v62, %v2164_v12  ;;  %v2078_v15 = vpop.f32.mrf.mxu0 }
 0x290   : > { %v2152_v39 = vmul.f32 %v7087_v19, %v2078_v15  ;;  %4988 = vrot.lane.b32.xlu2 %v7146_v21, %s5644_s30 }
 0x291   : > { %v2232_v41 = vmax.f32 %v2200_v63, 0.0 }
 0x292   : > { %v2188_v23 = vadd.f32 %v7096_v62, %v2152_v39  ;;  %v2329_v46 = vld [vmem:[#allocation2 + $0xf1] sm:$0xff] }
 0x293   : > { %2264 = vst.msk [vmem:[#allocation2 + $0xf9] sm:$0xff] %vm280_vm0, %v2232_v41 }
 0x294   : > { %v2111_v13 = vpop.f32.mrf.mxu2  ;;  %v2220_v9 = vmax.f32 %v2188_v23, 0.0 }
 0x295   : > { %v2165_v10 = vmul.f32 %v7087_v19, %v2111_v13  ;;  %v2317_v34 = vld [vmem:[#allocation2 + $0x61] sm:$0xff] }
 0x296   : > { %2252 = vst.msk [vmem:[#allocation2 + $0x69] sm:$0xff] %vm280_vm0, %v2220_v9 }
 0x297   : > { %v2201_v8 = vadd.f32 %v7096_v62, %v2165_v10  ;;  %v2081_v48 = vpop.f32.mrf.mxu0 }
 0x298   : > { %v2153_v6 = vmul.f32 %v7087_v19, %v2081_v48  ;;  %5003 = vrot.lane.b32.xlu2 %v7156_v58, %s5644_s30 }
 0x299   : > { %v2233_v44 = vmax.f32 %v2201_v8, 0.0 }
 0x29a   : > { %v2189_v30 = vadd.f32 %v7096_v62, %v2153_v6  ;;  %v2330_v57 = vld [vmem:[#allocation2 + $0xf9] sm:$0xff] }
 0x29b   : > { %2265 = vst.msk [vmem:[#allocation2 + $0x109] sm:$0xff] %vm280_vm0, %v2233_v44  ;;  %v7176_v53 = vpack.i.bf16 %v2330_v57, %v2329_v46 }
 0x29c   : > { %v2113_v18 = vpop.f32.mrf.mxu2  ;;  %v2221_v45 = vmax.f32 %v2189_v30, 0.0 }
 0x29d   : > { %v2166_v61 = vmul.f32 %v7087_v19, %v2113_v18  ;;  %v2318_v47 = vld [vmem:[#allocation2 + $0x69] sm:$0xff] }
 0x29e   : > { %2253 = vst.msk [vmem:[#allocation2 + $0x79] sm:$0xff] %vm280_vm0, %v2221_v45  ;;  %v7166_v29 = vpack.i.bf16 %v2318_v47, %v2317_v34 }
 0x29f   : > { %v2202_v55 = vadd.f32 %v7096_v62, %v2166_v61  ;;  %v2083_v50 = vpop.f32.mrf.mxu0 }
 0x2a0   : > { %v2154_v1 = vmul.f32 %v7087_v19, %v2083_v50  ;;  %4993 = vrot.lane.b32.xlu0 %v7166_v29, %s5644_s30 }
 0x2a1   : > { %v2234_v60 = vmax.f32 %v2202_v55, 0.0 }
 0x2a2   : > { %v2190_v31 = vadd.f32 %v7096_v62, %v2154_v1  ;;  %v2331_v0 = vld [vmem:[#allocation2 + $0x109] sm:$0xff] }
 0x2a3   : > { %2266 = vst.msk [vmem:[#allocation2 + $0x111] sm:$0xff] %vm280_vm0, %v2234_v60 }
 0x2a4   : > { %v2116_v4 = vpop.f32.mrf.mxu2  ;;  %v2222_v27 = vmax.f32 %v2190_v31, 0.0 }
 0x2a5   : > { %v2167_v17 = vmul.f32 %v7087_v19, %v2116_v4  ;;  %v2319_v28 = vld [vmem:[#allocation2 + $0x79] sm:$0xff] }
 0x2a6   : > { %2254 = vst.msk [vmem:[#allocation2 + $0x81] sm:$0xff] %vm280_vm0, %v2222_v27  ;;  %v2345_v27 = vld [vmem:[#allocation2 + $0x32] sm:$0xff] }
 0x2a7   : > { %v2203_v56 = vadd.f32 %v7096_v62, %v2167_v17  ;;  %v2086_v37 = vpop.f32.mrf.mxu0 }
 0x2a8   : > { %v2155_v43 = vmul.f32 %v7087_v19, %v2086_v37  ;;  %5008 = vrot.lane.b32.xlu0 %v7176_v53, %s5644_s30 }
 0x2a9   : > { %v2235_v32 = vmax.f32 %v2203_v56, 0.0  ;;  %v2346_v56 = vld [vmem:[#allocation2 + $0x3a] sm:$0xff] }
 0x2aa   : > { %v2191_v35 = vadd.f32 %v7096_v62, %v2155_v43  ;;  %v2332_v25 = vld [vmem:[#allocation2 + $0x111] sm:$0xff] }
 0x2ab   : > { %2267 = vst.msk [vmem:[#allocation2 + $0x121] sm:$0xff] %vm280_vm0, %v2235_v32  ;;  %v7196_v11 = vpack.i.bf16 %v2332_v25, %v2331_v0 }
 0x2ac   : > { %v2118_v5 = vpop.f32.mrf.mxu2  ;;  %v2223_v54 = vmax.f32 %v2191_v35, 0.0  ;;  %v7230_v35 = vpack.i.bf16 %v2346_v56, %v2345_v27 }
 0x2ad   : > { %v2168_v2 = vmul.f32 %v7087_v19, %v2118_v5  ;;  %v2320_v52 = vld [vmem:[#allocation2 + $0x81] sm:$0xff] }
 0x2ae   : > { %2255 = vst.msk [vmem:[#allocation2 + $0x91] sm:$0xff] %vm280_vm0, %v2223_v54  ;;  %v7186_v59 = vpack.i.bf16 %v2320_v52, %v2319_v28 }
 0x2af   : > { %v2204_v24 = vadd.f32 %v7096_v62, %v2168_v2  ;;  %v2088_v42 = vpop.f32.mrf.mxu0 }
 0x2b0   : > { %v2156_v40 = vmul.f32 %v7087_v19, %v2088_v42  ;;  %4998 = vrot.lane.b32.xlu1 %v7186_v59, %s5644_s30  ;;  %v2341_v42 = vld [vmem:[#allocation2 + $0x2] sm:$0xff] }
 0x2b1   : > { %v2236_v51 = vmax.f32 %v2204_v24, 0.0 }
 0x2b2   : > { %v2192_v36 = vadd.f32 %v7096_v62, %v2156_v40  ;;  %v2333_v45 = vld [vmem:[#allocation2 + $0x121] sm:$0xff]  ;;  %v2342_v40 = vld [vmem:[#allocation2 + $0xa] sm:$0xff] }
 0x2b3   : > { %2268 = vst.msk [vmem:[#allocation2 + $0x129] sm:$0xff] %vm280_vm0, %v2236_v51  ;;  %v5042_v25 = vpack.i.bf16 %v2342_v40, %v2341_v42 }
 0x2b4   : > { %v2121_v3 = vpop.f32.mrf.mxu2  ;;  %v2224_v49 = vmax.f32 %v2192_v36, 0.0 }
 0x2b5   : > { %v2169_v7 = vmul.f32 %v7087_v19, %v2121_v3  ;;  %v2321_v23 = vld [vmem:[#allocation2 + $0x91] sm:$0xff] }
 0x2b6   : > { %2256 = vst.msk [vmem:[#allocation2 + $0x99] sm:$0xff] %vm280_vm0, %v2224_v49 }
 0x2b7   : > { %v2205_v33 = vadd.f32 %v7096_v62, %v2169_v7  ;;  %v2091_v63 = vpop.f32.mrf.mxu0 }
 0x2b8   : > { %v2157_v14 = vmul.f32 %v7087_v19, %v2091_v63  ;;  %5013 = vrot.lane.b32.xlu1 %v7196_v11, %s5644_s30 }
 0x2b9   : > { %v2237_v12 = vmax.f32 %v2205_v33, 0.0 }
 0x2ba   : > { %v2193_v41 = vadd.f32 %v7096_v62, %v2157_v14  ;;  %v2334_v18 = vld [vmem:[#allocation2 + $0x129] sm:$0xff] }
 0x2bb   : > { %2269 = vst.msk [vmem:[#allocation2 + $0x139] sm:$0xff] %vm280_vm0, %v2237_v12  ;;  %v7216_v34 = vpack.i.bf16 %v2334_v18, %v2333_v45 }
 0x2bc   : > { %v2123_v26 = vpop.f32.mrf.mxu2  ;;  %v2225_v39 = vmax.f32 %v2193_v41, 0.0  ;;  %v2344_v41 = vld [vmem:[#allocation2 + $0x22] sm:$0xff] }
 0x2bd   : > { %v2170_v15 = vmul.f32 %v7087_v19, %v2123_v26  ;;  %v2322_v10 = vld [vmem:[#allocation2 + $0x99] sm:$0xff] }
 0x2be   : > { %2257 = vst.msk [vmem:[#allocation2 + $0xa9] sm:$0xff] %vm280_vm0, %v2225_v39  ;;  %v7206_v9 = vpack.i.bf16 %v2322_v10, %v2321_v23  ;;  %v2343_v26 = vld [vmem:[#allocation2 + $0x1a] sm:$0xff]  ;;  %v2348_v39 = vld [vmem:[#allocation2 + $0x52] sm:$0xff] }
 0x2bf   : > { %v2206_v13 = vadd.f32 %v7096_v62, %v2170_v15  ;;  %v2093_v8 = vpop.f32.mrf.mxu0  ;;  %v2347_v15 = vld [vmem:[#allocation2 + $0x4a] sm:$0xff]  ;;  %v7253_v23 = vpack.i.bf16 %v2344_v41, %v2343_v26  ;;  %v2353_v18 = vld [vmem:[#allocation2 + $0x92] sm:$0xff] }
 0x2c0   : > { %v2158_v22 = vmul.f32 %v7087_v19, %v2093_v8  ;;  %5018 = vrot.lane.b32.xlu2 %v7206_v9, %s5644_s30  ;;  %v7255_v10 = vpack.i.bf16 %v2348_v39, %v2347_v15 }
 0x2c1   : > { %v2238_v38 = vmax.f32 %v2206_v13, 0.0 }
 0x2c2   : > { %v2194_v48 = vadd.f32 %v7096_v62, %v2158_v22  ;;  %v2335_v60 = vld [vmem:[#allocation2 + $0x139] sm:$0xff] }
 0x2c3   : > { %2270 = vst.msk [vmem:[#allocation2 + $0x141] sm:$0xff] %vm280_vm0, %v2238_v38 }
 0x2c4   : > { %v2126_v44 = vpop.f32.mrf.mxu2  ;;  %v2226_v30 = vmax.f32 %v2194_v48, 0.0  ;;  %v2350_v48 = vld [vmem:[#allocation2 + $0x6a] sm:$0xff] }
 0x2c5   : > { %v2171_v6 = vmul.f32 %v7087_v19, %v2126_v44  ;;  %v2323_v37 = vld [vmem:[#allocation2 + $0xa9] sm:$0xff] }
 0x2c6   : > { %2258 = vst.msk [vmem:[#allocation2 + $0xb1] sm:$0xff] %vm280_vm0, %v2226_v30  ;;  %v2349_v44 = vld [vmem:[#allocation2 + $0x62] sm:$0xff]  ;;  %v2354_v30 = vld [vmem:[#allocation2 + $0x9a] sm:$0xff] }
 0x2c7   : > { %v2207_v61 = vadd.f32 %v7096_v62, %v2171_v6  ;;  %v2096_v47 = vpop.f32.mrf.mxu0 }
 0x2c8   : > { %v2159_v1 = vmul.f32 %v7087_v19, %v2096_v47  ;;  %5023 = vrot.lane.b32.xlu2 %v7216_v34, %s5644_s30 }
 0x2c9   : > { %v2239_v55 = vmax.f32 %v2207_v61, 0.0 }
 0x2ca   : > { %v2336_v50 = vld [vmem:[#allocation2 + $0x141] sm:$0xff]  ;;  %v2195_v17 = vadd.f32 %v7096_v62, %v2159_v1 }
 0x2cb   : > { %2271 = vst.msk [vmem:[#allocation2 + $0x151] sm:$0xff] %vm280_vm0, %v2239_v55  ;;  %v7220_v4 = vpack.i.bf16 %v2336_v50, %v2335_v60  ;;  %v7264_v55 = vpack.i.bf16 %v2350_v48, %v2349_v44  ;;  %v7268_v50 = vpack.i.bf16 %v2354_v30, %v2353_v18  ;;  %v2367_v15 = vld [vmem:[#allocation2 + $0x13a] sm:$0xff] }
 0x2cc   : > { %v2128_v31 = vpop.f32.mrf.mxu2  ;;  %v2227_v46 = vmax.f32 %v2195_v17, 0.0  ;;  %v2351_v17 = vld [vmem:[#allocation2 + $0x7a] sm:$0xff] }
 0x2cd   : > { %v2172_v57 = vmul.f32 %v7087_v19, %v2128_v31  ;;  %5028 = vrot.lane.b32.xlu0 %v7220_v4, %s5644_s30  ;;  %v2324_v43 = vld [vmem:[#allocation2 + $0xb1] sm:$0xff]  ;;  %v7331_v30 = vld [vmem:[#allocation2 + $0x20] sm:$0xff] }
 0x2ce   : > { %2259 = vst.msk [vmem:[#allocation2 + $0xc1] sm:$0xff] %vm280_vm0, %v2227_v46  ;;  %v7232_v2 = vpack.i.bf16 %v2324_v43, %v2323_v37  ;;  %v2359_v46 = vld [vmem:[#allocation2 + $0xda] sm:$0xff] }
 0x2cf   : > { %v2208_v32 = vadd.f32 %v7096_v62, %v2172_v57  ;;  %v2098_v54 = vpop.f32.mrf.mxu0  ;;  %v2352_v57 = vld [vmem:[#allocation2 + $0x82] sm:$0xff] }
 0x2d0   : > { %v2160_v24 = vmul.f32 %v7087_v19, %v2098_v54  ;;  %5053 = vrot.lane.b32.xlu2 %v7230_v35, %s5645_s8 }
 0x2d1   : > { %v2240_v5 = vmax.f32 %v2208_v32, 0.0  ;;  %v2360_v32 = vld [vmem:[#allocation2 + $0xe2] sm:$0xff] }
 0x2d2   : > { %v2196_v52 = vadd.f32 %v7096_v62, %v2160_v24  ;;  %v2337_v49 = vld [vmem:[#allocation2 + $0x151] sm:$0xff] }
 0x2d3   : > { %2272 = vst.msk [vmem:[#allocation2 + $0x159] sm:$0xff] %vm280_vm0, %v2240_v5  ;;  %v7283_v5 = vpack.i.bf16 %v2360_v32, %v2359_v46  ;;  %v7351_v46 = vld [vmem:[#allocation2 + $0x68] sm:$0xff]  ;;  %v7353_v32 = vld [vmem:[#allocation2 + $0x80] sm:$0xff] }
 0x2d4   : > { %v2131_v28 = vpop.f32.mrf.mxu2  ;;  %v2228_v3 = vmax.f32 %v2196_v52, 0.0  ;;  %v2365_v52 = vld [vmem:[#allocation2 + $0x122] sm:$0xff] }
 0x2d5   : > { %v2173_v51 = vmul.f32 %v7087_v19, %v2131_v28  ;;  %5038 = vrot.lane.b32.xlu0 %v7232_v2, %s5644_s30  ;;  %v2325_v37 = vld [vmem:[#allocation2 + $0xc1] sm:$0xff]  ;;  %8751 = vst [vmem:[#allocation33_spill] sm:$0xff] %v7283_v5  ;;  %v2356_v28 = vld [vmem:[#allocation2 + $0xb2] sm:$0xff] }
 0x2d6   : > { %2260 = vst.msk [vmem:[#allocation2 + $0xc9] sm:$0xff] %vm280_vm0, %v2228_v3 }
 0x2d7   : > { %v2209_v36 = vadd.f32 %v7096_v62, %v2173_v51  ;;  %v2366_v51 = vld [vmem:[#allocation2 + $0x12a] sm:$0xff] }
 0x2d8   : > { %v7295_v3 = vpack.i.bf16 %v2366_v51, %v2365_v52 }
 0x2d9   : > { %v2241_v7 = vmax.f32 %v2209_v36, 0.0  ;;  %v2361_v36 = vld [vmem:[#allocation2 + $0xf2] sm:$0xff] }
 0x2da   : > { %v2338_v33 = vld [vmem:[#allocation2 + $0x159] sm:$0xff]  ;;  %8753 = vst [vmem:[#allocation40_spill] sm:$0xff] %v7295_v3 }
 0x2db   : > { %2273 = vst.msk [vmem:[#allocation2 + $0x169] sm:$0xff] %vm280_vm0, %v2241_v7  ;;  %v7245_v0 = vpack.i.bf16 %v2338_v33, %v2337_v49  ;;  %v2363_v7 = vld [vmem:[#allocation2 + $0x10a] sm:$0xff]  ;;  %v2362_v49 = vld [vmem:[#allocation2 + $0xfa] sm:$0xff]  ;;  %v7303_v33 = vpop.permute.xlu2 %4973  ;;  %v2369_v39 = vld [vmem:[#allocation2 + $0x152] sm:$0xff] }
 0x2dc   : > { %v2133_v12 = vpop.f32.mrf.mxu2  ;;  %v7307_v26 = vpack.i.bf16 %v2362_v49, %v2361_v36  ;;  %v7381_v49 = vld [vmem:[#allocation2 + $0x128] sm:$0xff] }
 0x2dd   : > { %v2174_v63 = vmul.f32 %v7087_v19, %v2133_v12  ;;  %5033 = vrot.lane.b32.xlu1 %v7245_v0, %s5644_s30  ;;  %5043 = vrot.lane.b32.xlu0 %v5042_v25, %s5645_s8  ;;  %v2326_v27 = vld [vmem:[#allocation2 + $0xc9] sm:$0xff]  ;;  %v2364_v25 = vld [vmem:[#allocation2 + $0x112] sm:$0xff] }
 0x2de   : > { %v7281_v43 = vpack.i.bf16 %v2326_v27, %v2325_v37  ;;  %v2357_v54 = vld [vmem:[#allocation2 + $0xc2] sm:$0xff]  ;;  %v2358_v24 = vld [vmem:[#allocation2 + $0xca] sm:$0xff]  ;;  %8755 = vst [vmem:[#allocation71_spill] sm:$0xff] %v7307_v26 }
 0x2df   : > { %v2210_v14 = vadd.f32 %v7096_v62, %v2174_v63  ;;  %v7291_v42 = vpack.i.bf16 %v2358_v24, %v2357_v54  ;;  %v7355_v37 = vld [vmem:[#allocation2 + $0xe0] sm:$0xff]  ;;  %v7359_v54 = vld [vmem:[#allocation2 + $0x78] sm:$0xff] }
 0x2e0   : > { %v7361_v24 = vld [vmem:[#allocation2 + $0xd8] sm:$0xff] }
 0x2e1   : > { %v2242_v13 = vmax.f32 %v2210_v14, 0.0  ;;  %8752 = vst [vmem:[#allocation34_spill] sm:$0xff] %v7291_v42  ;;  %v7305_v14 = vpack.i.bf16 %v2364_v25, %v2363_v7  ;;  %v5172_v51 = vpack.i.bf16 %v7355_v37, %v7361_v24  ;;  %v7377_v7 = vld [vmem:[#allocation2 + $0xc8] sm:$0xff]  ;;  %v7379_v25 = vld [vmem:[#allocation2 + $0xb0] sm:$0xff] }
 0x2e2   : > { %v2339_v61 = vld [vmem:[#allocation2 + $0x169] sm:$0xff] }
 0x2e3   : > { %2274 = vst.msk [vmem:[#allocation2 + $0x171] sm:$0xff] %vm280_vm0, %v2242_v13  ;;  %v2370_v13 = vld [vmem:[#allocation2 + $0x15a] sm:$0xff] }
 0x2e4   : > { %v2136_v38 = vpop.f32.mrf.mxu2  ;;  %8754 = vst [vmem:[#allocation39_spill] sm:$0xff] %v7305_v14  ;;  %v7320_v48 = vpack.i.bf16 %v2370_v13, %v2369_v39 }
 0x2e5   : > { %v2175_v8 = vmul.f32 %v7087_v19, %v2136_v38  ;;  %5048 = vrot.lane.b32.xlu1 %v7253_v23, %s5645_s8  ;;  %5058 = vrot.lane.b32.xlu0 %v7255_v10, %s5645_s8  ;;  %v2368_v38 = vld [vmem:[#allocation2 + $0x142] sm:$0xff] }
 0x2e6   : > { %8756 = vst [vmem:[#allocation78_spill] sm:$0xff] %v7320_v48 }
 0x2e7   : > { %v2211_v22 = vadd.f32 %v7096_v62, %v2175_v8  ;;  %v7314_v8 = vld [vmem:[#allocation2 + $0x50] sm:$0xff] }
 0x2e9   : > { %v2243_v6 = vmax.f32 %v2211_v22, 0.0  ;;  %v7316_v22 = vld [vmem:[#allocation2 + $0x48] sm:$0xff] }
 0x2ea   : > { %v2340_v45 = vld [vmem:[#allocation2 + $0x171] sm:$0xff]  ;;  %v7318_v44 = vpop.permute.xlu2 %4988  ;;  %v5142_v18 = vpack.i.bf16 %v7314_v8, %v7316_v22 }
 0x2eb   : > { %2275 = vst.msk [vmem:[#allocation2 + $0x181] sm:$0xff] %vm280_vm0, %v2243_v6  ;;  %v7266_v47 = vpack.i.bf16 %v2340_v45, %v2339_v61  ;;  %v2371_v12 = vld [vmem:[#allocation2 + $0x16a] sm:$0xff]  ;;  %v2372_v63 = vld [vmem:[#allocation2 + $0x172] sm:$0xff]  ;;  %v7322_v6 = vpack.i.bf16 %v2368_v38, %v2367_v15  ;;  %v7397_v38 = vpop.permute.xlu0 %4978 }
 0x2ec   : > { %v2138_v60 = vpop.f32.mrf.mxu2  ;;  %v5127_v41 = vpack.i.bf16 %v2372_v63, %v2371_v12  ;;  %v2282_v61 = vld [vmem:[#allocation2 + $0x38] sm:$0xff]  ;;  %v7383_v12 = vld [vmem:[#allocation2 + $0xc0] sm:$0xff]  ;;  %v7385_v63 = vld [vmem:[#allocation2 + $0xa8] sm:$0xff] }
 0x2ed   : > { %v2176_v1 = vmul.f32 %v7087_v19, %v2138_v60  ;;  %5063 = vrot.lane.b32.xlu1 %v7264_v55, %s5645_s8  ;;  %5068 = vrot.lane.b32.xlu2 %v7266_v47, %s5644_s30  ;;  %v7279_v19 = vpack.i.bf16 %v2352_v57, %v2351_v17  ;;  %8757 = vst [vmem:[#allocation85_spill] sm:$0xff] %v7322_v6  ;;  %v7333_v45 = vld [vmem:[#allocation2 + $0x98] sm:$0xff] }
 0x2ee   : > { %5078 = vrot.lane.b32.xlu0 %v7268_v50, %s5645_s8  ;;  %v7335_v60 = vld [vmem:[#allocation2 + $0x18] sm:$0xff]  ;;  %v5167_v15 = vpack.i.bf16 %v7377_v7, %v7383_v12  ;;  %v5162_v39 = vpack.i.bf16 %v7379_v25, %v7385_v63 }
 0x2ef   : > { %v2212_v31 = vadd.f32 %v7096_v62, %v2176_v1  ;;  %8750 = vst [vmem:[#allocation35_spill] sm:$0xff] %v7279_v19  ;;  %v2355_v62 = vld [vmem:[#allocation2 + $0xaa] sm:$0xff]  ;;  %v5132_v57 = vpack.i.bf16 %v7331_v30, %v7335_v60 }
 0x2f0   : > { %v7293_v40 = vpack.i.bf16 %v2356_v28, %v2355_v62  ;;  %v2281_v1 = vld [vmem:[#allocation2 + $0x30] sm:$0xff]  ;;  %v7357_v62 = vld [vmem:[#allocation2 + $0x60] sm:$0xff]  ;;  %v5152_v28 = vpack.i.bf16 %v7353_v32, %v7359_v54 }
 0x2f1   : > { %v2244_v56 = vmax.f32 %v2212_v31, 0.0  ;;  %v7337_v31 = vld [vmem:[#allocation2 + $0x90] sm:$0xff]  ;;  %v7339_v17 = vpack.i.bf16 %v2282_v61, %v2281_v1  ;;  %v7367_v52 = vpack.i.bf16 %v7351_v46, %v7357_v62 }
 0x2f2   : > { %v5157_v27 = vpack.i.bf16 %v7333_v45, %v7337_v31 }
 0x2f3   : > { %2276 = vst.msk [vmem:[#allocation2 + $0x189] sm:$0xff] %vm280_vm0, %v2244_v56  ;;  %v7345_v56 = vpop.permute.xlu2 %5003 }
 0x2f4   : > { %8758 = vst [vmem:[#allocation97_spill] sm:$0xff] %v7339_v17 }
 0x2f5   : > { %5073 = vrot.lane.b32.xlu2 %v7279_v19, %s5645_s8  ;;  %5083 = vrot.lane.b32.xlu1 %v7281_v43, %s5644_s30  ;;  %8759 = vst [vmem:[#allocation77_spill] sm:$0xff] %v7367_v52  ;;  %v7448_v19 = vld [vmem:[#allocation2 + $0x138] sm:$0xff] }
 0x2f6   : > { %5098 = vrot.lane.b32.xlu0 %v7283_v5, %s5645_s8  ;;  %8770 = vst [vmem:[#allocation66_spill] sm:$0xff] %v7448_v19 }
 0x2fd   : > { %5093 = vrot.lane.b32.xlu2 %v7291_v42, %s5645_s8  ;;  %5088 = vrot.lane.b32.xlu1 %v7293_v40, %s5645_s8 }
 0x2fe   : > { %5113 = vrot.lane.b32.xlu0 %v7295_v3, %s5645_s8 }
 0x305   : > { %5108 = vrot.lane.b32.xlu2 %v7305_v14, %s5645_s8  ;;  %5103 = vrot.lane.b32.xlu1 %v7307_v26, %s5645_s8  ;;  %v7415_v14 = vld [vmem:[#allocation2 + $0x168] sm:$0xff] }
 0x306   : > { %5128 = vrot.lane.b32.xlu0 %v5127_v41, %s5645_s8  ;;  %v7387_v41 = vld [vmem:[#allocation2 + $0x120] sm:$0xff]  ;;  %8764 = vst [vmem:[#allocation52_spill] sm:$0xff] %v7415_v14 }
 0x307   : > { %v7395_v13 = vpack.i.bf16 %v7381_v49, %v7387_v41 }
 0x309   : > { %8760 = vst [vmem:[#allocation92_spill] sm:$0xff] %v7395_v13 }
 0x30d   : > { %5123 = vrot.lane.b32.xlu2 %v7320_v48, %s5645_s8  ;;  %5118 = vrot.lane.b32.xlu1 %v7322_v6, %s5645_s8 }
 0x30e   : > { %5143 = vrot.lane.b32.xlu0 %v5142_v18, %s5646_s9 }
 0x312   : > { %v7427_v6 = vpop.permute.xlu0 %4993 }
 0x315   : > { %5138 = vrot.lane.b32.xlu2 %v7339_v17, %s5646_s9  ;;  %5133 = vrot.lane.b32.xlu1 %v5132_v57, %s5646_s9  ;;  %v4984_v57 = vpop.permute.xlu1 %4983  ;;  %v7413_v17 = vld [vmem:[#allocation2 + $0x108] sm:$0xff] }
 0x316   : > { %5158 = vrot.lane.b32.xlu0 %v5157_v27, %s5646_s9  ;;  %v7405_v27 = vld [vmem:[#allocation2 + $0xf8] sm:$0xff]  ;;  %v4986_v48 = vunpack.i.h.bf16 %v4984_v57 }
 0x317   : > { %8761 = vst [vmem:[#allocation102_spill] sm:$0xff] %v7405_v27 }
 0x31a   : > { %v7374_v36 = vpop.permute.xlu2 %5018 }
 0x31d   : > { %5153 = vrot.lane.b32.xlu2 %v5152_v28, %s5646_s9  ;;  %5148 = vrot.lane.b32.xlu1 %v7367_v52, %s5646_s9  ;;  %v7407_v28 = vld [vmem:[#allocation2 + $0x110] sm:$0xff] }
 0x31e   : > { %5173 = vrot.lane.b32.xlu0 %v5172_v51, %s5646_s9  ;;  %v7409_v51 = vld [vmem:[#allocation2 + $0x170] sm:$0xff] }
 0x31f   : > { %8762 = vst [vmem:[#allocation38_spill] sm:$0xff] %v7409_v51  ;;  %v7411_v52 = vld [vmem:[#allocation2 + $0xf0] sm:$0xff]  ;;  %v5202_v3 = vpack.i.bf16 %v7409_v51, %v7415_v14  ;;  %v7442_v51 = vld [vmem:[#allocation2 + $0x158] sm:$0xff] }
 0x320   : > { %8763 = vst [vmem:[#allocation44_spill] sm:$0xff] %v7411_v52 }
 0x322   : > { %v7401_v18 = vpop.permute.xlu2 %5023 }
 0x325   : > { %5168 = vrot.lane.b32.xlu2 %v5167_v15, %s5646_s9  ;;  %5163 = vrot.lane.b32.xlu1 %v5162_v39, %s5646_s9  ;;  %v4985_v15 = vunpack.i.l.bf16 %v4984_v57  ;;  %v7419_v39 = vpack.i.bf16 %v7407_v28, %v7413_v17 }
 0x326   : > { %5188 = vrot.lane.b32.xlu0 %v7395_v13, %s5646_s9  ;;  %v7423_v13 = vpack.i.bf16 %v7405_v27, %v7411_v52  ;;  %v3594_v52 = vsel %vm280_vm0, %v2282_v61, %v4986_v48 }
 0x327   : > { %8765 = vst [vmem:[#allocation41_spill] sm:$0xff] %v7419_v39  ;;  %v3593_v26 = vsel %vm280_vm0, %v2281_v1, %v4985_v15  ;;  %v4999_v1 = vpop.permute.xlu1 %4998 }
 0x328   : > { %8766 = vst [vmem:[#allocation58_spill] sm:$0xff] %v7423_v13 }
 0x32a   : > { %v5054_v57 = vpop.permute.xlu2 %5053 }
 0x32b   : > { %v5056_v42 = vunpack.i.h.bf16 %v5054_v57  ;;  %v5055_v5 = vunpack.i.l.bf16 %v5054_v57  ;;  %v5001_v57 = vunpack.i.h.bf16 %v4999_v1 }
 0x32d   : > { %5183 = vrot.lane.b32.xlu2 %v7419_v39, %s5646_s9  ;;  %5178 = vrot.lane.b32.xlu1 %v7423_v13, %s5646_s9  ;;  %v7437_v27 = vsel %vm1732_vm5, %v3594_v52, %v5056_v42  ;;  %v7440_v14 = vsel %vm1732_vm5, %v3593_v26, %v5055_v5  ;;  %v7444_v39 = vld [vmem:[#allocation2 + $0x140] sm:$0xff]  ;;  %v7446_v13 = vld [vmem:[#allocation2 + $0x150] sm:$0xff]  ;;  %v7464_v5 = vpop.permute.xlu0 %5008  ;;  %v2404_v42 = vld [vmem:[#allocation2 + $0x188] sm:$0xff] }
 0x32e   : > { %5203 = vrot.lane.b32.xlu0 %v5202_v3, %s5646_s9  ;;  %8767 = vst [vmem:[#allocation106_spill] sm:$0xff] %v7437_v27  ;;  %v7452_v3 = vpack.i.bf16 %v7442_v51, %v7446_v13  ;;  %v7456_v48 = vpack.i.bf16 %v7444_v39, %v7448_v19  ;;  %v2403_v26 = vld [vmem:[#allocation2 + $0x180] sm:$0xff] }
 0x32f   : > { %8768 = vst [vmem:[#allocation63_spill] sm:$0xff] %v7440_v14  ;;  %v5207_v61 = vpack.i.bf16 %v2404_v42, %v2403_v26  ;;  %v5000_v42 = vunpack.i.l.bf16 %v4999_v1 }
 0x330   : > { %8769 = vst [vmem:[#allocation105_spill] sm:$0xff] %v7444_v39 }
 0x331   : > { %8771 = vst [vmem:[#allocation67_spill] sm:$0xff] %v7452_v3 }
 0x332   : > { %8772 = vst [vmem:[#allocation72_spill] sm:$0xff] %v7456_v48 }
 0x335   : > { %5198 = vrot.lane.b32.xlu2 %v7452_v3, %s5646_s9  ;;  %5193 = vrot.lane.b32.xlu1 %v7456_v48, %s5646_s9 }
 0x336   : > { %5218 = vrot.lane.b32.xlu0 %v7130_v16, %s5647_s10  ;;  %v7477_v16 = vpop.permute.xlu1 %5013 }
 0x33d   : > { %5213 = vrot.lane.b32.xlu2 %v7115_v20, %s5647_s10  ;;  %5208 = vrot.lane.b32.xlu1 %v5207_v61, %s5646_s9 }
 0x33e   : > { %5233 = vrot.lane.b32.xlu0 %v7186_v59, %s5647_s10  ;;  %v2277_v59 = vld [vmem:[#allocation2] sm:$0xff] }
 0x33f   : > { %v7471_v52 = vpop.permute.xlu0 %5028 }
 0x345   : > { %5228 = vrot.lane.b32.xlu2 %v7166_v29, %s5647_s10  ;;  %5223 = vrot.lane.b32.xlu1 %v7146_v21, %s5647_s10  ;;  %v4976_v29 = vunpack.i.h.bf16 %v7303_v33  ;;  %v4975_v21 = vunpack.i.l.bf16 %v7303_v33 }
 0x346   : > { %5248 = vrot.lane.b32.xlu0 %v7281_v43, %s5647_s10  ;;  %v2278_v43 = vld [vmem:[#allocation2 + $0x8] sm:$0xff] }
 0x347   : > { %v7481_v15 = vpop.permute.xlu2 %5068  ;;  %v7483_v20 = vpop.permute.xlu0 %5038  ;;  %v3590_v33 = vsel %vm280_vm0, %v2278_v43, %v4976_v29  ;;  %v4996_v43 = vunpack.i.h.bf16 %v7427_v6 }
 0x34d   : > { %5243 = vrot.lane.b32.xlu2 %v7232_v2, %s5647_s10  ;;  %5238 = vrot.lane.b32.xlu1 %v7206_v9, %s5647_s10  ;;  %v3599_v2 = vsel %vm280_vm0, %v7359_v54, %v5000_v42  ;;  %v3600_v9 = vsel %vm280_vm0, %v7353_v32, %v5001_v57  ;;  %v4981_v32 = vunpack.i.h.bf16 %v7397_v38  ;;  %v4991_v57 = vunpack.i.h.bf16 %v7318_v44 }
 0x34e   : > { %5263 = vrot.lane.b32.xlu0 %v7196_v11, %s5647_s10  ;;  %v3589_v11 = vsel %vm280_vm0, %v2277_v59, %v4975_v21  ;;  %v4990_v42 = vunpack.i.l.bf16 %v7318_v44 }
 0x34f   : > { %v7493_v26 = vpop.permute.xlu1 %5033  ;;  %v5074_v61 = vpop.permute.xlu2 %5073 }
 0x350   : > { %v5076_v3 = vunpack.i.h.bf16 %v5074_v61  ;;  %v5075_v1 = vunpack.i.l.bf16 %v5074_v61  ;;  %v5044_v48 = vpop.permute.xlu0 %5043 }
 0x351   : > { %v5046_v14 = vunpack.i.h.bf16 %v5044_v48  ;;  %v5045_v27 = vunpack.i.l.bf16 %v5044_v48  ;;  %v4980_v48 = vunpack.i.l.bf16 %v7397_v38  ;;  %v3592_v38 = vsel %vm280_vm0, %v7331_v30, %v4981_v32  ;;  %v2435_v32 = vld [vmem:[#allocation2 + $0x181] sm:$0xff] }
 0x352   : > { %v7502_v19 = vsel %vm1732_vm5, %v3600_v9, %v5076_v3  ;;  %v7505_v39 = vsel %vm1732_vm5, %v3599_v2, %v5075_v1  ;;  %v4995_v1 = vunpack.i.l.bf16 %v7427_v6  ;;  %v5021_v2 = vunpack.i.h.bf16 %v7374_v36 }
 0x353   : > { %v7508_v61 = vsel %vm1732_vm5, %v3590_v33, %v5046_v14  ;;  %v7511_v54 = vsel %vm1732_vm5, %v3589_v11, %v5045_v27  ;;  %v3591_v3 = vsel %vm280_vm0, %v7335_v60, %v4980_v48  ;;  %v5020_v9 = vunpack.i.l.bf16 %v7374_v36  ;;  %v2436_v33 = vld [vmem:[#allocation2 + $0x189] sm:$0xff] }
 0x354   : > { %v5016_v11 = vunpack.i.h.bf16 %v7477_v16  ;;  %v5015_v6 = vunpack.i.l.bf16 %v7477_v16  ;;  %v5006_v36 = vunpack.i.h.bf16 %v7345_v56  ;;  %v5005_v48 = vunpack.i.l.bf16 %v7345_v56 }
 0x355   : > { %5258 = vrot.lane.b32.xlu2 %v7176_v53, %s5647_s10  ;;  %5253 = vrot.lane.b32.xlu1 %v7156_v58, %s5647_s10  ;;  %v3595_v53 = vsel %vm280_vm0, %v7316_v22, %v4990_v42  ;;  %v3596_v58 = vsel %vm280_vm0, %v7314_v8, %v4991_v57  ;;  %v7559_v57 = vpack.i.bf16 %v2436_v33, %v2435_v32 }
 0x356   : > { %5278 = vrot.lane.b32.xlu0 %v7245_v0, %s5647_s10  ;;  %v3597_v42 = vsel %vm280_vm0, %v7357_v62, %v4995_v1  ;;  %v3598_v16 = vsel %vm280_vm0, %v7351_v46, %v4996_v43  ;;  %v3611_v62 = vsel %vm280_vm0, %v7413_v17, %v5015_v6  ;;  %v3608_v1 = vsel %vm280_vm0, %v7355_v37, %v5006_v36 }
 0x357   : > { %v5049_v14 = vpop.permute.xlu1 %5048  ;;  %v7523_v27 = vpop.permute.xlu2 %5093 }
 0x358   : > { %v5051_v29 = vunpack.i.h.bf16 %v5049_v14  ;;  %v5050_v44 = vunpack.i.l.bf16 %v5049_v14  ;;  %v5059_v21 = vpop.permute.xlu0 %5058 }
 0x359   : > { %v5061_v59 = vunpack.i.h.bf16 %v5059_v21  ;;  %v5060_v0 = vunpack.i.l.bf16 %v5059_v21  ;;  %v3612_v21 = vsel %vm280_vm0, %v7407_v28, %v5016_v11  ;;  %v5035_v28 = vunpack.i.l.bf16 %v7493_v26 }
 0x35a   : > { %v7536_v60 = vsel %vm1732_vm5, %v3592_v38, %v5051_v29  ;;  %v7539_v30 = vsel %vm1732_vm5, %v3591_v3, %v5050_v44 }
 0x35b   : > { %v7544_v22 = vsel %vm1732_vm5, %v3596_v58, %v5061_v59  ;;  %v7547_v8 = vsel %vm1732_vm5, %v3595_v53, %v5060_v0  ;;  %v5036_v0 = vunpack.i.h.bf16 %v7493_v26  ;;  %v5026_v26 = vunpack.i.h.bf16 %v7401_v18 }
 0x35c   : > { %v3617_v11 = vsel %vm280_vm0, %v7446_v13, %v5035_v28 }
 0x35d   : > { %5273 = vrot.lane.b32.xlu2 %v7220_v4, %s5647_s10  ;;  %5268 = vrot.lane.b32.xlu1 %v7216_v34, %s5647_s10  ;;  %v3601_v4 = vsel %vm280_vm0, %v7337_v31, %v5020_v9  ;;  %v3602_v34 = vsel %vm280_vm0, %v7333_v45, %v5021_v2  ;;  %v3607_v2 = vsel %vm280_vm0, %v7361_v24, %v5005_v48  ;;  %v5025_v9 = vunpack.i.l.bf16 %v7401_v18 }
 0x35e   : > { %5293 = vrot.lane.b32.xlu0 %v7253_v23, %s5648_s11  ;;  %v3618_v33 = vsel %vm280_vm0, %v7442_v51, %v5036_v0  ;;  %v5096_v48 = vunpack.i.h.bf16 %v7523_v27 }
 0x35f   : > { %v5064_v14 = vpop.permute.xlu1 %5063  ;;  %v5109_v3 = vpop.permute.xlu2 %5108 }
 0x360   : > { %v5066_v56 = vunpack.i.h.bf16 %v5064_v14  ;;  %v5065_v38 = vunpack.i.l.bf16 %v5064_v14  ;;  %v5079_v29 = vpop.permute.xlu0 %5078  ;;  %v5111_v23 = vunpack.i.h.bf16 %v5109_v3  ;;  %v5110_v44 = vunpack.i.l.bf16 %v5109_v3 }
 0x361   : > { %v5081_v46 = vunpack.i.h.bf16 %v5079_v29  ;;  %v5080_v53 = vunpack.i.l.bf16 %v5079_v29  ;;  %v5040_v29 = vunpack.i.l.bf16 %v7483_v20 }
 0x362   : > { %v7574_v31 = vsel %vm1732_vm5, %v3598_v16, %v5066_v56  ;;  %v7577_v45 = vsel %vm1732_vm5, %v3597_v42, %v5065_v38  ;;  %v7580_v58 = vsel %vm1732_vm5, %v3612_v21, %v5111_v23  ;;  %v7583_v59 = vsel %vm1732_vm5, %v3611_v62, %v5110_v44 }
 0x363   : > { %v7588_v17 = vsel %vm1732_vm5, %v3602_v34, %v5081_v46  ;;  %v7591_v43 = vsel %vm1732_vm5, %v3601_v4, %v5080_v53  ;;  %v5041_v38 = vunpack.i.h.bf16 %v7483_v20 }
 0x365   : > { %5288 = vrot.lane.b32.xlu2 %v7559_v57, %s5647_s10  ;;  %5283 = vrot.lane.b32.xlu1 %v7266_v47, %s5647_s10 }
 0x366   : > { %5308 = vrot.lane.b32.xlu0 %v7264_v55, %s5648_s11  ;;  %v5095_v55 = vunpack.i.l.bf16 %v7523_v27 }
 0x367   : > { %v5124_v47 = vpop.permute.xlu2 %5123  ;;  %v5084_v6 = vpop.permute.xlu1 %5083 }
 0x368   : > { %v5099_v32 = vpop.permute.xlu0 %5098  ;;  %v5126_v37 = vunpack.i.h.bf16 %v5124_v47  ;;  %v5125_v36 = vunpack.i.l.bf16 %v5124_v47  ;;  %v5086_v42 = vunpack.i.h.bf16 %v5084_v6  ;;  %v5085_v24 = vunpack.i.l.bf16 %v5084_v6  ;;  %v8776_v47 = vld [vmem:[#allocation44_spill] sm:$0xff] }
 0x369   : > { %v5101_v16 = vunpack.i.h.bf16 %v5099_v32  ;;  %v5100_v4 = vunpack.i.l.bf16 %v5099_v32 }
 0x36a   : > { %v7612_v18 = vsel %vm1732_vm5, %v3618_v33, %v5126_v37  ;;  %v7615_v51 = vsel %vm1732_vm5, %v3617_v11, %v5125_v36  ;;  %v3605_v13 = vsel %vm280_vm0, %v7383_v12, %v5085_v24  ;;  %v3606_v34 = vsel %vm280_vm0, %v7377_v7, %v5086_v42  ;;  %v8774_v33 = vld [vmem:[#allocation71_spill] sm:$0xff] }
 0x36b   : > { %v7622_v14 = vsel %vm1732_vm5, %v3608_v1, %v5101_v16  ;;  %v7625_v3 = vsel %vm1732_vm5, %v3607_v2, %v5100_v4  ;;  %v7628_v27 = vsel %vm1732_vm5, %v3605_v13, %v5095_v55  ;;  %v7631_v56 = vsel %vm1732_vm5, %v3606_v34, %v5096_v48  ;;  %v8778_v16 = vld [vmem:[#allocation52_spill] sm:$0xff] }
 0x36c   : > { %v3614_v7 = vsel %vm280_vm0, %v7381_v49, %v5026_v26  ;;  %v3613_v12 = vsel %vm280_vm0, %v7387_v41, %v5025_v9  ;;  %v5011_v2 = vunpack.i.h.bf16 %v7464_v5  ;;  %v5070_v9 = vunpack.i.l.bf16 %v7481_v15 }
 0x36d   : > { %5303 = vrot.lane.b32.xlu2 %v7255_v10, %s5648_s11  ;;  %5298 = vrot.lane.b32.xlu1 %v7230_v35, %s5648_s11  ;;  %v3603_v10 = vsel %vm280_vm0, %v7385_v63, %v5040_v29  ;;  %v3604_v35 = vsel %vm280_vm0, %v7379_v25, %v5041_v38  ;;  %v5010_v63 = vunpack.i.l.bf16 %v7464_v5  ;;  %v8775_v5 = vld [vmem:[#allocation102_spill] sm:$0xff] }
 0x36e   : > { %5323 = vrot.lane.b32.xlu0 %v7293_v40, %s5648_s11  ;;  %v3610_v11 = vsel %vm280_vm0, %v8775_v5, %v5011_v2  ;;  %v3619_v4 = vsel %vm280_vm0, %v8778_v16, %v5070_v9 }
 0x36f   : > { %v5139_v23 = vpop.permute.xlu2 %5138  ;;  %v5089_v44 = vpop.permute.xlu1 %5088  ;;  %v3609_v6 = vsel %vm280_vm0, %v8776_v47, %v5010_v63  ;;  %v8782_v63 = vld [vmem:[#allocation105_spill] sm:$0xff] }
 0x370   : > { %v5114_v21 = vpop.permute.xlu0 %5113  ;;  %v5141_v62 = vunpack.i.h.bf16 %v5139_v23  ;;  %v5140_v20 = vunpack.i.l.bf16 %v5139_v23  ;;  %v5091_v46 = vunpack.i.h.bf16 %v5089_v44  ;;  %v5090_v53 = vunpack.i.l.bf16 %v5089_v44 }
 0x371   : > { %v5116_v40 = vunpack.i.h.bf16 %v5114_v21  ;;  %v5115_v0 = vunpack.i.l.bf16 %v5114_v21  ;;  %v5031_v21 = vunpack.i.h.bf16 %v7471_v52 }
 0x372   : > { %v7651_v49 = vsel %vm1765_vm4, %v7536_v60, %v5141_v62  ;;  %v7655_v41 = vsel %vm1765_vm4, %v7539_v30, %v5140_v20  ;;  %v3636_v28 = vsel %vm1732_vm5, %v3604_v35, %v5091_v46  ;;  %v3635_v1 = vsel %vm1732_vm5, %v3603_v10, %v5090_v53  ;;  %v8773_v30 = vld [vmem:[#allocation35_spill] sm:$0xff]  ;;  %v8781_v20 = vld [vmem:[#allocation85_spill] sm:$0xff] }
 0x373   : > { %v7662_v25 = vsel %vm1732_vm5, %v3614_v7, %v5116_v40  ;;  %v7665_v26 = vsel %vm1732_vm5, %v3613_v12, %v5115_v0  ;;  %v5071_v60 = vunpack.i.h.bf16 %v7481_v15  ;;  %v5030_v62 = vunpack.i.l.bf16 %v7471_v52  ;;  %v8783_v52 = vld [vmem:[#allocation66_spill] sm:$0xff] }
 0x375   : > { %5318 = vrot.lane.b32.xlu2 %v7268_v50, %s5648_s11  ;;  %5313 = vrot.lane.b32.xlu1 %v8773_v30, %s5648_s11  ;;  %v8777_v50 = vld [vmem:[#allocation38_spill] sm:$0xff]  ;;  %v3615_v9 = vsel %vm280_vm0, %v8783_v52, %v5030_v62 }
 0x376   : > { %5338 = vrot.lane.b32.xlu0 %v8774_v33, %s5648_s11  ;;  %v3620_v55 = vsel %vm280_vm0, %v8777_v50, %v5071_v60  ;;  %v3616_v60 = vsel %vm280_vm0, %v8782_v63, %v5031_v21  ;;  %v8788_v63 = vld [vmem:[#allocation58_spill] sm:$0xff] }
 0x377   : > { %v5154_v32 = vpop.permute.xlu2 %5153  ;;  %v5104_v37 = vpop.permute.xlu1 %5103 }
 0x378   : > { %v5129_v36 = vpop.permute.xlu0 %5128  ;;  %v5156_v42 = vunpack.i.h.bf16 %v5154_v32  ;;  %v5155_v15 = vunpack.i.l.bf16 %v5154_v32  ;;  %v5106_v24 = vunpack.i.h.bf16 %v5104_v37  ;;  %v5105_v48 = vunpack.i.l.bf16 %v5104_v37 }
 0x379   : > { %v5131_v13 = vunpack.i.h.bf16 %v5129_v36  ;;  %v5130_v34 = vunpack.i.l.bf16 %v5129_v36  ;;  %v8784_v36 = vld [vmem:[#allocation106_spill] sm:$0xff] }
 0x37a   : > { %v7685_v38 = vsel %vm1765_vm4, %v7574_v31, %v5156_v42  ;;  %v7689_v29 = vsel %vm1765_vm4, %v7577_v45, %v5155_v15  ;;  %v3642_v7 = vsel %vm1732_vm5, %v3610_v11, %v5106_v24  ;;  %v3641_v12 = vsel %vm1732_vm5, %v3609_v6, %v5105_v48  ;;  %v8779_v31 = vld [vmem:[#allocation33_spill] sm:$0xff]  ;;  %v8780_v45 = vld [vmem:[#allocation34_spill] sm:$0xff]  ;;  %v8785_v15 = vld [vmem:[#allocation63_spill] sm:$0xff] }
 0x37b   : > { %v7694_v23 = vsel %vm1732_vm5, %v3620_v55, %v5131_v13  ;;  %v7697_v44 = vsel %vm1732_vm5, %v3619_v4, %v5130_v34  ;;  %v2518_v11 = vld [vmem:[#allocation2 + $0xf9] sm:$0xff]  ;;  %v2517_v48 = vld [vmem:[#allocation2 + $0xf1] sm:$0xff] }
 0x37c   : > { %v5367_v50 = vpack.i.bf16 %v2518_v11, %v2517_v48  ;;  %v2520_v11 = vld [vmem:[#allocation2 + $0x111] sm:$0xff] }
 0x37d   : > { %5333 = vrot.lane.b32.xlu2 %v8779_v31, %s5648_s11  ;;  %5328 = vrot.lane.b32.xlu1 %v8780_v45, %s5648_s11 }
 0x37e   : > { %5353 = vrot.lane.b32.xlu0 %v8781_v20, %s5648_s11  ;;  %v2502_v20 = vld [vmem:[#allocation2 + $0x39] sm:$0xff] }
 0x37f   : > { %v5169_v46 = vpop.permute.xlu2 %5168  ;;  %v5119_v53 = vpop.permute.xlu1 %5118 }
 0x380   : > { %v5144_v10 = vpop.permute.xlu0 %5143  ;;  %v5171_v35 = vunpack.i.h.bf16 %v5169_v46  ;;  %v5170_v40 = vunpack.i.l.bf16 %v5169_v46  ;;  %v5121_v0 = vunpack.i.h.bf16 %v5119_v53  ;;  %v5120_v2 = vunpack.i.l.bf16 %v5119_v53 }
 0x381   : > { %v5146_v30 = vunpack.i.h.bf16 %v5144_v10  ;;  %v5145_v5 = vunpack.i.l.bf16 %v5144_v10 }
 0x382   : > { %v7712_v47 = vsel %vm1765_vm4, %v3635_v1, %v5170_v40  ;;  %v7715_v6 = vsel %vm1765_vm4, %v3636_v28, %v5171_v35  ;;  %v3648_v32 = vsel %vm1732_vm5, %v3616_v60, %v5121_v0  ;;  %v3647_v37 = vsel %vm1732_vm5, %v3615_v9, %v5120_v2  ;;  %v8786_v1 = vld [vmem:[#allocation40_spill] sm:$0xff]  ;;  %v8787_v28 = vld [vmem:[#allocation39_spill] sm:$0xff] }
 0x383   : > { %v7721_v42 = vsel %vm1765_vm4, %v8784_v36, %v5146_v30  ;;  %v7725_v24 = vsel %vm1765_vm4, %v8785_v15, %v5145_v5  ;;  %v2501_v2 = vld [vmem:[#allocation2 + $0x31] sm:$0xff] }
 0x385   : > { %5348 = vrot.lane.b32.xlu2 %v8786_v1, %s5648_s11  ;;  %5343 = vrot.lane.b32.xlu1 %v8787_v28, %s5648_s11 }
 0x386   : > { %5368 = vrot.lane.b32.xlu0 %v5367_v50, %s5650_s13 }
 0x387   : > { %v5184_v55 = vpop.permute.xlu2 %5183  ;;  %v5134_v16 = vpop.permute.xlu1 %5133 }
 0x388   : > { %v5159_v4 = vpop.permute.xlu0 %5158  ;;  %v5186_v13 = vunpack.i.h.bf16 %v5184_v55  ;;  %v5185_v34 = vunpack.i.l.bf16 %v5184_v55  ;;  %v5136_v21 = vunpack.i.h.bf16 %v5134_v16  ;;  %v5135_v62 = vunpack.i.l.bf16 %v5134_v16  ;;  %v2519_v16 = vld [vmem:[#allocation2 + $0x109] sm:$0xff] }
 0x389   : > { %v5161_v31 = vunpack.i.h.bf16 %v5159_v4  ;;  %v5160_v45 = vunpack.i.l.bf16 %v5159_v4  ;;  %v8790_v4 = vld [vmem:[#allocation97_spill] sm:$0xff] }
 0x38a   : > { %v7733_v46 = vsel %vm1765_vm4, %v3641_v12, %v5185_v34  ;;  %v7736_v53 = vsel %vm1765_vm4, %v3642_v7, %v5186_v13  ;;  %v3654_v10 = vsel %vm1765_vm4, %v7508_v61, %v5136_v21  ;;  %v3653_v35 = vsel %vm1765_vm4, %v7511_v54, %v5135_v62  ;;  %v8789_v7 = vld [vmem:[#allocation78_spill] sm:$0xff]  ;;  %v2533_v62 = vld [vmem:[#allocation2 + $0x32] sm:$0xff] }
 0x38b   : > { %v7744_v40 = vsel %vm1765_vm4, %v7502_v19, %v5161_v31  ;;  %v7748_v0 = vsel %vm1765_vm4, %v7505_v39, %v5160_v45  ;;  %v5382_v12 = vpack.i.bf16 %v2502_v20, %v2501_v2  ;;  %v2504_v20 = vld [vmem:[#allocation2 + $0x51] sm:$0xff] }
 0x38d   : > { %5363 = vrot.lane.b32.xlu2 %v8788_v63, %s5649_s12  ;;  %5358 = vrot.lane.b32.xlu1 %v8789_v7, %s5648_s11 }
 0x38e   : > { %5383 = vrot.lane.b32.xlu0 %v5382_v12, %s5650_s13 }
 0x38f   : > { %v5199_v61 = vpop.permute.xlu2 %5198  ;;  %v5149_v54 = vpop.permute.xlu1 %5148 }
 0x390   : > { %v5174_v60 = vpop.permute.xlu0 %5173  ;;  %v5201_v52 = vunpack.i.h.bf16 %v5199_v61  ;;  %v5200_v19 = vunpack.i.l.bf16 %v5199_v61  ;;  %v5151_v9 = vunpack.i.h.bf16 %v5149_v54  ;;  %v5150_v30 = vunpack.i.l.bf16 %v5149_v54  ;;  %v2503_v54 = vld [vmem:[#allocation2 + $0x49] sm:$0xff] }
 0x391   : > { %v5176_v5 = vunpack.i.h.bf16 %v5174_v60  ;;  %v5175_v39 = vunpack.i.l.bf16 %v5174_v60  ;;  %v5412_v60 = vpack.i.bf16 %v2504_v20, %v2503_v54  ;;  %v2506_v54 = vld [vmem:[#allocation2 + $0x69] sm:$0xff] }
 0x392   : > { %v7756_v36 = vsel %vm1765_vm4, %v3647_v37, %v5200_v19  ;;  %v7759_v15 = vsel %vm1765_vm4, %v3648_v32, %v5201_v52  ;;  %v3660_v48 = vsel %vm1765_vm4, %v7544_v22, %v5151_v9  ;;  %v3659_v50 = vsel %vm1765_vm4, %v7547_v8, %v5150_v30 }
 0x393   : > { %v7767_v1 = vsel %vm1765_vm4, %v7628_v27, %v5175_v39  ;;  %v7771_v55 = vsel %vm1765_vm4, %v7631_v56, %v5176_v5  ;;  %v5397_v37 = vpack.i.bf16 %v2520_v11, %v2519_v16  ;;  %v2534_v56 = vld [vmem:[#allocation2 + $0x3a] sm:$0xff]  ;;  %v2472_v5 = vld [vmem:[#allocation2 + $0x50] sm:$0xff] }
 0x394   : > { %v2522_v11 = vld [vmem:[#allocation2 + $0x129] sm:$0xff] }
 0x395   : > { %5378 = vrot.lane.b32.xlu2 %v8790_v4, %s5649_s12  ;;  %5373 = vrot.lane.b32.xlu1 %v8774_v33, %s5651_s14 }
 0x396   : > { %5398 = vrot.lane.b32.xlu0 %v5397_v37, %s5650_s13 }
 0x397   : > { %v5214_v22 = vpop.permute.xlu2 %5213  ;;  %v5164_v8 = vpop.permute.xlu1 %5163 }
 0x398   : > { %v5189_v32 = vpop.permute.xlu0 %5188  ;;  %v5216_v13 = vunpack.i.h.bf16 %v5214_v22  ;;  %v5215_v27 = vunpack.i.l.bf16 %v5214_v22  ;;  %v5166_v34 = vunpack.i.h.bf16 %v5164_v8  ;;  %v5165_v21 = vunpack.i.l.bf16 %v5164_v8  ;;  %v2471_v8 = vld [vmem:[#allocation2 + $0x48] sm:$0xff] }
 0x399   : > { %v5191_v31 = vunpack.i.h.bf16 %v5189_v32  ;;  %v5190_v45 = vunpack.i.l.bf16 %v5189_v32 }
 0x39a   : > { %v7779_v2 = vsel %vm1798_vm6, %v3653_v35, %v5215_v27  ;;  %v7782_v12 = vsel %vm1798_vm6, %v3654_v10, %v5216_v13  ;;  %v3666_v33 = vsel %vm1765_vm4, %v7588_v17, %v5166_v34  ;;  %v3665_v63 = vsel %vm1765_vm4, %v7591_v43, %v5165_v21  ;;  %v8791_v10 = vld [vmem:[#allocation41_spill] sm:$0xff] }
 0x39b   : > { %v7790_v7 = vsel %vm1765_vm4, %v7583_v59, %v5190_v45  ;;  %v7794_v61 = vsel %vm1765_vm4, %v7580_v58, %v5191_v31  ;;  %v5387_v35 = vpack.i.bf16 %v2534_v56, %v2533_v62  ;;  %v5407_v27 = vpack.i.bf16 %v2472_v5, %v2471_v8  ;;  %v2535_v31 = vld [vmem:[#allocation2 + $0x4a] sm:$0xff]  ;;  %v2524_v8 = vld [vmem:[#allocation2 + $0x141] sm:$0xff] }
 0x39d   : > { %5393 = vrot.lane.b32.xlu2 %v8791_v10, %s5649_s12  ;;  %5388 = vrot.lane.b32.xlu1 %v5387_v35, %s5651_s14 }
 0x39e   : > { %5413 = vrot.lane.b32.xlu0 %v5412_v60, %s5650_s13 }
 0x39f   : > { %v5229_v17 = vpop.permute.xlu2 %5228  ;;  %v5179_v43 = vpop.permute.xlu1 %5178 }
 0x3a0   : > { %v5204_v52 = vpop.permute.xlu0 %5203  ;;  %v5231_v19 = vunpack.i.h.bf16 %v5229_v17  ;;  %v5230_v59 = vunpack.i.l.bf16 %v5229_v17  ;;  %v5181_v9 = vunpack.i.h.bf16 %v5179_v43  ;;  %v5180_v30 = vunpack.i.l.bf16 %v5179_v43 }
 0x3a1   : > { %v5206_v58 = vunpack.i.h.bf16 %v5204_v52  ;;  %v5205_v39 = vunpack.i.l.bf16 %v5204_v52  ;;  %v2505_v52 = vld [vmem:[#allocation2 + $0x61] sm:$0xff] }
 0x3a2   : > { %v7801_v16 = vsel %vm1798_vm6, %v3659_v50, %v5230_v59  ;;  %v7804_v37 = vsel %vm1798_vm6, %v3660_v48, %v5231_v19  ;;  %v3672_v4 = vsel %vm1765_vm4, %v7622_v14, %v5181_v9  ;;  %v3671_v22 = vsel %vm1765_vm4, %v7625_v3, %v5180_v30  ;;  %v2521_v50 = vld [vmem:[#allocation2 + $0x121] sm:$0xff] }
 0x3a3   : > { %v7812_v32 = vsel %vm1765_vm4, %v7615_v51, %v5205_v39  ;;  %v7816_v13 = vsel %vm1765_vm4, %v7612_v18, %v5206_v58  ;;  %v5427_v34 = vpack.i.bf16 %v2522_v11, %v2521_v50  ;;  %v2536_v18 = vld [vmem:[#allocation2 + $0x52] sm:$0xff]  ;;  %v5442_v19 = vpack.i.bf16 %v2506_v54, %v2505_v52  ;;  %v2553_v58 = vld [vmem:[#allocation2 + $0x122] sm:$0xff] }
 0x3a4   : > { %v2508_v52 = vld [vmem:[#allocation2 + $0x81] sm:$0xff] }
 0x3a5   : > { %5408 = vrot.lane.b32.xlu2 %v5407_v27, %s5649_s12  ;;  %5403 = vrot.lane.b32.xlu1 %v8787_v28, %s5651_s14 }
 0x3a6   : > { %5428 = vrot.lane.b32.xlu0 %v5427_v34, %s5650_s13 }
 0x3a7   : > { %v5244_v14 = vpop.permute.xlu2 %5243  ;;  %v5194_v3 = vpop.permute.xlu1 %5193 }
 0x3a8   : > { %v5219_v48 = vpop.permute.xlu0 %5218  ;;  %v5246_v21 = vunpack.i.h.bf16 %v5244_v14  ;;  %v5245_v51 = vunpack.i.l.bf16 %v5244_v14  ;;  %v5196_v62 = vunpack.i.h.bf16 %v5194_v3  ;;  %v5195_v56 = vunpack.i.l.bf16 %v5194_v3 }
 0x3a9   : > { %v5221_v45 = vunpack.i.h.bf16 %v5219_v48  ;;  %v5220_v20 = vunpack.i.l.bf16 %v5219_v48 }
 0x3aa   : > { %v7823_v35 = vsel %vm1798_vm6, %v3665_v63, %v5245_v51  ;;  %v7826_v60 = vsel %vm1798_vm6, %v3666_v33, %v5246_v21  ;;  %v3678_v28 = vsel %vm1765_vm4, %v7662_v25, %v5196_v62  ;;  %v3677_v10 = vsel %vm1765_vm4, %v7665_v26, %v5195_v56  ;;  %v8792_v33 = vld [vmem:[#allocation92_spill] sm:$0xff] }
 0x3ab   : > { %v7834_v17 = vsel %vm1798_vm6, %v7655_v41, %v5220_v20  ;;  %v7838_v43 = vsel %vm1798_vm6, %v7651_v49, %v5221_v45  ;;  %v5417_v63 = vpack.i.bf16 %v2536_v18, %v2535_v31  ;;  %v2554_v49 = vld [vmem:[#allocation2 + $0x12a] sm:$0xff]  ;;  %v2523_v21 = vld [vmem:[#allocation2 + $0x139] sm:$0xff]  ;;  %v2537_v45 = vld [vmem:[#allocation2 + $0x62] sm:$0xff] }
 0x3ac   : > { %v5457_v51 = vpack.i.bf16 %v2524_v8, %v2523_v21 }
 0x3ad   : > { %5423 = vrot.lane.b32.xlu2 %v8792_v33, %s5649_s12  ;;  %5418 = vrot.lane.b32.xlu1 %v5417_v63, %s5651_s14 }
 0x3ae   : > { %5443 = vrot.lane.b32.xlu0 %v5442_v19, %s5650_s13 }
 0x3af   : > { %v5259_v25 = vpop.permute.xlu2 %5258  ;;  %v5209_v26 = vpop.permute.xlu1 %5208 }
 0x3b0   : > { %v5234_v59 = vpop.permute.xlu0 %5233  ;;  %v5261_v9 = vunpack.i.h.bf16 %v5259_v25  ;;  %v5260_v41 = vunpack.i.l.bf16 %v5259_v25  ;;  %v5211_v30 = vunpack.i.h.bf16 %v5209_v26  ;;  %v5210_v5 = vunpack.i.l.bf16 %v5209_v26 }
 0x3b1   : > { %v5236_v39 = vunpack.i.h.bf16 %v5234_v59  ;;  %v5235_v11 = vunpack.i.l.bf16 %v5234_v59 }
 0x3b2   : > { %v7845_v50 = vsel %vm1798_vm6, %v3671_v22, %v5260_v41  ;;  %v7848_v27 = vsel %vm1798_vm6, %v3672_v4, %v5261_v9  ;;  %v3684_v34 = vsel %vm1765_vm4, %v7694_v23, %v5211_v30  ;;  %v3683_v14 = vsel %vm1765_vm4, %v7697_v44, %v5210_v5  ;;  %v8793_v4 = vld [vmem:[#allocation77_spill] sm:$0xff] }
 0x3b3   : > { %v7856_v3 = vsel %vm1798_vm6, %v7689_v29, %v5235_v11  ;;  %v7860_v48 = vsel %vm1798_vm6, %v7685_v38, %v5236_v39  ;;  %v5432_v22 = vpack.i.bf16 %v2554_v49, %v2553_v58  ;;  %v2538_v38 = vld [vmem:[#allocation2 + $0x6a] sm:$0xff]  ;;  %v2507_v9 = vld [vmem:[#allocation2 + $0x79] sm:$0xff]  ;;  %v2556_v11 = vld [vmem:[#allocation2 + $0x142] sm:$0xff] }
 0x3b4   : > { %v5472_v41 = vpack.i.bf16 %v2508_v52, %v2507_v9  ;;  %v2476_v39 = vld [vmem:[#allocation2 + $0x80] sm:$0xff] }
 0x3b5   : > { %5438 = vrot.lane.b32.xlu2 %v8793_v4, %s5649_s12  ;;  %5433 = vrot.lane.b32.xlu1 %v5432_v22, %s5651_s14  ;;  %v2526_v22 = vld [vmem:[#allocation2 + $0x159] sm:$0xff] }
 0x3b6   : > { %5458 = vrot.lane.b32.xlu0 %v5457_v51, %s5650_s13  ;;  %v2510_v9 = vld [vmem:[#allocation2 + $0x99] sm:$0xff] }
 0x3b7   : > { %v5274_v23 = vpop.permute.xlu2 %5273  ;;  %v5224_v44 = vpop.permute.xlu1 %5223 }
 0x3b8   : > { %v5249_v62 = vpop.permute.xlu0 %5248  ;;  %v5276_v56 = vunpack.i.h.bf16 %v5274_v23  ;;  %v5275_v29 = vunpack.i.l.bf16 %v5274_v23  ;;  %v5226_v31 = vunpack.i.h.bf16 %v5224_v44  ;;  %v5225_v18 = vunpack.i.l.bf16 %v5224_v44 }
 0x3b9   : > { %v5251_v20 = vunpack.i.h.bf16 %v5249_v62  ;;  %v5250_v54 = vunpack.i.l.bf16 %v5249_v62  ;;  %v2475_v62 = vld [vmem:[#allocation2 + $0x78] sm:$0xff] }
 0x3ba   : > { %v7867_v63 = vsel %vm1798_vm6, %v3677_v10, %v5275_v29  ;;  %v7870_v19 = vsel %vm1798_vm6, %v3678_v28, %v5276_v56  ;;  %v3690_v33 = vsel %vm1798_vm6, %v7721_v42, %v5226_v31  ;;  %v3689_v25 = vsel %vm1798_vm6, %v7725_v24, %v5225_v18  ;;  %v8794_v28 = vld [vmem:[#allocation72_spill] sm:$0xff] }
 0x3bb   : > { %v7878_v26 = vsel %vm1798_vm6, %v7712_v47, %v5250_v54  ;;  %v7882_v59 = vsel %vm1798_vm6, %v7715_v6, %v5251_v20  ;;  %v5447_v10 = vpack.i.bf16 %v2538_v38, %v2537_v45  ;;  %v2555_v6 = vld [vmem:[#allocation2 + $0x13a] sm:$0xff]  ;;  %v5467_v31 = vpack.i.bf16 %v2476_v39, %v2475_v62  ;;  %v2540_v54 = vld [vmem:[#allocation2 + $0x82] sm:$0xff] }
 0x3bc   : > { %v5462_v18 = vpack.i.bf16 %v2556_v11, %v2555_v6  ;;  %v2539_v20 = vld [vmem:[#allocation2 + $0x7a] sm:$0xff]  ;;  %v2557_v11 = vld [vmem:[#allocation2 + $0x152] sm:$0xff] }
 0x3bd   : > { %5453 = vrot.lane.b32.xlu2 %v8794_v28, %s5649_s12  ;;  %5448 = vrot.lane.b32.xlu1 %v5447_v10, %s5651_s14 }
 0x3be   : > { %5473 = vrot.lane.b32.xlu0 %v5472_v41, %s5650_s13 }
 0x3bf   : > { %v5289_v42 = vpop.permute.xlu2 %5288  ;;  %v5239_v24 = vpop.permute.xlu1 %5238 }
 0x3c0   : > { %v5264_v30 = vpop.permute.xlu0 %5263  ;;  %v5291_v5 = vunpack.i.h.bf16 %v5289_v42  ;;  %v5290_v47 = vunpack.i.l.bf16 %v5289_v42  ;;  %v5241_v58 = vunpack.i.h.bf16 %v5239_v24  ;;  %v5240_v49 = vunpack.i.l.bf16 %v5239_v24  ;;  %v2509_v24 = vld [vmem:[#allocation2 + $0x91] sm:$0xff] }
 0x3c1   : > { %v5266_v8 = vunpack.i.h.bf16 %v5264_v30  ;;  %v5265_v21 = vunpack.i.l.bf16 %v5264_v30  ;;  %v5477_v30 = vpack.i.bf16 %v2540_v54, %v2539_v20  ;;  %v2496_v54 = vld [vmem:[#allocation2 + $0x170] sm:$0xff] }
 0x3c2   : > { %v7889_v51 = vsel %vm1798_vm6, %v3683_v14, %v5290_v47  ;;  %v7892_v4 = vsel %vm1798_vm6, %v3684_v34, %v5291_v5  ;;  %v3696_v23 = vsel %vm1798_vm6, %v7744_v40, %v5241_v58  ;;  %v3695_v44 = vsel %vm1798_vm6, %v7748_v0, %v5240_v49  ;;  %v2525_v14 = vld [vmem:[#allocation2 + $0x151] sm:$0xff] }
 0x3c3   : > { %v7900_v56 = vsel %vm1798_vm6, %v7733_v46, %v5265_v21  ;;  %v7904_v29 = vsel %vm1798_vm6, %v7736_v53, %v5266_v8  ;;  %v5487_v34 = vpack.i.bf16 %v2526_v22, %v2525_v14  ;;  %v5502_v5 = vpack.i.bf16 %v2510_v9, %v2509_v24  ;;  %v8795_v47 = vld [vmem:[#allocation67_spill] sm:$0xff]  ;;  %v2558_v8 = vld [vmem:[#allocation2 + $0x15a] sm:$0xff] }
 0x3c4   : > { %v2528_v21 = vld [vmem:[#allocation2 + $0x171] sm:$0xff] }
 0x3c5   : > { %5468 = vrot.lane.b32.xlu2 %v5467_v31, %s5649_s12  ;;  %5463 = vrot.lane.b32.xlu1 %v5462_v18, %s5651_s14  ;;  %v2477_v18 = vld [vmem:[#allocation2 + $0x90] sm:$0xff] }
 0x3c6   : > { %5488 = vrot.lane.b32.xlu0 %v5487_v34, %s5650_s13  ;;  %v2527_v34 = vld [vmem:[#allocation2 + $0x169] sm:$0xff]  ;;  %v2512_v24 = vld [vmem:[#allocation2 + $0xb1] sm:$0xff] }
 0x3c7   : > { %v5304_v40 = vpop.permute.xlu2 %5303  ;;  %v7909_v0 = vpop.permute.xlu1 %5253 }
 0x3c8   : > { %v5279_v45 = vpop.permute.xlu0 %5278  ;;  %v5306_v46 = vunpack.i.h.bf16 %v5304_v40  ;;  %v5305_v38 = vunpack.i.l.bf16 %v5304_v40 }
 0x3c9   : > { %v5281_v53 = vunpack.i.h.bf16 %v5279_v45  ;;  %v5280_v52 = vunpack.i.l.bf16 %v5279_v45  ;;  %v5492_v45 = vpack.i.bf16 %v2558_v8, %v2557_v11  ;;  %v2559_v11 = vld [vmem:[#allocation2 + $0x16a] sm:$0xff]  ;;  %v2560_v8 = vld [vmem:[#allocation2 + $0x172] sm:$0xff] }
 0x3ca   : > { %v7912_v10 = vsel %vm1831_vm8, %v3689_v25, %v5305_v38  ;;  %v7915_v41 = vsel %vm1831_vm8, %v3690_v33, %v5306_v46  ;;  %v5517_v46 = vpack.i.bf16 %v2528_v21, %v2527_v34  ;;  %v2498_v34 = vld [vmem:[#allocation2 + $0x188] sm:$0xff] }
 0x3cb   : > { %v7919_v28 = vsel %vm1798_vm6, %v7756_v36, %v5280_v52  ;;  %v7923_v42 = vsel %vm1798_vm6, %v7759_v15, %v5281_v53  ;;  %v2478_v15 = vld [vmem:[#allocation2 + $0x98] sm:$0xff] }
 0x3cc   : > { %v5497_v40 = vpack.i.bf16 %v2478_v15, %v2477_v18  ;;  %v2542_v53 = vld [vmem:[#allocation2 + $0x9a] sm:$0xff] }
 0x3cd   : > { %5483 = vrot.lane.b32.xlu2 %v8795_v47, %s5649_s12  ;;  %5478 = vrot.lane.b32.xlu1 %v5477_v30, %s5651_s14  ;;  %v2495_v47 = vld [vmem:[#allocation2 + $0x168] sm:$0xff] }
 0x3ce   : > { %5503 = vrot.lane.b32.xlu0 %v5502_v5, %s5650_s13 }
 0x3cf   : > { %v5319_v33 = vpop.permute.xlu2 %5318  ;;  %v5269_v25 = vpop.permute.xlu1 %5268 }
 0x3d0   : > { %v7929_v58 = vpop.permute.xlu0 %5293  ;;  %v5321_v36 = vunpack.i.h.bf16 %v5319_v33  ;;  %v5320_v49 = vunpack.i.l.bf16 %v5319_v33  ;;  %v5271_v39 = vunpack.i.h.bf16 %v5269_v25  ;;  %v5270_v6 = vunpack.i.l.bf16 %v5269_v25 }
 0x3d2   : > { %v7932_v22 = vsel %vm1831_vm8, %v3695_v44, %v5320_v49  ;;  %v7935_v62 = vsel %vm1831_vm8, %v3696_v23, %v5321_v36  ;;  %v7939_v14 = vsel %vm1798_vm6, %v7794_v61, %v5271_v39  ;;  %v7943_v31 = vsel %vm1798_vm6, %v7790_v7, %v5270_v6  ;;  %v2541_v7 = vld [vmem:[#allocation2 + $0x92] sm:$0xff]  ;;  %v2511_v36 = vld [vmem:[#allocation2 + $0xa9] sm:$0xff] }
 0x3d3   : > { %v5512_v49 = vpack.i.bf16 %v2496_v54, %v2495_v47  ;;  %v5507_v39 = vpack.i.bf16 %v2542_v53, %v2541_v7  ;;  %v5532_v6 = vpack.i.bf16 %v2512_v24, %v2511_v36  ;;  %v2543_v36 = vld [vmem:[#allocation2 + $0xaa] sm:$0xff] }
 0x3d5   : > { %5498 = vrot.lane.b32.xlu2 %v5497_v40, %s5649_s12  ;;  %5493 = vrot.lane.b32.xlu1 %v5492_v45, %s5651_s14  ;;  %v2479_v40 = vld [vmem:[#allocation2 + $0xa8] sm:$0xff] }
 0x3d6   : > { %5518 = vrot.lane.b32.xlu0 %v5517_v46, %s5650_s13 }
 0x3d7   : > { %v7948_v23 = vpop.permute.xlu2 %5333  ;;  %v5284_v44 = vpop.permute.xlu1 %5283 }
 0x3d8   : > { %v5309_v61 = vpop.permute.xlu0 %5308  ;;  %v5286_v38 = vunpack.i.h.bf16 %v5284_v44  ;;  %v5285_v20 = vunpack.i.l.bf16 %v5284_v44 }
 0x3d9   : > { %v5311_v52 = vunpack.i.h.bf16 %v5309_v61  ;;  %v5310_v9 = vunpack.i.l.bf16 %v5309_v61 }
 0x3da   : > { %v7952_v30 = vsel %vm1798_vm6, %v7816_v13, %v5286_v38  ;;  %v7956_v5 = vsel %vm1798_vm6, %v7812_v32, %v5285_v20  ;;  %v2497_v38 = vld [vmem:[#allocation2 + $0x180] sm:$0xff]  ;;  %v5522_v20 = vpack.i.bf16 %v2560_v8, %v2559_v11 }
 0x3db   : > { %v7960_v33 = vsel %vm1831_vm8, %v7801_v16, %v5310_v9  ;;  %v7964_v25 = vsel %vm1831_vm8, %v7804_v37, %v5311_v52  ;;  %v2480_v16 = vld [vmem:[#allocation2 + $0xb0] sm:$0xff]  ;;  %v5547_v7 = vpack.i.bf16 %v2498_v34, %v2497_v38  ;;  %v4307_v11 = vld [vmem:[%s8441_s4] sm:$0xff] }
 0x3dc   : > { %v3865_v37 = vld [vmem:[%s8441_s4 + $0x10] sm:$0x3]  ;;  %v5527_v46 = vpack.i.bf16 %v2480_v16, %v2479_v40  ;;  %v2467_v40 = vld [vmem:[#allocation2 + $0x182] sm:$0xff] }
 0x3dd   : > { %5513 = vrot.lane.b32.xlu2 %v5512_v49, %s5649_s12  ;;  %5508 = vrot.lane.b32.xlu1 %v5507_v39, %s5651_s14  ;;  %v3875_v45 = vunpack.c.l.b16 %v3865_v37  ;;  %v2544_v49 = vld [vmem:[#allocation2 + $0xb2] sm:$0xff]  ;;  %v2482_v39 = vld [vmem:[#allocation2 + $0xc8] sm:$0xff]  ;;  %v2481_v37 = vld [vmem:[#allocation2 + $0xc0] sm:$0xff] }
 0x3de   : > { %5533 = vrot.lane.b32.xlu0 %v5532_v6, %s5650_s13  ;;  %v5562_v8 = vpack.i.bf16 %v2482_v39, %v2481_v37  ;;  %v2513_v39 = vld [vmem:[#allocation2 + $0xc1] sm:$0xff] }
 0x3df   : > { %v7969_v32 = vpop.permute.xlu2 %5348  ;;  %v7971_v13 = vpop.permute.xlu1 %5298  ;;  %v3878_v54 = vpack.c.b16 %v3875_v45, %v3875_v45  ;;  %v2468_v45 = vld [vmem:[#allocation2 + $0x18a] sm:$0xff] }
 0x3e0   : > { %v5324_v15 = vpop.permute.xlu0 %5323 }
 0x3e1   : > { %v5326_v21 = vunpack.i.h.bf16 %v5324_v15  ;;  %v5325_v18 = vunpack.i.l.bf16 %v5324_v15  ;;  %v3930_v53 = vsel %vm2048_vm3, %v3878_v54, 0  ;;  %v5537_v15 = vpack.i.bf16 %v2544_v49, %v2543_v36  ;;  %v2546_v36 = vld [vmem:[#allocation2 + $0xca] sm:$0xff] }
 0x3e2   : > { %4312 = vmatpush.bf16.msra.mxu3 %v3930_v53  ;;  %3937 = vmatpush.bf16.msra.mxu1 %v3930_v53  ;;  %v2514_v49 = vld [vmem:[#allocation2 + $0xc9] sm:$0xff] }
 0x3e3   : > { %v7978_v44 = vsel %vm1831_vm8, %v7823_v35, %v5325_v18  ;;  %v7982_v61 = vsel %vm1831_vm8, %v7826_v60, %v5326_v21  ;;  %v4308_v35 = vld [vmem:[%s8441_s4 + $0x8] sm:$0xff] }
 0x3e5   : > { %5528 = vrot.lane.b32.xlu2 %v5527_v46, %s5649_s12  ;;  %5523 = vrot.lane.b32.xlu1 %v5522_v20, %s5651_s14 }
 0x3e6   : > { %5548 = vrot.lane.b32.xlu0 %v5547_v7, %s5649_s12  ;;  %4313 = vmatpush.bf16.msra.mxu3 %v4308_v35 }
 0x3e7   : > { %v7991_v52 = vpop.permute.xlu2 %5363  ;;  %v5314_v60 = vpop.permute.xlu1 %5313  ;;  %3938 = vmatpush.bf16.msra.mxu1 %v4308_v35  ;;  %v5577_v35 = vpack.i.bf16 %v2468_v45, %v2467_v40 }
 0x3e8   : > { %v7993_v9 = vpop.permute.xlu0 %5338  ;;  %v5316_v24 = vunpack.i.h.bf16 %v5314_v60  ;;  %v5315_v47 = vunpack.i.l.bf16 %v5314_v60  ;;  %v2563_v60 = vld [vmem:[#allocation2 + $0x19a] sm:$0xff] }
 0x3ea   : > { %v7997_v6 = vsel %vm1831_vm8, %v7860_v48, %v5316_v24  ;;  %v8001_v16 = vsel %vm1831_vm8, %v7856_v3, %v5315_v47  ;;  %4314 = vmatpush.bf16.msra.mxu3 %v4307_v11  ;;  %v2564_v24 = vld [vmem:[#allocation2 + $0x1a2] sm:$0xff] }
 0x3eb   : > { %3939 = vmatpush.bf16.msra.mxu1 %v4307_v11  ;;  %v2545_v47 = vld [vmem:[#allocation2 + $0xc2] sm:$0xff] }
 0x3ec   : > { %v5572_v37 = vpack.i.bf16 %v2546_v36, %v2545_v47  ;;  %v2532_v11 = vld [vmem:[#allocation2 + $0x1a1] sm:$0xff]  ;;  %v5255_v47 = vunpack.i.l.bf16 %v7909_v0 }
 0x3ed   : > { %5543 = vrot.lane.b32.xlu2 %v5522_v20, %s5648_s11  ;;  %5538 = vrot.lane.b32.xlu1 %v5537_v15, %s5651_s14  ;;  %v5567_v15 = vpack.i.bf16 %v2514_v49, %v2513_v39  ;;  %v5335_v39 = vunpack.i.l.bf16 %v7948_v23 }
 0x3ee   : > { %5563 = vrot.lane.b32.xlu0 %v5562_v8, %s5649_s12  ;;  %v2499_v8 = vld [vmem:[#allocation2 + $0x198] sm:$0xff] }
 0x3ef   : > { %v8009_v48 = vpop.permute.xlu2 %5378  ;;  %v5329_v3 = vpop.permute.xlu1 %5328 }
 0x3f0   : > { %v5354_v21 = vpop.permute.xlu0 %5353  ;;  %v5331_v18 = vunpack.i.h.bf16 %v5329_v3  ;;  %v5330_v34 = vunpack.i.l.bf16 %v5329_v3  ;;  %v2500_v3 = vld [vmem:[#allocation2 + $0x1a0] sm:$0xff] }
 0x3f1   : > { %v5356_v46 = vunpack.i.h.bf16 %v5354_v21  ;;  %v5355_v38 = vunpack.i.l.bf16 %v5354_v21 }
 0x3f2   : > { %v8013_v54 = vsel %vm1831_vm8, %v7878_v26, %v5330_v34  ;;  %v8017_v20 = vsel %vm1831_vm8, %v7882_v59, %v5331_v18 }
 0x3f3   : > { %v8021_v7 = vsel %vm1831_vm8, %v7867_v63, %v5355_v38  ;;  %v8025_v53 = vsel %vm1831_vm8, %v7870_v19, %v5356_v46  ;;  %v5592_v19 = vpack.i.bf16 %v2564_v24, %v2563_v60  ;;  %v2547_v46 = vld [vmem:[#allocation2 + $0xda] sm:$0xff]  ;;  %v2548_v38 = vld [vmem:[#allocation2 + $0xe2] sm:$0xff]  ;;  %v5582_v60 = vpack.i.bf16 %v2500_v3, %v2499_v8 }
 0x3f4   : > { %v5256_v24 = vunpack.i.h.bf16 %v7909_v0  ;;  %v3701_v0 = vsel %vm1798_vm6, %v7767_v1, %v5255_v47  ;;  %v2483_v47 = vld [vmem:[#allocation2 + $0xd8] sm:$0xff] }
 0x3f5   : > { %5558 = vrot.lane.b32.xlu2 %v5577_v35, %s5651_s14  ;;  %5553 = vrot.lane.b32.xlu1 %v7559_v57, %s5650_s13  ;;  %v2531_v57 = vld [vmem:[#allocation2 + $0x199] sm:$0xff] }
 0x3f6   : > { %5578 = vrot.lane.b32.xlu0 %v5577_v35, %s5648_s11  ;;  %v5587_v35 = vpack.i.bf16 %v2532_v11, %v2531_v57  ;;  %v5607_v57 = vpack.i.bf16 %v2548_v38, %v2547_v46  ;;  %v2484_v38 = vld [vmem:[#allocation2 + $0xe0] sm:$0xff] }
 0x3f7   : > { %v8031_v26 = vpop.permute.xlu2 %5393  ;;  %v8033_v59 = vpop.permute.xlu1 %5343 }
 0x3f8   : > { %v5369_v63 = vpop.permute.xlu0 %5368 }
 0x3f9   : > { %v5371_v11 = vunpack.i.h.bf16 %v5369_v63  ;;  %v5370_v8 = vunpack.i.l.bf16 %v5369_v63  ;;  %v2516_v63 = vld [vmem:[#allocation2 + $0xe1] sm:$0xff] }
 0x3fd   : > { %5573 = vrot.lane.b32.xlu2 %v5572_v37, %s5651_s14  ;;  %5568 = vrot.lane.b32.xlu1 %v5567_v15, %s5650_s13  ;;  %v5366_v37 = vunpack.i.h.bf16 %v7991_v52  ;;  %v5365_v15 = vunpack.i.l.bf16 %v7991_v52 }
 0x3fe   : > { %5593 = vrot.lane.b32.xlu0 %v5592_v19, %s5651_s14  ;;  %v5336_v19 = vunpack.i.h.bf16 %v7948_v23 }
 0x3ff   : > { %v8038_v21 = vpop.permute.xlu2 %5408  ;;  %v5359_v18 = vpop.permute.xlu1 %5358 }
 0x400   : > { %v8040_v34 = vpop.permute.xlu0 %5383  ;;  %v5361_v40 = vunpack.i.h.bf16 %v5359_v18  ;;  %v5360_v45 = vunpack.i.l.bf16 %v5359_v18 }
 0x402   : > { %v8046_v36 = vsel %vm1831_vm8, %v7919_v28, %v5360_v45  ;;  %v8050_v49 = vsel %vm1831_vm8, %v7923_v42, %v5361_v40  ;;  %v3702_v28 = vsel %vm1798_vm6, %v7771_v55, %v5256_v24  ;;  %v3733_v42 = vsel %vm1831_vm8, %v3701_v0, %v5335_v39 }
 0x403   : > { %v3734_v23 = vsel %vm1831_vm8, %v3702_v28, %v5336_v19  ;;  %v3765_v18 = vsel %vm1864_vm7, %v3733_v42, %v5365_v15  ;;  %v5295_v15 = vunpack.i.l.bf16 %v7929_v58  ;;  %v5381_v28 = vunpack.i.h.bf16 %v8009_v48 }
 0x404   : > { %v3766_v40 = vsel %vm1864_vm7, %v3734_v23, %v5366_v37  ;;  %v3797_v55 = vsel %vm1897_vm9, %v3765_v18, %v5370_v8  ;;  %v5597_v37 = vpack.i.bf16 %v2484_v38, %v2483_v47  ;;  %v5380_v42 = vunpack.i.l.bf16 %v8009_v48 }
 0x405   : > { %5588 = vrot.lane.b32.xlu2 %v5587_v35, %s5650_s13  ;;  %5583 = vrot.lane.b32.xlu1 %v5582_v60, %s5649_s12  ;;  %v3798_v35 = vsel %vm1897_vm9, %v3766_v40, %v5371_v11  ;;  %v2515_v60 = vld [vmem:[#allocation2 + $0xd9] sm:$0xff]  ;;  %v5386_v8 = vunpack.i.h.bf16 %v8040_v34  ;;  %v5385_v11 = vunpack.i.l.bf16 %v8040_v34  ;;  %v3717_v23 = vsel %vm1831_vm8, %v7779_v2, %v5295_v15 }
 0x406   : > { %5608 = vrot.lane.b32.xlu0 %v5607_v57, %s5651_s14  ;;  %v5602_v24 = vpack.i.bf16 %v2516_v63, %v2515_v60  ;;  %v5296_v57 = vunpack.i.h.bf16 %v7929_v58  ;;  %v3749_v63 = vsel %vm1864_vm7, %v3717_v23, %v5380_v42  ;;  %v5395_v47 = vunpack.i.l.bf16 %v8031_v26 }
 0x407   : > { %v8065_v52 = vpop.permute.xlu2 %5423  ;;  %v5374_v3 = vpop.permute.xlu1 %5373 }
 0x408   : > { %v5399_v45 = vpop.permute.xlu0 %5398  ;;  %v5376_v46 = vunpack.i.h.bf16 %v5374_v3  ;;  %v5375_v1 = vunpack.i.l.bf16 %v5374_v3  ;;  %v3718_v58 = vsel %vm1831_vm8, %v7782_v12, %v5296_v57  ;;  %v5341_v12 = vunpack.i.h.bf16 %v7993_v9 }
 0x409   : > { %v3750_v48 = vsel %vm1864_vm7, %v3718_v58, %v5381_v28  ;;  %v5300_v58 = vunpack.i.l.bf16 %v7971_v13 }
 0x40a   : > { %v3829_v19 = vsel %vm1930_vm10, %v3797_v55, %v5375_v1  ;;  %v3830_v39 = vsel %vm1930_vm10, %v3798_v35, %v5376_v46  ;;  %v3781_v1 = vsel %vm1897_vm9, %v3749_v63, %v5385_v11  ;;  %v3782_v38 = vsel %vm1897_vm9, %v3750_v48, %v5386_v8 }
 0x40b   : > { %v3853_v0 = vpack.c.bf16 %v3830_v39, %v3829_v19  ;;  %v5340_v35 = vunpack.i.l.bf16 %v7993_v9  ;;  %v5401_v19 = vunpack.i.h.bf16 %v5399_v45  ;;  %v5400_v39 = vunpack.i.l.bf16 %v5399_v45 }
 0x40c   : > { %v3736_v15 = vsel %vm1831_vm8, %v7848_v27, %v5341_v12  ;;  %v5301_v27 = vunpack.i.h.bf16 %v7971_v13  ;;  %v5411_v63 = vunpack.i.h.bf16 %v8038_v21  ;;  %v5410_v48 = vunpack.i.l.bf16 %v8038_v21 }
 0x40d   : > { %5603 = vrot.lane.b32.xlu2 %v5602_v24, %s5650_s13  ;;  %5598 = vrot.lane.b32.xlu1 %v5597_v37, %s5649_s12  ;;  %v5396_v24 = vunpack.i.h.bf16 %v8031_v26  ;;  %v3735_v57 = vsel %vm1831_vm8, %v7845_v50, %v5340_v35 }
 0x40e   : > { %4293 = vmatmul.msk.bf16.vlgmr.msra.gmra.mxu3 %vm1999_vm11, %v3853_v0  ;;  %v3767_v0 = vsel %vm1864_vm7, %v3735_v57, %v5395_v47  ;;  %v5425_v57 = vunpack.i.l.bf16 %v8065_v52 }
 0x40f   : > { %v5389_v3 = vpop.permute.xlu1 %5388  ;;  %v8088_v40 = vpop.permute.xlu2 %5438  ;;  %v3768_v9 = vsel %vm1864_vm7, %v3736_v15, %v5396_v24  ;;  %v3799_v26 = vsel %vm1897_vm9, %v3767_v0, %v5400_v39  ;;  %v5426_v39 = vunpack.i.h.bf16 %v8065_v52 }
 0x410   : > { %v5414_v18 = vpop.permute.xlu0 %5413  ;;  %v5391_v34 = vunpack.i.h.bf16 %v5389_v3  ;;  %v5390_v46 = vunpack.i.l.bf16 %v5389_v3  ;;  %v3800_v45 = vsel %vm1897_vm9, %v3768_v9, %v5401_v19 }
 0x412   : > { %v3813_v55 = vsel %vm1930_vm10, %v3781_v1, %v5390_v46  ;;  %v3814_v2 = vsel %vm1930_vm10, %v3782_v38, %v5391_v34  ;;  %v5416_v34 = vunpack.i.h.bf16 %v5414_v18  ;;  %v5415_v46 = vunpack.i.l.bf16 %v5414_v18 }
 0x413   : > { %v3845_v60 = vpack.c.bf16 %v3814_v2, %v3813_v55  ;;  %v3720_v1 = vsel %vm1831_vm8, %v7838_v43, %v5301_v27  ;;  %v3719_v38 = vsel %vm1831_vm8, %v7834_v17, %v5300_v58  ;;  %v5346_v43 = vunpack.i.h.bf16 %v8033_v59 }
 0x414   : > { %v3751_v2 = vsel %vm1864_vm7, %v3719_v38, %v5410_v48  ;;  %v3752_v13 = vsel %vm1864_vm7, %v3720_v1, %v5411_v63  ;;  %v5345_v17 = vunpack.i.l.bf16 %v8033_v59 }
 0x415   : > { %4285 = vmatmul.msk.bf16.vlgmr.msra.gmra.mxu1 %vm1999_vm11, %v3845_v60  ;;  %v3783_v21 = vsel %vm1897_vm9, %v3751_v2, %v5415_v46  ;;  %v3784_v18 = vsel %vm1897_vm9, %v3752_v13, %v5416_v34 }
 0x416   : > { %v3737_v9 = vsel %vm1831_vm8, %v7900_v56, %v5345_v17 }
 0x417   : > { %v5404_v37 = vpop.permute.xlu1 %5403  ;;  %v8107_v11 = vpop.permute.xlu2 %5453  ;;  %v3769_v59 = vsel %vm1864_vm7, %v3737_v9, %v5425_v57 }
 0x418   : > { %v5429_v28 = vpop.permute.xlu0 %5428  ;;  %v5406_v42 = vunpack.i.h.bf16 %v5404_v37  ;;  %v5405_v8 = vunpack.i.l.bf16 %v5404_v37 }
 0x419   : > { %v5431_v37 = vunpack.i.h.bf16 %v5429_v28  ;;  %v5430_v0 = vunpack.i.l.bf16 %v5429_v28 }
 0x41a   : > { %v3831_v23 = vsel %vm1930_vm10, %v3799_v26, %v5405_v8  ;;  %v3832_v50 = vsel %vm1930_vm10, %v3800_v45, %v5406_v42  ;;  %v3738_v42 = vsel %vm1831_vm8, %v7904_v29, %v5346_v43  ;;  %v5440_v29 = vunpack.i.l.bf16 %v8088_v40 }
 0x41b   : > { %v3854_v3 = vpack.c.bf16 %v3832_v50, %v3831_v23  ;;  %v3770_v26 = vsel %vm1864_vm7, %v3738_v42, %v5426_v39  ;;  %v3801_v50 = vsel %vm1897_vm9, %v3769_v59, %v5430_v0 }
 0x41c   : > { %v3802_v28 = vsel %vm1897_vm9, %v3770_v26, %v5431_v37  ;;  %v3753_v1 = vsel %vm1864_vm7, %v7912_v10, %v5440_v29  ;;  %v5456_v10 = vunpack.i.h.bf16 %v8107_v11 }
 0x41e   : > { %4294 = vmatmul.msk.bf16.gmra.mxu3 %vm1999_vm11, %v3854_v3  ;;  %v5441_v3 = vunpack.i.h.bf16 %v8088_v40 }
 0x41f   : > { %v5419_v55 = vpop.permute.xlu1 %5418  ;;  %v8130_v15 = vpop.permute.xlu2 %5468 }
 0x420   : > { %v5444_v12 = vpop.permute.xlu0 %5443  ;;  %v5421_v35 = vunpack.i.h.bf16 %v5419_v55  ;;  %v5420_v60 = vunpack.i.l.bf16 %v5419_v55  ;;  %v3754_v38 = vsel %vm1864_vm7, %v7915_v41, %v5441_v3  ;;  %v5455_v41 = vunpack.i.l.bf16 %v8107_v11 }
 0x421   : > { %v5446_v63 = vunpack.i.h.bf16 %v5444_v12  ;;  %v5445_v48 = vunpack.i.l.bf16 %v5444_v12 }
 0x422   : > { %v3815_v24 = vsel %vm1930_vm10, %v3783_v21, %v5420_v60  ;;  %v3816_v47 = vsel %vm1930_vm10, %v3784_v18, %v5421_v35  ;;  %v5351_v21 = vunpack.i.h.bf16 %v7969_v32  ;;  %v5350_v18 = vunpack.i.l.bf16 %v7969_v32 }
 0x423   : > { %v3846_v19 = vpack.c.bf16 %v3816_v47, %v3815_v24  ;;  %v3785_v35 = vsel %vm1897_vm9, %v3753_v1, %v5445_v48  ;;  %v3786_v60 = vsel %vm1897_vm9, %v3754_v38, %v5446_v63 }
 0x424   : > { %v3739_v17 = vsel %vm1831_vm8, %v7943_v31, %v5350_v18 }
 0x425   : > { %4286 = vmatmul.msk.bf16.gmra.mxu1 %vm1999_vm11, %v3846_v19  ;;  %v3740_v19 = vsel %vm1831_vm8, %v7939_v14, %v5351_v21  ;;  %v3771_v57 = vsel %vm1864_vm7, %v3739_v17, %v5455_v41  ;;  %v5471_v14 = vunpack.i.h.bf16 %v8130_v15 }
 0x426   : > { %v3772_v32 = vsel %vm1864_vm7, %v3740_v19, %v5456_v10 }
 0x427   : > { %v5434_v8 = vpop.permute.xlu1 %5433  ;;  %v5484_v34 = vpop.permute.xlu2 %5483 }
 0x428   : > { %v5459_v45 = vpop.permute.xlu0 %5458  ;;  %v5436_v23 = vunpack.i.h.bf16 %v5434_v8  ;;  %v5435_v52 = vunpack.i.l.bf16 %v5434_v8  ;;  %v5486_v38 = vunpack.i.h.bf16 %v5484_v34 }
 0x429   : > { %v5461_v47 = vunpack.i.h.bf16 %v5459_v45  ;;  %v5460_v43 = vunpack.i.l.bf16 %v5459_v45  ;;  %v5470_v45 = vunpack.i.l.bf16 %v8130_v15 }
 0x42a   : > { %v3833_v27 = vsel %vm1930_vm10, %v3801_v50, %v5435_v52  ;;  %v3834_v58 = vsel %vm1930_vm10, %v3802_v28, %v5436_v23 }
 0x42b   : > { %v3855_v56 = vpack.c.bf16 %v3834_v58, %v3833_v27  ;;  %v3803_v11 = vsel %vm1897_vm9, %v3771_v57, %v5460_v43  ;;  %v3804_v8 = vsel %vm1897_vm9, %v3772_v32, %v5461_v47  ;;  %v3755_v28 = vsel %vm1864_vm7, %v7960_v33, %v5470_v45 }
 0x42c   : > { %v3756_v27 = vsel %vm1864_vm7, %v7964_v25, %v5471_v14 }
 0x42e   : > { %4295 = vmatmul.msk.bf16.gmra.mxu3 %vm1999_vm11, %v3855_v56 }
 0x42f   : > { %v5449_v46 = vpop.permute.xlu1 %5448  ;;  %v5499_v37 = vpop.permute.xlu2 %5498 }
 0x430   : > { %v5474_v55 = vpop.permute.xlu0 %5473  ;;  %v5451_v2 = vunpack.i.h.bf16 %v5449_v46  ;;  %v5450_v13 = vunpack.i.l.bf16 %v5449_v46  ;;  %v5501_v41 = vunpack.i.h.bf16 %v5499_v37  ;;  %v5500_v47 = vunpack.i.l.bf16 %v5499_v37 }
 0x431   : > { %v5476_v23 = vunpack.i.h.bf16 %v5474_v55  ;;  %v5475_v52 = vunpack.i.l.bf16 %v5474_v55  ;;  %v5485_v55 = vunpack.i.l.bf16 %v5484_v34 }
 0x432   : > { %v3817_v40 = vsel %vm1930_vm10, %v3785_v35, %v5450_v13  ;;  %v3818_v12 = vsel %vm1930_vm10, %v3786_v60, %v5451_v2  ;;  %v3774_v35 = vsel %vm1864_vm7, %v8025_v53, %v5486_v38  ;;  %v3757_v19 = vsel %vm1864_vm7, %v8001_v16, %v5500_v47 }
 0x433   : > { %v3847_v24 = vpack.c.bf16 %v3818_v12, %v3817_v40  ;;  %v3787_v29 = vsel %vm1897_vm9, %v3755_v28, %v5475_v52  ;;  %v3788_v63 = vsel %vm1897_vm9, %v3756_v27, %v5476_v23  ;;  %v3773_v13 = vsel %vm1864_vm7, %v8021_v7, %v5485_v55 }
 0x435   : > { %4287 = vmatmul.msk.bf16.gmra.mxu1 %vm1999_vm11, %v3847_v24 }
 0x437   : > { %v5464_v39 = vpop.permute.xlu1 %5463  ;;  %v5514_v48 = vpop.permute.xlu2 %5513 }
 0x438   : > { %v5489_v0 = vpop.permute.xlu0 %5488  ;;  %v5466_v9 = vunpack.i.h.bf16 %v5464_v39  ;;  %v5465_v42 = vunpack.i.l.bf16 %v5464_v39  ;;  %v3758_v39 = vsel %vm1864_vm7, %v7997_v6, %v5501_v41 }
 0x439   : > { %v5491_v2 = vunpack.i.h.bf16 %v5489_v0  ;;  %v5490_v33 = vunpack.i.l.bf16 %v5489_v0 }
 0x43a   : > { %v3835_v59 = vsel %vm1930_vm10, %v3803_v11, %v5465_v42  ;;  %v3836_v31 = vsel %vm1930_vm10, %v3804_v8, %v5466_v9 }
 0x43b   : > { %v3856_v26 = vpack.c.bf16 %v3836_v31, %v3835_v59  ;;  %v3805_v21 = vsel %vm1897_vm9, %v3773_v13, %v5490_v33  ;;  %v3806_v18 = vsel %vm1897_vm9, %v3774_v35, %v5491_v2  ;;  %v5516_v59 = vunpack.i.h.bf16 %v5514_v48 }
 0x43c   : > { %v5515_v31 = vunpack.i.l.bf16 %v5514_v48 }
 0x43d   : > { %v3776_v23 = vsel %vm1864_vm7, %v8050_v49, %v5516_v59 }
 0x43e   : > { %4296 = vmatmul.msk.bf16.gmra.mxu3 %vm1999_vm11, %v3856_v26  ;;  %v3775_v45 = vsel %vm1864_vm7, %v8046_v36, %v5515_v31 }
 0x43f   : > { %v5479_v50 = vpop.permute.xlu1 %5478  ;;  %v5529_v43 = vpop.permute.xlu2 %5528 }
 0x440   : > { %v5504_v58 = vpop.permute.xlu0 %5503  ;;  %v5481_v56 = vunpack.i.h.bf16 %v5479_v50  ;;  %v5480_v3 = vunpack.i.l.bf16 %v5479_v50  ;;  %v5530_v48 = vunpack.i.l.bf16 %v5529_v43 }
 0x441   : > { %v5506_v17 = vunpack.i.h.bf16 %v5504_v58  ;;  %v5505_v7 = vunpack.i.l.bf16 %v5504_v58 }
 0x442   : > { %v3819_v15 = vsel %vm1930_vm10, %v3787_v29, %v5480_v3  ;;  %v3820_v46 = vsel %vm1930_vm10, %v3788_v63, %v5481_v56  ;;  %v5531_v63 = vunpack.i.h.bf16 %v5529_v43  ;;  %v3759_v49 = vsel %vm1864_vm7, %v7932_v22, %v5530_v48 }
 0x443   : > { %v3848_v1 = vpack.c.bf16 %v3820_v46, %v3819_v15  ;;  %v3789_v9 = vsel %vm1897_vm9, %v3757_v19, %v5505_v7  ;;  %v3790_v42 = vsel %vm1897_vm9, %v3758_v39, %v5506_v17 }
 0x445   : > { %4288 = vmatmul.msk.bf16.gmra.mxu1 %vm1999_vm11, %v3848_v1  ;;  %v3760_v1 = vsel %vm1864_vm7, %v7935_v62, %v5531_v63 }
 0x447   : > { %v5494_v25 = vpop.permute.xlu1 %5493  ;;  %v5544_v16 = vpop.permute.xlu2 %5543 }
 0x448   : > { %v5519_v60 = vpop.permute.xlu0 %5518  ;;  %v5496_v40 = vunpack.i.h.bf16 %v5494_v25  ;;  %v5495_v12 = vunpack.i.l.bf16 %v5494_v25 }
 0x449   : > { %v5521_v26 = vunpack.i.h.bf16 %v5519_v60  ;;  %v5520_v14 = vunpack.i.l.bf16 %v5519_v60 }
 0x44a   : > { %v3837_v34 = vsel %vm1930_vm10, %v3805_v21, %v5495_v12  ;;  %v3838_v24 = vsel %vm1930_vm10, %v3806_v18, %v5496_v40  ;;  %v5546_v12 = vunpack.i.h.bf16 %v5544_v16  ;;  %v5545_v21 = vunpack.i.l.bf16 %v5544_v16 }
 0x44b   : > { %v3857_v10 = vpack.c.bf16 %v3838_v24, %v3837_v34  ;;  %v3807_v27 = vsel %vm1897_vm9, %v3775_v45, %v5520_v14  ;;  %v3808_v58 = vsel %vm1897_vm9, %v3776_v23, %v5521_v26 }
 0x44c   : > { %v3745_v34 = vsel %vm1831_vm8, %v7956_v5, %v5545_v21  ;;  %v3746_v24 = vsel %vm1831_vm8, %v7952_v30, %v5546_v12 }
 0x44e   : > { %4297 = vmatmul.msk.bf16.gmra.mxu3 %vm1999_vm11, %v3857_v10 }
 0x44f   : > { %v5509_v53 = vpop.permute.xlu1 %5508  ;;  %v5559_v38 = vpop.permute.xlu2 %5558 }
 0x450   : > { %v5534_v57 = vpop.permute.xlu0 %5533  ;;  %v5511_v32 = vunpack.i.h.bf16 %v5509_v53  ;;  %v5510_v0 = vunpack.i.l.bf16 %v5509_v53  ;;  %v5561_v47 = vunpack.i.h.bf16 %v5559_v38  ;;  %v5560_v43 = vunpack.i.l.bf16 %v5559_v38 }
 0x451   : > { %v5536_v15 = vunpack.i.h.bf16 %v5534_v57  ;;  %v5535_v46 = vunpack.i.l.bf16 %v5534_v57 }
 0x452   : > { %v3821_v37 = vsel %vm1930_vm10, %v3789_v9, %v5510_v0  ;;  %v3822_v11 = vsel %vm1930_vm10, %v3790_v42, %v5511_v32 }
 0x453   : > { %v3849_v8 = vpack.c.bf16 %v3822_v11, %v3821_v37  ;;  %v3791_v33 = vsel %vm1897_vm9, %v3759_v49, %v5535_v46  ;;  %v3792_v25 = vsel %vm1897_vm9, %v3760_v1, %v5536_v15 }
 0x455   : > { %4289 = vmatmul.msk.bf16.gmra.mxu1 %vm1999_vm11, %v3849_v8 }
 0x457   : > { %v5524_v6 = vpop.permute.xlu1 %5523  ;;  %v5574_v53 = vpop.permute.xlu2 %5573 }
 0x458   : > { %v5549_v52 = vpop.permute.xlu0 %5548  ;;  %v5526_v50 = vunpack.i.h.bf16 %v5524_v6  ;;  %v5525_v28 = vunpack.i.l.bf16 %v5524_v6  ;;  %v5576_v8 = vunpack.i.h.bf16 %v5574_v53  ;;  %v5575_v59 = vunpack.i.l.bf16 %v5574_v53 }
 0x459   : > { %v5551_v18 = vunpack.i.h.bf16 %v5549_v52  ;;  %v5550_v22 = vunpack.i.l.bf16 %v5549_v52 }
 0x45a   : > { %v3839_v56 = vsel %vm1930_vm10, %v3807_v27, %v5525_v28  ;;  %v3840_v3 = vsel %vm1930_vm10, %v3808_v58, %v5526_v50 }
 0x45b   : > { %v3858_v29 = vpack.c.bf16 %v3840_v3, %v3839_v56  ;;  %v3777_v17 = vsel %vm1864_vm7, %v3745_v34, %v5550_v22  ;;  %v3778_v7 = vsel %vm1864_vm7, %v3746_v24, %v5551_v18 }
 0x45e   : > { %4298 = vmatmul.msk.bf16.gmra.mxu3 %vm1999_vm11, %v3858_v29 }
 0x45f   : > { %v5539_v36 = vpop.permute.xlu1 %5538  ;;  %v5589_v23 = vpop.permute.xlu2 %5588 }
 0x460   : > { %v5541_v55 = vunpack.i.h.bf16 %v5539_v36  ;;  %v5540_v2 = vunpack.i.l.bf16 %v5539_v36  ;;  %v5564_v13 = vpop.permute.xlu0 %5563  ;;  %v5591_v58 = vunpack.i.h.bf16 %v5589_v23 }
 0x461   : > { %v5566_v30 = vunpack.i.h.bf16 %v5564_v13  ;;  %v5565_v9 = vunpack.i.l.bf16 %v5564_v13 }
 0x462   : > { %v3823_v35 = vsel %vm1930_vm10, %v3791_v33, %v5540_v2  ;;  %v3824_v60 = vsel %vm1930_vm10, %v3792_v25, %v5541_v55 }
 0x463   : > { %v3850_v40 = vpack.c.bf16 %v3824_v60, %v3823_v35  ;;  %v3761_v31 = vsel %vm1864_vm7, %v7978_v44, %v5565_v9  ;;  %v3762_v26 = vsel %vm1864_vm7, %v7982_v61, %v5566_v30  ;;  %v5590_v44 = vunpack.i.l.bf16 %v5589_v23 }
 0x465   : > { %4290 = vmatmul.msk.bf16.gmra.mxu1 %vm1999_vm11, %v3850_v40 }
 0x467   : > { %v5554_v62 = vpop.permute.xlu1 %5553  ;;  %v5604_v33 = vpop.permute.xlu2 %5603 }
 0x468   : > { %v5556_v10 = vunpack.i.h.bf16 %v5554_v62  ;;  %v5555_v41 = vunpack.i.l.bf16 %v5554_v62  ;;  %v5579_v57 = vpop.permute.xlu0 %5578  ;;  %v5606_v35 = vunpack.i.h.bf16 %v5604_v33  ;;  %v5605_v60 = vunpack.i.l.bf16 %v5604_v33 }
 0x469   : > { %v5581_v50 = vunpack.i.h.bf16 %v5579_v57  ;;  %v5580_v28 = vunpack.i.l.bf16 %v5579_v57  ;;  %v8797_v57 = vld [vmem:[#allocation7_spill] sm:$0xff] }
 0x46a   : > { %v3809_v19 = vsel %vm1897_vm9, %v3777_v17, %v5555_v41  ;;  %v3810_v39 = vsel %vm1897_vm9, %v3778_v7, %v5556_v10  ;;  %v8260_v41 = vld [vmem:[%s8442_s5] ss:$0 sm:$0xff] }
 0x46b   : > { %v3841_v32 = vsel %vm1930_vm10, %v3809_v19, %v5560_v43  ;;  %v3842_v5 = vsel %vm1930_vm10, %v3810_v39, %v5561_v47  ;;  %v3747_v48 = vsel %vm1831_vm8, %v7889_v51, %v5580_v28  ;;  %v3748_v15 = vsel %vm1831_vm8, %v7892_v4, %v5581_v50  ;;  %v8796_v19 = vld [vmem:[#allocation19_spill] sm:$0xff] }
 0x46c   : > { %v3859_v0 = vpack.c.bf16 %v3842_v5, %v3841_v32 }
 0x46e   : > { %4299 = vmatmul.msk.bf16.gmra.mxu3 %vm1999_vm11, %v3859_v0 }
 0x46f   : > { %v5569_v42 = vpop.permute.xlu1 %5568 }
 0x470   : > { %v5571_v37 = vunpack.i.h.bf16 %v5569_v42  ;;  %v5570_v11 = vunpack.i.l.bf16 %v5569_v42  ;;  %v5594_v27 = vpop.permute.xlu0 %5593 }
 0x471   : > { %v5596_v3 = vunpack.i.h.bf16 %v5594_v27  ;;  %v5595_v61 = vunpack.i.l.bf16 %v5594_v27 }
 0x472   : > { %v3793_v14 = vsel %vm1897_vm9, %v3761_v31, %v5570_v11  ;;  %v3794_v16 = vsel %vm1897_vm9, %v3762_v26, %v5571_v37  ;;  %v8799_v26 = vld [vmem:[#allocation8_spill] sm:$0xff] }
 0x473   : > { %v3825_v6 = vsel %vm1930_vm10, %v3793_v14, %v5575_v59  ;;  %v3826_v45 = vsel %vm1930_vm10, %v3794_v16, %v5576_v8  ;;  %v8798_v59 = vld [vmem:[#allocation20_spill] sm:$0xff] }
 0x474   : > { %v3851_v52 = vpack.c.bf16 %v3826_v45, %v3825_v6 }
 0x476   : > { %4291 = vmatmul.msk.bf16.gmra.mxu1 %vm1999_vm11, %v3851_v52 }
 0x477   : > { %v5584_v56 = vpop.permute.xlu1 %5583 }
 0x478   : > { %v5586_v29 = vunpack.i.h.bf16 %v5584_v56  ;;  %v5585_v63 = vunpack.i.l.bf16 %v5584_v56  ;;  %v5609_v25 = vpop.permute.xlu0 %5608  ;;  %v8801_v56 = vld [vmem:[#allocation5_spill] sm:$0xff] }
 0x479   : > { %v5611_v40 = vunpack.i.h.bf16 %v5609_v25  ;;  %v5610_v12 = vunpack.i.l.bf16 %v5609_v25 }
 0x47a   : > { %v3779_v46 = vsel %vm1864_vm7, %v3747_v48, %v5585_v63  ;;  %v3780_v36 = vsel %vm1864_vm7, %v3748_v15, %v5586_v29 }
 0x47b   : > { %v3811_v49 = vsel %vm1897_vm9, %v3779_v46, %v5590_v44  ;;  %v3812_v1 = vsel %vm1897_vm9, %v3780_v36, %v5591_v58  ;;  %v8800_v58 = vld [vmem:[#allocation23_spill] sm:$0xff] }
 0x47c   : > { %v3843_v38 = vsel %vm1930_vm10, %v3811_v49, %v5595_v61  ;;  %v3844_v55 = vsel %vm1930_vm10, %v3812_v1, %v5596_v3  ;;  %v8802_v1 = vld [vmem:[#allocation24_spill] sm:$0xff] }
 0x47d   : > { %v3860_v2 = vpack.c.bf16 %v3844_v55, %v3843_v38  ;;  %v8803_v55 = vld [vmem:[#allocation6_spill] sm:$0xff] }
 0x47f   : > { %v5599_v13 = vpop.permute.xlu1 %5598  ;;  %4300 = vmatmul.msk.bf16.gmra.mxu3 %vm1999_vm11, %v3860_v2 }
 0x480   : > { %v5601_v51 = vunpack.i.h.bf16 %v5599_v13  ;;  %v5600_v4 = vunpack.i.l.bf16 %v5599_v13 }
 0x482   : > { %v3763_v21 = vsel %vm1864_vm7, %v8013_v54, %v5600_v4  ;;  %v3764_v18 = vsel %vm1864_vm7, %v8017_v20, %v5601_v51  ;;  %v8265_v54 = vld [vmem:[%s8443_s6] ss:$0 sm:$0xff] }
 0x483   : > { %v3795_v22 = vsel %vm1897_vm9, %v3763_v21, %v5605_v60  ;;  %v3796_v62 = vsel %vm1897_vm9, %v3764_v18, %v5606_v35  ;;  %v8805_v18 = vld [vmem:[#allocation11_spill] sm:$0xff] }
 0x484   : > { %v3827_v34 = vsel %vm1930_vm10, %v3795_v22, %v5610_v12  ;;  %v3828_v24 = vsel %vm1930_vm10, %v3796_v62, %v5611_v40  ;;  %v8804_v12 = vld [vmem:[#allocation21_spill] sm:$0xff] }
 0x485   : > { %v3852_v10 = vpack.c.bf16 %v3828_v24, %v3827_v34 }
 0x487   : > { %4292 = vmatmul.msk.bf16.gmra.mxu1 %vm1999_vm11, %v3852_v10 }
 0x491   : > { %v3981_v20 = vpop.f32.mrf.mxu3 }
 0x492   : > { %v4041_v47 = vmul.f32 %v8260_v41, %v3981_v20  ;;  %v3941_v43 = vpop.f32.mrf.mxu1 }
 0x493   : > { %v4025_v17 = vmul.f32 %v8260_v41, %v3941_v43 }
 0x494   : > { %v4077_v7 = vadd.f32 %v8265_v54, %v4041_v47 }
 0x495   : > { %v4061_v53 = vadd.f32 %v8265_v54, %v4025_v17 }
 0x496   : > { %v4109_v39 = vadd.f32 %v4077_v7, %v8796_v19  ;;  %v8806_v7 = vld [vmem:[#allocation22_spill] sm:$0xff]  ;;  %v8807_v19 = vld [vmem:[#allocation12_spill] sm:$0xff] }
 0x497   : > { %v4093_v32 = vadd.f32 %v4061_v53, %v8797_v57 }
 0x498   : > { %v4141_v5 = vmax.f32 %v4109_v39, 0.0 }
 0x499   : > { %v4125_v0 = vmax.f32 %v4093_v32, 0.0  ;;  %v3983_v30 = vpop.f32.mrf.mxu3 }
 0x49a   : > { %4173 = vst.msk [vmem:[%s8277_s17 + $0x80] sm:$0xff] %vm280_vm0, %v4141_v5  ;;  %v4042_v9 = vmul.f32 %v8260_v41, %v3983_v30  ;;  %v3943_v42 = vpop.f32.mrf.mxu1 }
 0x49b   : > { %4157 = vst.msk [vmem:[%s8277_s17] sm:$0xff] %vm280_vm0, %v4125_v0  ;;  %v4026_v37 = vmul.f32 %v8260_v41, %v3943_v42 }
 0x49c   : > { %v4078_v11 = vadd.f32 %v8265_v54, %v4042_v9 }
 0x49d   : > { %v4062_v8 = vadd.f32 %v8265_v54, %v4026_v37 }
 0x49e   : > { %v4110_v31 = vadd.f32 %v4078_v11, %v8798_v59  ;;  %v8808_v11 = vld [vmem:[#allocation25_spill] sm:$0xff]  ;;  %v8809_v59 = vld [vmem:[#allocation3_spill] sm:$0xff] }
 0x49f   : > { %v4094_v14 = vadd.f32 %v4062_v8, %v8799_v26 }
 0x4a0   : > { %v4142_v16 = vmax.f32 %v4110_v31, 0.0 }
 0x4a1   : > { %v4126_v6 = vmax.f32 %v4094_v14, 0.0  ;;  %v3986_v45 = vpop.f32.mrf.mxu3 }
 0x4a2   : > { %4174 = vst.msk [vmem:[%s8277_s17 + $0x88] sm:$0xff] %vm280_vm0, %v4142_v16  ;;  %v4043_v23 = vmul.f32 %v8260_v41, %v3986_v45  ;;  %v3946_v52 = vpop.f32.mrf.mxu1 }
 0x4a3   : > { %4158 = vst.msk [vmem:[%s8277_s17 + $0x8] sm:$0xff] %vm280_vm0, %v4126_v6  ;;  %v4027_v50 = vmul.f32 %v8260_v41, %v3946_v52 }
 0x4a4   : > { %v4079_v28 = vadd.f32 %v8265_v54, %v4043_v23 }
 0x4a5   : > { %v4063_v27 = vadd.f32 %v8265_v54, %v4027_v50 }
 0x4a6   : > { %v4111_v44 = vadd.f32 %v4079_v28, %v8800_v58  ;;  %v8810_v28 = vld [vmem:[#allocation26_spill] sm:$0xff]  ;;  %v8811_v58 = vld [vmem:[#allocation4_spill] sm:$0xff] }
 0x4a7   : > { %v4095_v3 = vadd.f32 %v4063_v27, %v8801_v56 }
 0x4a8   : > { %v4143_v61 = vmax.f32 %v4111_v44, 0.0 }
 0x4a9   : > { %v4127_v29 = vmax.f32 %v4095_v3, 0.0  ;;  %v3988_v63 = vpop.f32.mrf.mxu3 }
 0x4aa   : > { %4175 = vst.msk [vmem:[%s8277_s17 + $0x90] sm:$0xff] %vm280_vm0, %v4143_v61  ;;  %v4044_v48 = vmul.f32 %v8260_v41, %v3988_v63  ;;  %v3948_v15 = vpop.f32.mrf.mxu1 }
 0x4ab   : > { %4159 = vst.msk [vmem:[%s8277_s17 + $0x10] sm:$0xff] %vm280_vm0, %v4127_v29  ;;  %v4028_v46 = vmul.f32 %v8260_v41, %v3948_v15 }
 0x4ac   : > { %v4080_v36 = vadd.f32 %v8265_v54, %v4044_v48 }
 0x4ad   : > { %v4064_v49 = vadd.f32 %v8265_v54, %v4028_v46 }
 0x4ae   : > { %v4112_v38 = vadd.f32 %v4080_v36, %v8802_v1  ;;  %v8812_v36 = vld [vmem:[#allocation29_spill] sm:$0xff] }
 0x4af   : > { %v4096_v2 = vadd.f32 %v4064_v49, %v8803_v55  ;;  %v8813_v1 = vld [vmem:[#allocation9_spill] sm:$0xff] }
 0x4b0   : > { %v4144_v33 = vmax.f32 %v4112_v38, 0.0 }
 0x4b1   : > { %v4128_v25 = vmax.f32 %v4096_v2, 0.0  ;;  %v3991_v13 = vpop.f32.mrf.mxu3 }
 0x4b2   : > { %4176 = vst.msk [vmem:[%s8277_s17 + $0x98] sm:$0xff] %vm280_vm0, %v4144_v33  ;;  %v4045_v51 = vmul.f32 %v8260_v41, %v3991_v13  ;;  %v3951_v4 = vpop.f32.mrf.mxu1 }
 0x4b3   : > { %4160 = vst.msk [vmem:[%s8277_s17 + $0x18] sm:$0xff] %vm280_vm0, %v4128_v25  ;;  %v4029_v35 = vmul.f32 %v8260_v41, %v3951_v4 }
 0x4b4   : > { %v4081_v60 = vadd.f32 %v8265_v54, %v4045_v51 }
 0x4b5   : > { %v4065_v40 = vadd.f32 %v8265_v54, %v4029_v35 }
 0x4b6   : > { %v4113_v21 = vadd.f32 %v4081_v60, %v8804_v12  ;;  %v8814_v60 = vld [vmem:[#allocation30_spill] sm:$0xff] }
 0x4b7   : > { %v4097_v22 = vadd.f32 %v4065_v40, %v8805_v18  ;;  %v8815_v12 = vld [vmem:[#allocation10_spill] sm:$0xff] }
 0x4b8   : > { %v4145_v62 = vmax.f32 %v4113_v21, 0.0 }
 0x4b9   : > { %v4129_v34 = vmax.f32 %v4097_v22, 0.0  ;;  %v3993_v24 = vpop.f32.mrf.mxu3 }
 0x4ba   : > { %4177 = vst.msk [vmem:[%s8277_s17 + $0xa0] sm:$0xff] %vm280_vm0, %v4145_v62  ;;  %v4046_v10 = vmul.f32 %v8260_v41, %v3993_v24  ;;  %v3953_v20 = vpop.f32.mrf.mxu1 }
 0x4bb   : > { %4161 = vst.msk [vmem:[%s8277_s17 + $0x20] sm:$0xff] %vm280_vm0, %v4129_v34  ;;  %v4030_v47 = vmul.f32 %v8260_v41, %v3953_v20 }
 0x4bc   : > { %v4082_v43 = vadd.f32 %v8265_v54, %v4046_v10 }
 0x4bd   : > { %v4066_v17 = vadd.f32 %v8265_v54, %v4030_v47 }
 0x4be   : > { %v4114_v53 = vadd.f32 %v4082_v43, %v8806_v7  ;;  %v8816_v43 = vld [vmem:[#allocation27_spill] sm:$0xff]  ;;  %v8817_v7 = vld [vmem:[#allocation13_spill] sm:$0xff] }
 0x4bf   : > { %v4098_v39 = vadd.f32 %v4066_v17, %v8807_v19 }
 0x4c0   : > { %v4146_v57 = vmax.f32 %v4114_v53, 0.0 }
 0x4c1   : > { %v4130_v32 = vmax.f32 %v4098_v39, 0.0  ;;  %v3996_v5 = vpop.f32.mrf.mxu3 }
 0x4c2   : > { %4178 = vst.msk [vmem:[%s8277_s17 + $0xa8] sm:$0xff] %vm280_vm0, %v4146_v57  ;;  %v4047_v0 = vmul.f32 %v8260_v41, %v3996_v5  ;;  %v3956_v30 = vpop.f32.mrf.mxu1 }
 0x4c3   : > { %4162 = vst.msk [vmem:[%s8277_s17 + $0x28] sm:$0xff] %vm280_vm0, %v4130_v32  ;;  %v4031_v9 = vmul.f32 %v8260_v41, %v3956_v30 }
 0x4c4   : > { %v4083_v42 = vadd.f32 %v8265_v54, %v4047_v0 }
 0x4c5   : > { %v4067_v37 = vadd.f32 %v8265_v54, %v4031_v9 }
 0x4c6   : > { %v4115_v8 = vadd.f32 %v4083_v42, %v8808_v11  ;;  %v8818_v42 = vld [vmem:[#allocation28_spill] sm:$0xff]  ;;  %v8819_v11 = vld [vmem:[#allocation14_spill] sm:$0xff] }
 0x4c7   : > { %v4099_v31 = vadd.f32 %v4067_v37, %v8809_v59 }
 0x4c8   : > { %v4147_v26 = vmax.f32 %v4115_v8, 0.0 }
 0x4c9   : > { %v4131_v14 = vmax.f32 %v4099_v31, 0.0  ;;  %v3998_v16 = vpop.f32.mrf.mxu3 }
 0x4ca   : > { %4179 = vst.msk [vmem:[%s8277_s17 + $0xb0] sm:$0xff] %vm280_vm0, %v4147_v26  ;;  %v4048_v6 = vmul.f32 %v8260_v41, %v3998_v16  ;;  %v3958_v45 = vpop.f32.mrf.mxu1 }
 0x4cb   : > { %4163 = vst.msk [vmem:[%s8277_s17 + $0x30] sm:$0xff] %vm280_vm0, %v4131_v14  ;;  %v4032_v23 = vmul.f32 %v8260_v41, %v3958_v45 }
 0x4cc   : > { %v4084_v52 = vadd.f32 %v8265_v54, %v4048_v6 }
 0x4cd   : > { %v4068_v50 = vadd.f32 %v8265_v54, %v4032_v23  ;;  %v8820_v23 = vld [vmem:[#allocation31_spill] sm:$0xff] }
 0x4ce   : > { %v4116_v27 = vadd.f32 %v4084_v52, %v8810_v28 }
 0x4cf   : > { %v4100_v44 = vadd.f32 %v4068_v50, %v8811_v58 }
 0x4d0   : > { %v4148_v56 = vmax.f32 %v4116_v27, 0.0  ;;  %v8821_v27 = vld [vmem:[#allocation17_spill] sm:$0xff] }
 0x4d1   : > { %v4132_v3 = vmax.f32 %v4100_v44, 0.0  ;;  %v4001_v61 = vpop.f32.mrf.mxu3 }
 0x4d2   : > { %4180 = vst.msk [vmem:[%s8277_s17 + $0xb8] sm:$0xff] %vm280_vm0, %v4148_v56  ;;  %v4049_v29 = vmul.f32 %v8260_v41, %v4001_v61  ;;  %v3961_v63 = vpop.f32.mrf.mxu1 }
 0x4d3   : > { %4164 = vst.msk [vmem:[%s8277_s17 + $0x38] sm:$0xff] %vm280_vm0, %v4132_v3  ;;  %v4033_v48 = vmul.f32 %v8260_v41, %v3961_v63 }
 0x4d4   : > { %v4085_v15 = vadd.f32 %v8265_v54, %v4049_v29 }
 0x4d5   : > { %v4069_v46 = vadd.f32 %v8265_v54, %v4033_v48  ;;  %v8822_v48 = vld [vmem:[#allocation32_spill] sm:$0xff] }
 0x4d6   : > { %v4117_v49 = vadd.f32 %v4085_v15, %v8812_v36 }
 0x4d7   : > { %v4101_v38 = vadd.f32 %v4069_v46, %v8813_v1 }
 0x4d8   : > { %v4149_v55 = vmax.f32 %v4117_v49, 0.0  ;;  %v8823_v49 = vld [vmem:[#allocation18_spill] sm:$0xff] }
 0x4d9   : > { %v4133_v2 = vmax.f32 %v4101_v38, 0.0  ;;  %v4003_v33 = vpop.f32.mrf.mxu3 }
 0x4da   : > { %4181 = vst.msk [vmem:[%s8277_s17 + $0xc0] sm:$0xff] %vm280_vm0, %v4149_v55  ;;  %v4050_v25 = vmul.f32 %v8260_v41, %v4003_v33  ;;  %v3963_v13 = vpop.f32.mrf.mxu1 }
 0x4db   : > { %4165 = vst.msk [vmem:[%s8277_s17 + $0x40] sm:$0xff] %vm280_vm0, %v4133_v2  ;;  %v4034_v51 = vmul.f32 %v8260_v41, %v3963_v13 }
 0x4dc   : > { %v4086_v4 = vadd.f32 %v8265_v54, %v4050_v25 }
 0x4dd   : > { %v4070_v35 = vadd.f32 %v8265_v54, %v4034_v51  ;;  %v8824_v51 = vld [vmem:[#allocation36_spill] sm:$0xff] }
 0x4de   : > { %v4118_v40 = vadd.f32 %v4086_v4, %v8814_v60 }
 0x4df   : > { %v4102_v21 = vadd.f32 %v4070_v35, %v8815_v12 }
 0x4e0   : > { %v4150_v18 = vmax.f32 %v4118_v40, 0.0  ;;  %v8825_v40 = vld [vmem:[#allocation15_spill] sm:$0xff] }
 0x4e1   : > { %v4134_v22 = vmax.f32 %v4102_v21, 0.0  ;;  %v4006_v62 = vpop.f32.mrf.mxu3 }
 0x4e2   : > { %4182 = vst.msk [vmem:[%s8277_s17 + $0xc8] sm:$0xff] %vm280_vm0, %v4150_v18  ;;  %v4051_v34 = vmul.f32 %v8260_v41, %v4006_v62  ;;  %v3966_v24 = vpop.f32.mrf.mxu1 }
 0x4e3   : > { %4166 = vst.msk [vmem:[%s8277_s17 + $0x48] sm:$0xff] %vm280_vm0, %v4134_v22  ;;  %v4035_v10 = vmul.f32 %v8260_v41, %v3966_v24 }
 0x4e4   : > { %v4087_v20 = vadd.f32 %v8265_v54, %v4051_v34 }
 0x4e5   : > { %v4071_v47 = vadd.f32 %v8265_v54, %v4035_v10  ;;  %v8826_v10 = vld [vmem:[#allocation37_spill] sm:$0xff] }
 0x4e6   : > { %v4119_v17 = vadd.f32 %v4087_v20, %v8816_v43 }
 0x4e7   : > { %v4103_v53 = vadd.f32 %v4071_v47, %v8817_v7 }
 0x4e8   : > { %v4151_v19 = vmax.f32 %v4119_v17, 0.0  ;;  %v8827_v17 = vld [vmem:[#allocation16_spill] sm:$0xff] }
 0x4e9   : > { %v4135_v39 = vmax.f32 %v4103_v53, 0.0  ;;  %v4008_v57 = vpop.f32.mrf.mxu3 }
 0x4ea   : > { %4183 = vst.msk [vmem:[%s8277_s17 + $0xd0] sm:$0xff] %vm280_vm0, %v4151_v19  ;;  %v4052_v32 = vmul.f32 %v8260_v41, %v4008_v57  ;;  %v3968_v5 = vpop.f32.mrf.mxu1 }
 0x4eb   : > { %4167 = vst.msk [vmem:[%s8277_s17 + $0x50] sm:$0xff] %vm280_vm0, %v4135_v39  ;;  %v4036_v0 = vmul.f32 %v8260_v41, %v3968_v5 }
 0x4ec   : > { %v4088_v30 = vadd.f32 %v8265_v54, %v4052_v32 }
 0x4ed   : > { %v4072_v9 = vadd.f32 %v8265_v54, %v4036_v0 }
 0x4ee   : > { %v4120_v37 = vadd.f32 %v4088_v30, %v8818_v42 }
 0x4ef   : > { %v4104_v8 = vadd.f32 %v4072_v9, %v8819_v11 }
 0x4f0   : > { %v4152_v59 = vmax.f32 %v4120_v37, 0.0 }
 0x4f1   : > { %v4136_v31 = vmax.f32 %v4104_v8, 0.0  ;;  %v4011_v26 = vpop.f32.mrf.mxu3 }
 0x4f2   : > { %4184 = vst.msk [vmem:[%s8277_s17 + $0xd8] sm:$0xff] %vm280_vm0, %v4152_v59  ;;  %v4053_v14 = vmul.f32 %v8260_v41, %v4011_v26 }
 0x4f3   : > { %4168 = vst.msk [vmem:[%s8277_s17 + $0x58] sm:$0xff] %vm280_vm0, %v4136_v31  ;;  %v3971_v16 = vpop.f32.mrf.mxu1 }
 0x4f4   : > { %v4089_v6 = vadd.f32 %v8265_v54, %v4053_v14  ;;  %v4037_v45 = vmul.f32 %v8260_v41, %v3971_v16 }
 0x4f6   : > { %v4121_v52 = vadd.f32 %v4089_v6, %v8820_v23  ;;  %v4073_v50 = vadd.f32 %v8265_v54, %v4037_v45 }
 0x4f8   : > { %v4153_v28 = vmax.f32 %v4121_v52, 0.0  ;;  %v4105_v58 = vadd.f32 %v4073_v50, %v8821_v27 }
 0x4f9   : > { %v4013_v44 = vpop.f32.mrf.mxu3 }
 0x4fa   : > { %4185 = vst.msk [vmem:[%s8277_s17 + $0xe0] sm:$0xff] %vm280_vm0, %v4153_v28  ;;  %v4137_v56 = vmax.f32 %v4105_v58, 0.0  ;;  %v4054_v3 = vmul.f32 %v8260_v41, %v4013_v44 }
 0x4fb   : > { %v3973_v61 = vpop.f32.mrf.mxu1 }
 0x4fc   : > { %4169 = vst.msk [vmem:[%s8277_s17 + $0x60] sm:$0xff] %vm280_vm0, %v4137_v56  ;;  %v4090_v29 = vadd.f32 %v8265_v54, %v4054_v3  ;;  %v4038_v63 = vmul.f32 %v8260_v41, %v3973_v61 }
 0x4fe   : > { %v4122_v15 = vadd.f32 %v4090_v29, %v8822_v48  ;;  %v4074_v46 = vadd.f32 %v8265_v54, %v4038_v63 }
 0x500   : > { %v4154_v36 = vmax.f32 %v4122_v15, 0.0  ;;  %v4106_v1 = vadd.f32 %v4074_v46, %v8823_v49 }
 0x502   : > { %4186 = vst.msk [vmem:[%s8277_s17 + $0xe8] sm:$0xff] %vm280_vm0, %v4154_v36  ;;  %v4138_v38 = vmax.f32 %v4106_v1, 0.0  ;;  %v4016_v55 = vpop.f32.mrf.mxu3 }
 0x503   : > { %v4055_v2 = vmul.f32 %v8260_v41, %v4016_v55 }
 0x504   : > { %4170 = vst.msk [vmem:[%s8277_s17 + $0x68] sm:$0xff] %vm280_vm0, %v4138_v38  ;;  %v3976_v33 = vpop.f32.mrf.mxu1 }
 0x505   : > { %v4091_v25 = vadd.f32 %v8265_v54, %v4055_v2  ;;  %v4039_v13 = vmul.f32 %v8260_v41, %v3976_v33 }
 0x507   : > { %v4123_v4 = vadd.f32 %v4091_v25, %v8824_v51  ;;  %v4075_v35 = vadd.f32 %v8265_v54, %v4039_v13 }
 0x509   : > { %v4155_v60 = vmax.f32 %v4123_v4, 0.0  ;;  %v4107_v12 = vadd.f32 %v4075_v35, %v8825_v40 }
 0x50a   : > { %v4018_v21 = vpop.f32.mrf.mxu3 }
 0x50b   : > { %4187 = vst.msk [vmem:[%s8277_s17 + $0xf0] sm:$0xff] %vm280_vm0, %v4155_v60  ;;  %v4139_v18 = vmax.f32 %v4107_v12, 0.0  ;;  %v4056_v22 = vmul.f32 %v8260_v41, %v4018_v21 }
 0x50c   : > { %v3978_v62 = vpop.f32.mrf.mxu1 }
 0x50d   : > { %4171 = vst.msk [vmem:[%s8277_s17 + $0x70] sm:$0xff] %vm280_vm0, %v4139_v18  ;;  %v4092_v34 = vadd.f32 %v8265_v54, %v4056_v22  ;;  %v4040_v24 = vmul.f32 %v8260_v41, %v3978_v62 }
 0x50f   : > { %v4124_v20 = vadd.f32 %v4092_v34, %v8826_v10  ;;  %v4076_v47 = vadd.f32 %v8265_v54, %v4040_v24 }
 0x511   : > { %v4156_v43 = vmax.f32 %v4124_v20, 0.0  ;;  %v4108_v7 = vadd.f32 %v4076_v47, %v8827_v17 }
 0x513   : > { %4188 = vst.msk [vmem:[%s8277_s17 + $0xf8] sm:$0xff] %vm280_vm0, %v4156_v43  ;;  %v4140_v53 = vmax.f32 %v4108_v7, 0.0 }
 0x515   : > { %4172 = vst.msk [vmem:[%s8277_s17 + $0x78] sm:$0xff] %vm280_vm0, %v4140_v53 }
 0x516 PF: > { %s17_s24 = sadd.s32 1, %s5641_s24  }
 0x517   : > { %p14_p4 = scmp.ge.s32.totalorder %s17_s24, 4  }
 0x519   :  { %16 = sbr.rel (!%p14_p4) target bundleno = 1 (0x1), region = 81 }

</bundles_post_ra>
